<compile_context>
chip_gen: v7x
topology: tpu7x:2x2x1
jax: 0.10.0
libtpu: 0.0.40
codegen_flags: <defaults>
</compile_context>

<pallas_src>
import jax
import jax.numpy as jnp
from jax.experimental import pallas as pl
from jax.experimental.pallas import tpu as pltpu

# Original (PyTorch) dims.
D_IN, H1, H2, D_OUT = 3 * 32 * 32, 1000, 500, 10
# Lane-padded (multiple-of-128) dims used inside the kernel.
H1_P, H2_P, D_OUT_P = 1024, 512, 128
TK = 1536  # fc1 K tile: 3072 / 1536 = 2 grid steps (was 6)


def _mlp_kernel(x_ref, w1_ref, b1_ref, w2_ref, b2_ref, w3_ref, b3_ref,
                o_ref, h1_acc):
    k = pl.program_id(0)

    @pl.when(k == 0)
    def _():
        h1_acc[...] = jnp.zeros_like(h1_acc)

    # fc1 partial product for this K tile: bf16 operands (x pre-cast in the
    # wrapper), f32 accumulation on the MXU.
    h1_acc[...] += jnp.dot(x_ref[...], w1_ref[...],
                           preferred_element_type=jnp.float32)

    @pl.when(k == pl.num_programs(0) - 1)
    def _():
        # Bias + ReLU in f32 (VPU), then fc2/fc3 on the MXU.  w2/w3/biases are
        # VMEM-resident, so the exposed tail is only the MXU weight push.
        h1 = jnp.maximum(h1_acc[...] + b1_ref[...], 0.0)
        h2 = jnp.dot(h1.astype(jnp.bfloat16), w2_ref[...],
                     preferred_element_type=jnp.float32)
        h2 = jnp.maximum(h2 + b2_ref[...], 0.0)
        h3 = jnp.dot(h2.astype(jnp.bfloat16), w3_ref[...],
                     preferred_element_type=jnp.float32)
        o_ref[...] = (h3 + b3_ref[...]).astype(o_ref.dtype)


def net_forward(x, params):
    """x: (B, 3072) float32. params: output of prepare_params() (padded, bf16 W)."""
    w1, b1, w2, b2, w3, b3 = (
        params["w1"], params["b1"], params["w2"],
        params["b2"], params["w3"], params["b3"],
    )
    B = x.shape[0]
    n_k = D_IN // TK

    # Pre-cast input to bf16 (halves x DMA; removes the in-kernel pack).
    x_bf16 = x.astype(jnp.bfloat16)

    flops = 2 * B * (D_IN * H1_P + H1_P * H2_P + H2_P * D_OUT_P)
    bytes_accessed = (
        x_bf16.size * x_bf16.dtype.itemsize
        + sum(a.size * a.dtype.itemsize for a in (w1, b1, w2, b2, w3, b3))
        + B * D_OUT_P * 4)

    out_padded = pl.pallas_call(
        _mlp_kernel,
        out_shape=jax.ShapeDtypeStruct((B, D_OUT_P), jnp.float32),
        grid_spec=pltpu.PrefetchScalarGridSpec(
            num_scalar_prefetch=0,
            grid=(n_k,),
            in_specs=[
                pl.BlockSpec((B, TK), lambda k: (0, k)),          # x, K-tiled
                pl.BlockSpec((TK, H1_P), lambda k: (k, 0)),       # w1, K-tiled
                pl.BlockSpec((1, H1_P), lambda k: (0, 0)),        # b1, resident
                pl.BlockSpec((H1_P, H2_P), lambda k: (0, 0)),     # w2, resident
                pl.BlockSpec((1, H2_P), lambda k: (0, 0)),        # b2, resident
                pl.BlockSpec((H2_P, D_OUT_P), lambda k: (0, 0)),  # w3, resident
                pl.BlockSpec((1, D_OUT_P), lambda k: (0, 0)),     # b3, resident
            ],
            out_specs=pl.BlockSpec((B, D_OUT_P), lambda k: (0, 0)),
            scratch_shapes=[pltpu.VMEM((B, H1_P), jnp.float32)],
        ),
        compiler_params=pltpu.CompilerParams(
            dimension_semantics=("arbitrary",),     # K axis is a reduction
            vmem_limit_bytes=32 * 1024 * 1024,      # explicit: v5e default is 16 MiB
        ),
        cost_estimate=pl.CostEstimate(
            flops=flops, transcendentals=0, bytes_accessed=bytes_accessed),
    )(x_bf16, w1, b1, w2, b2, w3, b3)

    return out_padded[:, :D_OUT]


def init_params(key):
    """PyTorch-style Linear init U(-1/sqrt(fan_in), 1/sqrt(fan_in)), f32, unpadded."""
    dims = [(D_IN, H1), (H1, H2), (H2, D_OUT)]
    params = {}
    keys = jax.random.split(key, 2 * len(dims))
    for idx, (fan_in, fan_out) in enumerate(dims):
        bound = 1.0 / (fan_in ** 0.5)
        params[f"w{idx + 1}"] = jax.random.uniform(
            keys[2 * idx], (fan_in, fan_out), jnp.float32, -bound, bound)
        params[f"b{idx + 1}"] = jax.random.uniform(
            keys[2 * idx + 1], (1, fan_out), jnp.float32, -bound, bound)
    return params


def prepare_params(params_f32):
    """Zero-pad to lane-aligned widths; weights -> bf16, biases stay f32."""
    def pad2(a, rows, cols):
        return jnp.pad(a, ((0, rows - a.shape[0]), (0, cols - a.shape[1])))

    return {
        "w1": pad2(params_f32["w1"], D_IN, H1_P).astype(jnp.bfloat16),
        "b1": pad2(params_f32["b1"], 1, H1_P),
        "w2": pad2(params_f32["w2"], H1_P, H2_P).astype(jnp.bfloat16),
        "b2": pad2(params_f32["b2"], 1, H2_P),
        "w3": pad2(params_f32["w3"], H2_P, D_OUT_P).astype(jnp.bfloat16),
        "b3": pad2(params_f32["b3"], 1, D_OUT_P),
    }


def _reference_f32(x, p):
    """Exact original-module semantics in f32."""
    h1 = jnp.maximum(x @ p["w1"] + p["b1"], 0.0)
    h2 = jnp.maximum(h1 @ p["w2"] + p["b2"], 0.0)
    return h2 @ p["w3"] + p["b3"]


def _reference_bf16(x, p):
    """Mirrors the kernel's bf16-operand / f32-accumulate numerics."""
    bf = jnp.bfloat16
    h1 = jnp.maximum(
        jnp.dot(x.astype(bf), p["w1"], preferred_element_type=jnp.float32)
        + p["b1"], 0.0)
    h2 = jnp.maximum(
        jnp.dot(h1.astype(bf), p["w2"], preferred_element_type=jnp.float32)
        + p["b2"], 0.0)
    h3 = (jnp.dot(h2.astype(bf), p["w3"], preferred_element_type=jnp.float32)
          + p["b3"])
    return h3[:, :D_OUT]


if __name__ == "__main__":
    key = jax.random.PRNGKey(0)
    k_x, k_p = jax.random.split(key)
    # Batch of 2 flattened CIFAR-10 images: (2, 3*32*32) = (2, 3072).
    x = jax.random.normal(k_x, (2, D_IN), jnp.float32)
    params_f32 = init_params(k_p)
    params = prepare_params(params_f32)

    out = jax.block_until_ready(net_forward(x, params))
    assert out.shape == (2, D_OUT), out.shape

    # Tight check vs. a reference that mirrors the kernel's bf16 numerics.
    ref_bf16 = _reference_bf16(x, params)
    assert jnp.allclose(out, ref_bf16, atol=2e-3, rtol=2e-3), (
        "mismatch vs bf16 reference")
    # Loose sanity check vs. the full-f32 PyTorch-equivalent reference.
    ref_f32 = _reference_f32(x, params_f32)
    assert jnp.allclose(out, ref_f32, atol=5e-2, rtol=5e-2), (
        "mismatch vs f32 reference")

    print("KERNEL_OK")
</pallas_src>

<mosaic_0001>
module attributes {stable_mosaic.version = 11 : i64} {
  func.func @_mlp_kernel(%arg0: i32, %arg1: memref<2x1536xbf16, #tpu.memory_space<vmem>>, %arg2: memref<1536x1024xbf16, #tpu.memory_space<vmem>>, %arg3: memref<1x1024xf32, #tpu.memory_space<vmem>>, %arg4: memref<1024x512xbf16, #tpu.memory_space<vmem>>, %arg5: memref<1x512xf32, #tpu.memory_space<vmem>>, %arg6: memref<512x128xbf16, #tpu.memory_space<vmem>>, %arg7: memref<1x128xf32, #tpu.memory_space<vmem>>, %arg8: memref<2x128xf32, #tpu.memory_space<vmem>>, %arg9: memref<2x1024xf32, #tpu.memory_space<vmem>>) attributes {dimension_semantics = [#tpu.dimension_semantics<arbitrary>], iteration_bounds = array<i64: 2>, scalar_prefetch = 0 : i64, scratch_operands = 1 : i64, tpu.core_type = #tpu.core_type<tc>, window_params = [{transform_indices = @transform_0, window_bounds = array<i64: 2, 1536>}, {transform_indices = @transform_1, window_bounds = array<i64: 1536, 1024>}, {pipeline_mode = #tpu.pipeline_mode<synchronous>, transform_indices = @transform_2, window_bounds = array<i64: 1, 1024>}, {pipeline_mode = #tpu.pipeline_mode<synchronous>, transform_indices = @transform_3, window_bounds = array<i64: 1024, 512>}, {pipeline_mode = #tpu.pipeline_mode<synchronous>, transform_indices = @transform_4, window_bounds = array<i64: 1, 512>}, {pipeline_mode = #tpu.pipeline_mode<synchronous>, transform_indices = @transform_5, window_bounds = array<i64: 512, 128>}, {pipeline_mode = #tpu.pipeline_mode<synchronous>, transform_indices = @transform_6, window_bounds = array<i64: 1, 128>}, {pipeline_mode = #tpu.pipeline_mode<synchronous>, transform_indices = @transform_7, window_bounds = array<i64: 2, 128>}]} {
    %c0_i32 = arith.constant 0 : i32
    %0 = arith.cmpi eq, %arg0, %c0_i32 : i32
    %1 = arith.extui %0 : i1 to i32
    %c0_i32_0 = arith.constant 0 : i32
    %2 = arith.cmpi ne, %1, %c0_i32_0 : i32
    scf.if %2 {
      %cst_9 = arith.constant 0.000000e+00 : f32
      %12 = vector.broadcast %cst_9 : f32 to vector<2x1024xf32>
      %c0_10 = arith.constant 0 : index
      %c0_11 = arith.constant 0 : index
      %13 = vector.load %arg9[%c0_10, %c0_11] : memref<2x1024xf32, #tpu.memory_space<vmem>>, vector<2x1024xf32>
      tpu.vector_store %arg9[%c0_10, %c0_11], %12 {strides = array<i32>} : memref<2x1024xf32, #tpu.memory_space<vmem>>, vector<2x1024xf32>,
    } else {
    }
    %c0 = arith.constant 0 : index
    %c0_1 = arith.constant 0 : index
    %3 = vector.load %arg9[%c0, %c0_1] : memref<2x1024xf32, #tpu.memory_space<vmem>>, vector<2x1024xf32>
    %c0_2 = arith.constant 0 : index
    %c0_3 = arith.constant 0 : index
    %4 = vector.load %arg1[%c0_2, %c0_3] : memref<2x1536xbf16, #tpu.memory_space<vmem>>, vector<2x1536xbf16>
    %c0_4 = arith.constant 0 : index
    %c0_5 = arith.constant 0 : index
    %5 = vector.load %arg2[%c0_4, %c0_5] : memref<1536x1024xbf16, #tpu.memory_space<vmem>>, vector<1536x1024xbf16>
    %cst = arith.constant dense<0.000000e+00> : vector<2x1024xf32>
    %6 = tpu.matmul %4, %5, %cst {dimension_numbers = #tpu.dot_dimension_numbers<[1], [0], [0], [1], [0, 0, 1, 1], [], []>} : vector<2x1536xbf16>, vector<1536x1024xbf16>, vector<2x1024xf32> -> vector<2x1024xf32>
    %7 = arith.addf %3, %6 : vector<2x1024xf32>
    %c0_6 = arith.constant 0 : index
    %c0_7 = arith.constant 0 : index
    %8 = vector.load %arg9[%c0_6, %c0_7] : memref<2x1024xf32, #tpu.memory_space<vmem>>, vector<2x1024xf32>
    tpu.vector_store %arg9[%c0_6, %c0_7], %7 {strides = array<i32>} : memref<2x1024xf32, #tpu.memory_space<vmem>>, vector<2x1024xf32>,
    %c1_i32 = arith.constant 1 : i32
    %9 = arith.cmpi eq, %arg0, %c1_i32 : i32
    %10 = arith.extui %9 : i1 to i32
    %c0_i32_8 = arith.constant 0 : i32
    %11 = arith.cmpi ne, %10, %c0_i32_8 : i32
    scf.if %11 {
      %c0_9 = arith.constant 0 : index
      %c0_10 = arith.constant 0 : index
      %12 = vector.load %arg9[%c0_9, %c0_10] : memref<2x1024xf32, #tpu.memory_space<vmem>>, vector<2x1024xf32>
      %c0_11 = arith.constant 0 : index
      %c0_12 = arith.constant 0 : index
      %13 = vector.load %arg3[%c0_11, %c0_12] : memref<1x1024xf32, #tpu.memory_space<vmem>>, vector<1x1024xf32>
      %14 = vector.broadcast %13 : vector<1x1024xf32> to vector<2x1024xf32>
      %15 = arith.addf %12, %14 : vector<2x1024xf32>
      %cst_13 = arith.constant 0.000000e+00 : f32
      %16 = vector.broadcast %cst_13 : f32 to vector<2x1024xf32>
      %17 = arith.maximumf %15, %16 : vector<2x1024xf32>
      %18 = arith.truncf %17 : vector<2x1024xf32> to vector<2x1024xbf16>
      %c0_14 = arith.constant 0 : index
      %c0_15 = arith.constant 0 : index
      %19 = vector.load %arg4[%c0_14, %c0_15] : memref<1024x512xbf16, #tpu.memory_space<vmem>>, vector<1024x512xbf16>
      %cst_16 = arith.constant dense<0.000000e+00> : vector<2x512xf32>
      %20 = tpu.matmul %18, %19, %cst_16 {dimension_numbers = #tpu.dot_dimension_numbers<[1], [0], [0], [1], [0, 0, 1, 1], [], []>} : vector<2x1024xbf16>, vector<1024x512xbf16>, vector<2x512xf32> -> vector<2x512xf32>
      %c0_17 = arith.constant 0 : index
      %c0_18 = arith.constant 0 : index
      %21 = vector.load %arg5[%c0_17, %c0_18] : memref<1x512xf32, #tpu.memory_space<vmem>>, vector<1x512xf32>
      %22 = vector.broadcast %21 : vector<1x512xf32> to vector<2x512xf32>
      %23 = arith.addf %20, %22 : vector<2x512xf32>
      %cst_19 = arith.constant 0.000000e+00 : f32
      %24 = vector.broadcast %cst_19 : f32 to vector<2x512xf32>
      %25 = arith.maximumf %23, %24 : vector<2x512xf32>
      %26 = arith.truncf %25 : vector<2x512xf32> to vector<2x512xbf16>
      %c0_20 = arith.constant 0 : index
      %c0_21 = arith.constant 0 : index
      %27 = vector.load %arg6[%c0_20, %c0_21] : memref<512x128xbf16, #tpu.memory_space<vmem>>, vector<512x128xbf16>
      %cst_22 = arith.constant dense<0.000000e+00> : vector<2x128xf32>
      %28 = tpu.matmul %26, %27, %cst_22 {dimension_numbers = #tpu.dot_dimension_numbers<[1], [0], [0], [1], [0, 0, 1, 1], [], []>} : vector<2x512xbf16>, vector<512x128xbf16>, vector<2x128xf32> -> vector<2x128xf32>
      %c0_23 = arith.constant 0 : index
      %c0_24 = arith.constant 0 : index
      %29 = vector.load %arg7[%c0_23, %c0_24] : memref<1x128xf32, #tpu.memory_space<vmem>>, vector<1x128xf32>
      %30 = vector.broadcast %29 : vector<1x128xf32> to vector<2x128xf32>
      %31 = arith.addf %28, %30 : vector<2x128xf32>
      %c0_25 = arith.constant 0 : index
      %c0_26 = arith.constant 0 : index
      %32 = vector.load %arg8[%c0_25, %c0_26] : memref<2x128xf32, #tpu.memory_space<vmem>>, vector<2x128xf32>
      tpu.vector_store %arg8[%c0_25, %c0_26], %31 {strides = array<i32>} : memref<2x128xf32, #tpu.memory_space<vmem>>, vector<2x128xf32>,
    } else {
    }
    return
  }
  func.func @transform_0(%arg0: i32) -> (i32, i32) {
    %c0_i32 = arith.constant 0 : i32
    %c0_i32_0 = arith.constant 0 : i32
    return %c0_i32, %arg0 : i32, i32
  }
  func.func @transform_1(%arg0: i32) -> (i32, i32) {
    %c0_i32 = arith.constant 0 : i32
    %c0_i32_0 = arith.constant 0 : i32
    return %arg0, %c0_i32 : i32, i32
  }
  func.func @transform_2(%arg0: i32) -> (i32, i32) {
    %c0_i32 = arith.constant 0 : i32
    %c0_i32_0 = arith.constant 0 : i32
    %c0_i32_1 = arith.constant 0 : i32
    return %c0_i32, %c0_i32_0 : i32, i32
  }
  func.func @transform_3(%arg0: i32) -> (i32, i32) {
    %c0_i32 = arith.constant 0 : i32
    %c0_i32_0 = arith.constant 0 : i32
    %c0_i32_1 = arith.constant 0 : i32
    return %c0_i32, %c0_i32_0 : i32, i32
  }
  func.func @transform_4(%arg0: i32) -> (i32, i32) {
    %c0_i32 = arith.constant 0 : i32
    %c0_i32_0 = arith.constant 0 : i32
    %c0_i32_1 = arith.constant 0 : i32
    return %c0_i32, %c0_i32_0 : i32, i32
  }
  func.func @transform_5(%arg0: i32) -> (i32, i32) {
    %c0_i32 = arith.constant 0 : i32
    %c0_i32_0 = arith.constant 0 : i32
    %c0_i32_1 = arith.constant 0 : i32
    return %c0_i32, %c0_i32_0 : i32, i32
  }
  func.func @transform_6(%arg0: i32) -> (i32, i32) {
    %c0_i32 = arith.constant 0 : i32
    %c0_i32_0 = arith.constant 0 : i32
    %c0_i32_1 = arith.constant 0 : i32
    return %c0_i32, %c0_i32_0 : i32, i32
  }
  func.func @transform_7(%arg0: i32) -> (i32, i32) {
    %c0_i32 = arith.constant 0 : i32
    %c0_i32_0 = arith.constant 0 : i32
    %c0_i32_1 = arith.constant 0 : i32
    return %c0_i32, %c0_i32_0 : i32, i32
  }
}

</mosaic_0001>

<bundles_post_ra>
// kernel: tpu_custom_call.1
= control target key start
LH: loop header
LB: loop body
LE: loop exit
PB: predicated region body
PF: predicated region fallthrough
CT: control target
= control target key end

     0   :  { %s12011_s0 = inlined_call_operand.hbm [shape: bf16[2,3072], index: 0, kind: input, shape index: {}]   ;;  %s12012_s1 = inlined_call_operand.hbm [shape: bf16[3072,1024], index: 1, kind: input, shape index: {}]   ;;  %s12013_s2 = inlined_call_operand.hbm [shape: f32[1,1024], index: 2, kind: input, shape index: {}]   ;;  %s12014_s3 = inlined_call_operand.hbm [shape: bf16[1024,512], index: 3, kind: input, shape index: {}]   ;;  %s12015_s4 = inlined_call_operand.hbm [shape: f32[1,512], index: 4, kind: input, shape index: {}]   ;;  %s12016_s5 = inlined_call_operand.hbm [shape: bf16[512,128], index: 5, kind: input, shape index: {}]   ;;  %s12017_s6 = inlined_call_operand.hbm [shape: f32[1,128], index: 6, kind: input, shape index: {}]   ;;  %s12018_s7 = inlined_call_operand.hbm [shape: f32[2,128], index: 7, kind: output, shape index: {}]  }
   0x1   :  { %12021 = sst [smem:[#allocation22_spill]] %s12013_s2 }
   0x2   :  { %12 = vsyncpa [#allocation4], 0 }
   0x3   :  { %14 = vsyncpa [#allocation4 + $0x1], 0 }
   0x4   :  { %15 = vsyncpa [#allocation7], 0 }
   0x5   :  { %17 = vsyncpa [#allocation7 + $0x1], 0 }
   0x6   :  { %18 = vsyncpa [#allocation10], 0 }
   0x7   :  { %19 = vsyncpa [#allocation13], 0 }
   0x8   :  { %20 = vsyncpa [#allocation5], 0  ;;  %s10735_s24 = smov 0   ;;  %s10737_s25 = smov 0  }
   0x9   :  { %s10739_s26 = smov 0   ;;  %s10741_s27 = smov 0  }
   0xa LB: > { %s10678_s28 = smov [#allocation8]   ;;  %s10756_s30 = sadd.s32 4294967295, %s10676_s27   ;;  %s10676_s27 = sphi %s10741_s27, %s12040_s27   ;;  %s10672_s26 = sphi %s10739_s26, %s12039_s26   ;;  %s10668_s25 = sphi %s10737_s25, %s12038_s25   ;;  %s10664_s24 = sphi %s10735_s24, %s12037_s24  }
   0xb   : > { %s222_s29 = sshll.u32 %s10678_s28, 4  ;;  %p8628_p0 = scmp.ge.s32.totalorder %s10676_s27, 1  ;;  %s223_s29 = int_to_ptr.vmem [resolvable:$true] %s222_s29 }
   0xc   : > { %p12019_p1 = scmp.eq.s32.totalorder %s10756_s30, 0  ;;  %p209_p2 = scmp.lt.s32.totalorder %s10676_s27, 3 }
   0xd   : > { %s10679_s9 = smov [#allocation9]   ;;  %s10680_s12 = smov [#allocation12]  }
   0xe   : > { %p10762_p4 = pnand %p8628_p0, %p209_p2  ;;  %s232_s10 = sshll.u32 %s10679_s9, 4  ;;  %s10768_s10 = int_to_ptr.vmem [resolvable:$true] %s232_s10 }
   0xf   : > { %s256_s13 = sshll.u32 %s10680_s12, 4  ;;  %s12024_s2 = sld [smem:[#allocation22_spill]]  ;;  %s10776_s13 = int_to_ptr.vmem [resolvable:$true] %s256_s13 }
  0x10   : > { %s12022_s8 = scalar_select %p10762_p4, 1, 0 }
  0x11   : > { %p9896_p5 = pneg %p10762_p4 }
  0x13   : > { %p10772_p6 = pnand %p9896_p5, %p12019_p1 }
  0x15   : > { %s10396_s16 = scalar_lea.hbm %s12024_s2, 128  ;;  %p10786_p8 = pneg %p10772_p6 }
  0x16   : > { %p10397_p7 = scmp.ne.s32.totalorder %s12024_s2, %s10396_s16  ;;  %p10403_p11 = scmp.lt.u32.totalorder %s10396_s16, %s12024_s2 }
  0x18   : > { %p10399_p9 = pnand %p10786_p8, %p10397_p7 }
  0x1a   : > { %p10400_p10 = pneg %p10399_p9 }
  0x1c   : > { %p10405_p12 = pnand %p10403_p11, %p10400_p10 }
  0x1e   : > { %10408 = shalt.err (!%p10405_p12)
}
  0x1f   : > { %s10409_s22 = scalar_lea.vmem %s223_s29, 128  ;;  %p10417_p5 = scmp.lt.s32.totalorder %s223_s29, %s223_s29 }
  0x20   : > { %p10410_p13 = scmp.ne.s32.totalorder %s223_s29, %s10409_s22  ;;  %p10418_p3 = scmp.lt.s32.totalorder %s10409_s22, %s10409_s22 }
  0x22   : > { %p10412_p0 = pnand %p10410_p13, %p10786_p8  ;;  %p10419_p1 = por %p10418_p3, %p10417_p5 }
  0x24   : > { %p10413_p2 = pneg %p10412_p0 }
  0x26   : > { %p10420_p4 = pnand %p10419_p1, %p10413_p2 }
  0x28   : > { %10423 = shalt.err (!%p10420_p4)
}
  0x29   : > { %9899 = dma.hbm_to_vmem [thread:$0]  (!%p10772_p6), %s12024_s2, 128, %s223_s29, [#allocation7]  }
  0x2a   : > { %s10424_s14 = scalar_lea.hbm %s12014_s3, 32768 }
  0x2b   : > { %p10425_p7 = scmp.ne.s32.totalorder %s12014_s3, %s10424_s14  ;;  %p10431_p1 = scmp.lt.u32.totalorder %s10424_s14, %s12014_s3 }
  0x2d   : > { %p10427_p9 = pnand %p10425_p7, %p10786_p8 }
  0x2f   : > { %p10428_p3 = pneg %p10427_p9 }
  0x31   : > { %p10433_p4 = pnand %p10431_p1, %p10428_p3 }
  0x33   : > { %10436 = shalt.err (!%p10433_p4)
}
  0x34   : > { %s10437_s29 = scalar_lea.vmem %s10768_s10, 32768  ;;  %p10445_p13 = scmp.lt.s32.totalorder %s10768_s10, %s10768_s10 }
  0x35   : > { %p10438_p10 = scmp.ne.s32.totalorder %s10768_s10, %s10437_s29  ;;  %p10446_p0 = scmp.lt.s32.totalorder %s10437_s29, %s10437_s29 }
  0x37   : > { %p10440_p11 = pnand %p10438_p10, %p10786_p8  ;;  %p10447_p2 = por %p10446_p0, %p10445_p13 }
  0x39   : > { %p10441_p12 = pneg %p10440_p11 }
  0x3b   : > { %p10448_p5 = pnand %p10447_p2, %p10441_p12 }
  0x3d   : > { %10451 = shalt.err (!%p10448_p5)
}
  0x3e   : > { %s10681_s20 = smov 256   ;;  %s10682_s21 = smov 16  }
  0x3f   : > { %9902 = dma.hbm_to_vmem [thread:$0]  (!%p10772_p6), %s12014_s3, 32768, %s10768_s10, [#allocation10], %s10681_s20, %s10681_s20, %s10682_s21  }
  0x40   : > { %s10452_s12 = scalar_lea.hbm %s12016_s5, 4096 }
  0x41   : > { %p10453_p7 = scmp.ne.s32.totalorder %s12016_s5, %s10452_s12  ;;  %p10459_p1 = scmp.lt.u32.totalorder %s10452_s12, %s12016_s5 }
  0x43   : > { %p10455_p9 = pnand %p10453_p7, %p10786_p8 }
  0x45   : > { %p10456_p3 = pneg %p10455_p9 }
  0x47   : > { %p10461_p4 = pnand %p10459_p1, %p10456_p3 }
  0x49   : > { %10464 = shalt.err (!%p10461_p4)
}
  0x4a   : > { %s10465_s10 = scalar_lea.vmem %s10776_s13, 4096  ;;  %p10473_p13 = scmp.lt.s32.totalorder %s10776_s13, %s10776_s13 }
  0x4b   : > { %p10466_p10 = scmp.ne.s32.totalorder %s10776_s13, %s10465_s10  ;;  %p10474_p0 = scmp.lt.s32.totalorder %s10465_s10, %s10465_s10 }
  0x4d   : > { %p10468_p11 = pnand %p10466_p10, %p10786_p8  ;;  %p10475_p2 = por %p10474_p0, %p10473_p13 }
  0x4f   : > { %p10469_p12 = pneg %p10468_p11 }
  0x51   : > { %p10476_p5 = pnand %p10475_p2, %p10469_p12 }
  0x53   : > { %10479 = shalt.err (!%p10476_p5)
}
  0x54   : > { %s10683_s18 = smov 64   ;;  %s10684_s29 = smov 4  }
  0x55   : > { %9908 = dma.hbm_to_vmem [thread:$0]  (!%p10772_p6), %s12016_s5, 4096, %s10776_s13, [#allocation13], %s10683_s18, %s10683_s18, %s10684_s29  }
  0x56   : > { %s10685_s22 = smov [#allocation11]   ;;  %s10686_s28 = smov [#allocation14]  }
  0x57   : > { %s246_s23 = sshll.u32 %s10685_s22, 4  ;;  %s270_s9 = sshll.u32 %s10686_s28, 4  ;;  %s247_s23 = int_to_ptr.vmem [resolvable:$true] %s246_s23  ;;  %s271_s9 = int_to_ptr.vmem [resolvable:$true] %s270_s9 }
  0x58   : > { %s10480_s15 = scalar_lea.hbm %s12015_s4, 64 }
  0x59   : > { %p10481_p7 = scmp.ne.s32.totalorder %s12015_s4, %s10480_s15  ;;  %p10487_p1 = scmp.lt.u32.totalorder %s10480_s15, %s12015_s4 }
  0x5b   : > { %p10483_p9 = pnand %p10481_p7, %p10786_p8 }
  0x5d   : > { %p10484_p3 = pneg %p10483_p9 }
  0x5f   : > { %p10489_p4 = pnand %p10487_p1, %p10484_p3 }
  0x61   : > { %10492 = shalt.err (!%p10489_p4)
}
  0x62   : > { %s10493_s13 = scalar_lea.vmem %s247_s23, 64  ;;  %p10501_p13 = scmp.lt.s32.totalorder %s247_s23, %s247_s23 }
  0x63   : > { %p10494_p10 = scmp.ne.s32.totalorder %s247_s23, %s10493_s13  ;;  %p10502_p0 = scmp.lt.s32.totalorder %s10493_s13, %s10493_s13 }
  0x65   : > { %p10496_p11 = pnand %p10494_p10, %p10786_p8  ;;  %p10503_p2 = por %p10502_p0, %p10501_p13 }
  0x67   : > { %p10497_p12 = pneg %p10496_p11 }
  0x69   : > { %p10504_p5 = pnand %p10503_p2, %p10497_p12 }
  0x6b   : > { %10507 = shalt.err (!%p10504_p5)
}
  0x6c   : > { %9905 = dma.hbm_to_vmem [thread:$0]  (!%p10772_p6), %s12015_s4, 64, %s247_s23, [#allocation10]  }
  0x6d   : > { %s10508_s21 = scalar_lea.hbm %s12017_s6, 16 }
  0x6e   : > { %p10509_p7 = scmp.ne.s32.totalorder %s12017_s6, %s10508_s21  ;;  %p10515_p1 = scmp.lt.u32.totalorder %s10508_s21, %s12017_s6 }
  0x70   : > { %p10511_p9 = pnand %p10509_p7, %p10786_p8 }
  0x72   : > { %p10512_p3 = pneg %p10511_p9 }
  0x74   : > { %p10517_p4 = pnand %p10515_p1, %p10512_p3 }
  0x76   : > { %10520 = shalt.err (!%p10517_p4)
}
  0x77   : > { %s10521_s15 = scalar_lea.vmem %s271_s9, 16  ;;  %s10528_s23 = scalar_lea.vmem %s271_s9, 32 }
  0x78   : > { %p10522_p10 = scmp.ne.s32.totalorder %s271_s9, %s10521_s15  ;;  %p10529_p13 = scmp.lt.s32.totalorder %s271_s9, %s271_s9 }
  0x79   : > { %p10530_p0 = scmp.lt.s32.totalorder %s10528_s23, %s10521_s15 }
  0x7a   : > { %p10524_p11 = pnand %p10522_p10, %p10786_p8 }
  0x7b   : > { %p10531_p2 = por %p10530_p0, %p10529_p13 }
  0x7c   : > { %p10525_p12 = pneg %p10524_p11 }
  0x7e   : > { %p10532_p5 = pnand %p10531_p2, %p10525_p12 }
  0x80   : > { %10535 = shalt.err (!%p10532_p5)
}
  0x81   : > { %9911 = dma.hbm_to_vmem [thread:$0]  (!%p10772_p6), %s12017_s6, 16, %s271_s9, [#allocation13]  }
  0x82   : > { %s10885_s19 = sadd.s32 1, %s10676_s27   ;;  %s33_s10 = sadd.s32 1, %s10672_s26 }
  0x83   : > { %s30_s11 = ssub.s32 %s10676_s27, %s10885_s19  ;;  %p40_p7 = scmp.ne.s32.totalorder %s10672_s26, %s10668_s25 }
  0x84   : > { %p31_p8 = scmp.eq.s32.totalorder %s30_s11, 0  ;;  %p41_p9 = scmp.eq.s32.totalorder %s10676_s27, 0 }
  0x85   : > { %p46_p3 = scmp.ne.s32.totalorder %s10668_s25, %s10664_s24  ;;  %p12026_p4 = scmp.eq.s32.totalorder %s10756_s30, 0 }
  0x86   : > { %s10896_s13 = scalar_select %p31_p8, %s10672_s26, %s33_s10  }
  0x87   : > { %p42_p1 = por %p41_p9, %p40_p7  ;;  %p10900_p10 = por %p12026_p4, %p46_p3 }
  0x88   : > { %p9924_p11 = scmp.lt.s32.totalorder %s10676_s27, 2  ;;  %s10906_s29 = sand.u32 1, %s10672_s26  }
  0x89   : > { %s9864_s9 = smul.u32 12, %s10906_s29  ;;  %s282_s15 = scalar_lea.sflag [#allocation4], %s10906_s29 }
  0x8a   : > { %s9708_s2 = smul.u32 192, %s10676_s27  ;;  %p10910_p6 = pnand %p9924_p11, %p42_p1 }
  0x8b   : > { %s9865_s24 = smul.u32 6144, %s10906_s29  ;;  %s285_s12 = scalar_lea.vmem [#allocation3], %s9864_s9 }
  0x8c   : > { %s10918_s28 = scalar_lea.hbm %s12011_s0, %s9708_s2  ;;  %s293_s14 = sshll.u32 %s285_s12, 4  ;;  %s10920_s14 = int_to_ptr.vmem [resolvable:$true] %s293_s14 }
  0x8d   : > { %s10536_s23 = scalar_lea.hbm %s10918_s28, 192  ;;  %p10538_p13 = pneg %p10910_p6 }
  0x8e   : > { %p10537_p12 = scmp.ne.s32.totalorder %s10918_s28, %s10536_s23  ;;  %s10541_s11 = scalar_lea.hbm %s12011_s0, 384 }
  0x8f   : > { %p10542_p5 = scmp.lt.u32.totalorder %s10918_s28, %s12011_s0  ;;  %p10543_p8 = scmp.lt.u32.totalorder %s10541_s11, %s10536_s23 }
  0x90   : > { %p10539_p0 = pnand %p10538_p13, %p10537_p12  ;;  %p10545_p9 = scmp.lt.u32.totalorder %s10536_s23, %s10918_s28 }
  0x91   : > { %p10544_p7 = por %p10543_p8, %p10542_p5 }
  0x92   : > { %p10540_p2 = pneg %p10539_p0 }
  0x93   : > { %p10546_p3 = por %p10545_p9, %p10544_p7 }
  0x95   : > { %p10547_p1 = pnand %p10546_p3, %p10540_p2 }
  0x97   : > { %10550 = shalt.err (!%p10547_p1)
}
  0x98   : > { %s10551_s9 = scalar_lea.vmem %s10920_s14, 192  ;;  %s10687_s21 = smov [#allocation3]  }
  0x99   : > { %p10552_p4 = scmp.ne.s32.totalorder %s10920_s14, %s10551_s9  ;;  %s10556_s22 = sshll.u32 %s10687_s21, 4  ;;  %s10557_s22 = int_to_ptr.vmem [resolvable:$false] %s10556_s22 }
  0x9a   : > { %s10558_s12 = scalar_lea.vmem %s10557_s22, 384  ;;  %p10559_p0 = scmp.lt.s32.totalorder %s10920_s14, %s10557_s22 }
  0x9b   : > { %p10554_p11 = pnand %p10552_p4, %p10538_p13  ;;  %p10560_p5 = scmp.lt.s32.totalorder %s10558_s12, %s10551_s9 }
  0x9d   : > { %p10555_p12 = pneg %p10554_p11  ;;  %p10561_p8 = por %p10560_p5, %p10559_p0 }
  0x9f   : > { %p10562_p7 = pnand %p10561_p8, %p10555_p12 }
  0xa1   : > { %10565 = shalt.err (!%p10562_p7)
}
  0xa2   : > { %9915 = dma.hbm_to_vmem [thread:$0]  (!%p10910_p6), %s10918_s28, 192, %s10920_s14, %s282_s15  }
  0xa3   : > { %s300_s23 = sand.u32 1, %s10676_s27   ;;  %s304_s16 = scalar_lea.vmem [#allocation6], %s9865_s24 }
  0xa4   : > { %s312_s17 = sshll.u32 %s304_s16, 4  ;;  %s9711_s11 = smul.u32 98304, %s10676_s27  ;;  %s10951_s17 = int_to_ptr.vmem [resolvable:$true] %s312_s17 }
  0xa5   : > { %s10959_s21 = scalar_lea.sflag [#allocation7], %s300_s23  ;;  %s10571_s27 = scalar_lea.hbm %s12012_s1, 196608 }
  0xa6   : > { %s10957_s9 = scalar_lea.hbm %s12012_s1, %s9711_s11 }
  0xa7   : > { %s10566_s22 = scalar_lea.hbm %s10957_s9, 98304  ;;  %p10572_p1 = scmp.lt.u32.totalorder %s10957_s9, %s12012_s1 }
  0xa8   : > { %p10567_p2 = scmp.ne.s32.totalorder %s10957_s9, %s10566_s22  ;;  %p10573_p4 = scmp.lt.u32.totalorder %s10571_s27, %s10566_s22 }
  0xa9   : > { %p10575_p12 = scmp.lt.u32.totalorder %s10566_s22, %s10957_s9 }
  0xaa   : > { %p10569_p9 = pnand %p10567_p2, %p10538_p13  ;;  %p10574_p11 = por %p10573_p4, %p10572_p1 }
  0xac   : > { %p10570_p3 = pneg %p10569_p9  ;;  %p10576_p0 = por %p10575_p12, %p10574_p11 }
  0xae   : > { %p10577_p5 = pnand %p10576_p0, %p10570_p3 }
  0xb0   : > { %10580 = shalt.err (!%p10577_p5)
}
  0xb1   : > { %s10581_s15 = scalar_lea.vmem %s10951_s17, 98304  ;;  %s10688_s12 = smov [#allocation6]  }
  0xb2   : > { %p10582_p8 = scmp.ne.s32.totalorder %s10951_s17, %s10581_s15  ;;  %s10586_s23 = sshll.u32 %s10688_s12, 4  ;;  %s10587_s23 = int_to_ptr.vmem [resolvable:$false] %s10586_s23 }
  0xb3   : > { %s10588_s16 = scalar_lea.vmem %s10587_s23, 196608  ;;  %p10589_p9 = scmp.lt.s32.totalorder %s10951_s17, %s10587_s23 }
  0xb4   : > { %p10584_p7 = pnand %p10582_p8, %p10538_p13  ;;  %p10590_p1 = scmp.lt.s32.totalorder %s10588_s16, %s10581_s15 }
  0xb6   : > { %p10585_p2 = pneg %p10584_p7  ;;  %p10591_p4 = por %p10590_p1, %p10589_p9 }
  0xb8   : > { %p10592_p11 = pnand %p10591_p4, %p10585_p2 }
  0xba   : > { %10595 = shalt.err (!%p10592_p11)
}
  0xbb   : > { %s10689_s11 = smov 512   ;;  %s10690_s10 = smov 32  }
  0xbc   : > { %9918 = dma.hbm_to_vmem [thread:$0]  (!%p10910_p6), %s10957_s9, 98304, %s10951_s17, %s10959_s21, %s10689_s11, %s10689_s11, %s10690_s10  }
  0xbd   : > { %p12029_p13 = scmp.ne.s32.totalorder %s12022_s8, 0 }
  0xbe   : > { %s326_s2 = sand.u32 (!%p12029_p13), 1, %s10668_s25  }
  0xbf   : > { %324 = sbr.rel (%p12029_p13) target bundleno = 1888 (0x760), region = 48  ;;  %s327_s29 = scalar_lea.sflag (!%p12029_p13), [#allocation4], %s326_s2 }
  0xc0   : > { %s9866_s22 = smul.u32 (!%p12029_p13), 12, %s326_s2 }
  0xc2   : > { %s10988_s24 = scalar_lea.vmem (!%p12029_p13), [#allocation3], %s9866_s22 }
  0xc6   : > { %10639 = dma.done.wait (%p10900_p10), %s327_s29, 192  }
  0xc7   : > { %10641 = vsyncadd (%p10900_p10), %s327_s29, 4294967104  ;;  %s335_s27 = sand.u32 1, %s10756_s30   ;;  %s9867_s20 = smul.u32 6144, %s326_s2 }
  0xc8   : > { %s336_s17 = scalar_lea.sflag [#allocation7], %s335_s27 }
  0xc9   : > { %s10995_s9 = scalar_lea.vmem [#allocation6], %s9867_s20 }
  0xca   : > { %10643 = dma.done.wait (%p10900_p10), %s336_s17, 98304  }
  0xcb   : > { %10645 = vsyncadd (%p10900_p10), %s336_s17, 4294868992  ;;  %p12030_p6 = scmp.eq.s32.totalorder %s10756_s30, 0 }
  0xcd   : > { %10647 = dma.done.wait (%p12030_p6), [#allocation7], 128   ;;  %p12031_p3 = pmov %p12030_p6 }
  0xcf   : > { %10649 = vsyncadd (%p12031_p3), [#allocation7], 4294967168  ;;  %p12032_p12 = pmov %p12031_p3 }
  0xd0   : > { %p12033_p0 = pmov %p12031_p3 }
  0xd1   : > { %10651 = dma.done.wait (%p12032_p12), [#allocation10], 32832  }
  0xd2   : > { %10653 = vsyncadd (%p12033_p0), [#allocation10], 4294934464  ;;  %p12034_p5 = pmov %p12033_p0 }
  0xd3   : > { %p12035_p8 = pmov %p12033_p0 }
  0xd4   : > { %10655 = dma.done.wait (%p12034_p5), [#allocation13], 4112  }
  0xd5   : > { %10657 = vsyncadd (%p12035_p8), [#allocation13], 4294963184  ;;  %p12036_p10 = scmp.ne.s32.totalorder %s10756_s30, 0 }
  0xd6   : > { %v10691_v0 = vmov (!%p12036_p10), 0.0  }
  0xd7   : > { %396 = sbr.rel (%p12036_p10) target bundleno = 222 (0xde), region = 80  ;;  %397 = vst [vmem:[#allocation2] sm:$0xff] (!%p12036_p10), %v10691_v0  ;;  %398 = vst [vmem:[#allocation2 + $0x8] sm:$0xff] (!%p12036_p10), %v10691_v0 }
  0xde PF: > { %v403_v1 = vld [vmem:[%s10995_s9] sm:$0xff]  ;;  %v404_v3 = vld [vmem:[%s10995_s9 + $0x8] sm:$0xff]  ;;  %v10692_v33 = vmov 1966171168   ;;  %v1177_v35 = vlaneseq  ;;  %p9414_p7 = scmp.ne.s32.totalorder %s10756_s30, 1 }
  0xdf   : > { %v407_v2 = vld [vmem:[%s10995_s9 + $0x20] sm:$0xff]  ;;  %v408_v5 = vld [vmem:[%s10995_s9 + $0x28] sm:$0xff]  ;;  %v1175_v34 = vunpack.c.l.s4 %v10692_v33 }
  0xe0   : > { %v8647_v4 = vcombine.high %v403_v1, %v407_v2  ;;  %v8646_v6 = vcombine.low %v403_v1, %v407_v2  ;;  %v411_v7 = vld [vmem:[%s10995_s9 + $0x40] sm:$0xff]  ;;  %v8649_v9 = vcombine.high %v404_v3, %v408_v5  ;;  %v8648_v10 = vcombine.low %v404_v3, %v408_v5  ;;  %v412_v12 = vld [vmem:[%s10995_s9 + $0x48] sm:$0xff] }
  0xe1   : > { %v415_v8 = vld [vmem:[%s10995_s9 + $0x60] sm:$0xff]  ;;  %v416_v13 = vld [vmem:[%s10995_s9 + $0x68] sm:$0xff]  ;;  %v1176_v44 = vunpack.c.0.s8 %v1175_v34  ;;  %v11037_v45 = vshrl.u32 %v1177_v35, 7 }
  0xe2   : > { %v8655_v11 = vcombine.high %v411_v7, %v415_v8  ;;  %v419_v14 = vld [vmem:[%s10995_s9 + $0x80] sm:$0xff]  ;;  %5098 = vmatprep.subr.bf16.mxu0 %v8647_v4  ;;  %v8657_v15 = vcombine.high %v412_v12, %v416_v13  ;;  %v420_v17 = vld [vmem:[%s10995_s9 + $0x88] sm:$0xff]  ;;  %5344 = vmatprep.subr.bf16.mxu1 %v8649_v9  ;;  %v8654_v19 = vcombine.low %v411_v7, %v415_v8 }
  0xe3   : > { %v423_v16 = vld [vmem:[%s10995_s9 + $0xa0] sm:$0xff]  ;;  %v424_v18 = vld [vmem:[%s10995_s9 + $0xa8] sm:$0xff]  ;;  %5099 = vmatpush1.bf16.msra.mxu0 %v8646_v6  ;;  %5345 = vmatpush1.bf16.msra.mxu1 %v8648_v10  ;;  %v8656_v20 = vcombine.low %v412_v12, %v416_v13  ;;  %v11044_v54 = vsub.s32 %v1176_v44, %v11037_v45 }
  0xe4   : > { %5100 = vmatprep.subr.bf16.mxu0 %v8655_v11  ;;  %v8663_v21 = vcombine.high %v419_v14, %v423_v16  ;;  %5346 = vmatprep.subr.bf16.mxu1 %v8657_v15  ;;  %v8665_v22 = vcombine.high %v420_v17, %v424_v18  ;;  %v427_v23 = vld [vmem:[%s10995_s9 + $0xc0] sm:$0xff]  ;;  %v428_v25 = vld [vmem:[%s10995_s9 + $0xc8] sm:$0xff]  ;;  %v8662_v27 = vcombine.low %v419_v14, %v423_v16 }
  0xe5   : > { %v431_v24 = vld [vmem:[%s10995_s9 + $0xe0] sm:$0xff]  ;;  %v432_v26 = vld [vmem:[%s10995_s9 + $0xe8] sm:$0xff]  ;;  %v8664_v28 = vcombine.low %v420_v17, %v424_v18 }
  0xe6   : > { %v8671_v29 = vcombine.high %v427_v23, %v431_v24  ;;  %v8673_v30 = vcombine.high %v428_v25, %v432_v26  ;;  %v435_v31 = vld [vmem:[%s10995_s9 + $0x100] sm:$0xff]  ;;  %v436_v36 = vld [vmem:[%s10995_s9 + $0x108] sm:$0xff]  ;;  %v8670_v38 = vcombine.low %v427_v23, %v431_v24  ;;  %v8672_v39 = vcombine.low %v428_v25, %v432_v26 }
  0xe7   : > { %5101 = vmatpush1.bf16.msra.mxu0 %v8654_v19  ;;  %5347 = vmatpush1.bf16.msra.mxu1 %v8656_v20  ;;  %v439_v32 = vld [vmem:[%s10995_s9 + $0x120] sm:$0xff]  ;;  %v440_v37 = vld [vmem:[%s10995_s9 + $0x128] sm:$0xff] }
  0xe8   : > { %5102 = vmatprep.subr.bf16.mxu0 %v8663_v21  ;;  %5348 = vmatprep.subr.bf16.mxu1 %v8665_v22  ;;  %v8679_v40 = vcombine.high %v435_v31, %v439_v32  ;;  %v8681_v41 = vcombine.high %v436_v36, %v440_v37  ;;  %v443_v42 = vld [vmem:[%s10995_s9 + $0x140] sm:$0xff]  ;;  %v444_v46 = vld [vmem:[%s10995_s9 + $0x148] sm:$0xff]  ;;  %v8678_v48 = vcombine.low %v435_v31, %v439_v32 }
  0xe9   : > { %v447_v43 = vld [vmem:[%s10995_s9 + $0x160] sm:$0xff]  ;;  %v448_v47 = vld [vmem:[%s10995_s9 + $0x168] sm:$0xff]  ;;  %v8680_v49 = vcombine.low %v436_v36, %v440_v37 }
  0xea   : > { %v8687_v50 = vcombine.high %v443_v42, %v447_v43  ;;  %v8689_v51 = vcombine.high %v444_v46, %v448_v47  ;;  %v451_v52 = vld [vmem:[%s10995_s9 + $0x180] sm:$0xff]  ;;  %v452_v55 = vld [vmem:[%s10995_s9 + $0x188] sm:$0xff]  ;;  %v8686_v57 = vcombine.low %v443_v42, %v447_v43  ;;  %v8688_v58 = vcombine.low %v444_v46, %v448_v47 }
  0xeb   : > { %5103 = vmatpush1.bf16.msra.mxu0 %v8662_v27  ;;  %5349 = vmatpush1.bf16.msra.mxu1 %v8664_v28  ;;  %v455_v53 = vld [vmem:[%s10995_s9 + $0x1a0] sm:$0xff]  ;;  %v456_v56 = vld [vmem:[%s10995_s9 + $0x1a8] sm:$0xff] }
  0xec   : > { %5104 = vmatprep.subr.bf16.mxu0 %v8671_v29  ;;  %5350 = vmatprep.subr.bf16.mxu1 %v8673_v30  ;;  %v8695_v59 = vcombine.high %v451_v52, %v455_v53  ;;  %v11049_v60 = vld [vmem:[%s10988_s24] sm:$0xff]  ;;  %v8697_v61 = vcombine.high %v452_v55, %v456_v56  ;;  %v459_v62 = vld [vmem:[%s10995_s9 + $0x1c0] sm:$0xff]  ;;  %v8694_v3 = vcombine.low %v451_v52, %v455_v53 }
  0xed   : > { %v463_v63 = vld [vmem:[%s10995_s9 + $0x1e0] sm:$0xff]  ;;  %v11055_v0 = vrot.slane %v11049_v60, %v11044_v54  ;;  %v460_v1 = vld [vmem:[%s10995_s9 + $0x1c8] sm:$0xff]  ;;  %v8696_v5 = vcombine.low %v452_v55, %v456_v56 }
  0xee   : > { %v464_v2 = vld [vmem:[%s10995_s9 + $0x1e8] sm:$0xff]  ;;  %v8703_v6 = vcombine.high %v459_v62, %v463_v63  ;;  %v467_v8 = vld [vmem:[%s10995_s9 + $0x200] sm:$0xff]  ;;  %v8702_v13 = vcombine.low %v459_v62, %v463_v63 }
  0xef   : > { %5105 = vmatpush1.bf16.msra.mxu0 %v8670_v38  ;;  %5351 = vmatpush1.bf16.msra.mxu1 %v8672_v39  ;;  %v1188_v4 = vcombine.high %v11055_v0, %v11055_v0  ;;  %v8705_v7 = vcombine.high %v460_v1, %v464_v2  ;;  %v471_v9 = vld [vmem:[%s10995_s9 + $0x220] sm:$0xff]  ;;  %v468_v11 = vld [vmem:[%s10995_s9 + $0x208] sm:$0xff]  ;;  %v8704_v14 = vcombine.low %v460_v1, %v464_v2 }
  0xf0   : > { %5106 = vmatprep.subr.bf16.mxu0 %v8679_v40  ;;  %5352 = vmatprep.subr.bf16.mxu1 %v8681_v41  ;;  %v472_v12 = vld [vmem:[%s10995_s9 + $0x228] sm:$0xff]  ;;  %v8711_v15 = vcombine.high %v467_v8, %v471_v9  ;;  %v475_v17 = vld [vmem:[%s10995_s9 + $0x240] sm:$0xff]  ;;  %v8710_v21 = vcombine.low %v467_v8, %v471_v9 }
  0xf1   : > { %v11064_v10 = vrot.slane %v1188_v4, %v11044_v54  ;;  %v8713_v16 = vcombine.high %v468_v11, %v472_v12  ;;  %v479_v18 = vld [vmem:[%s10995_s9 + $0x260] sm:$0xff]  ;;  %v476_v19 = vld [vmem:[%s10995_s9 + $0x248] sm:$0xff]  ;;  %v8712_v22 = vcombine.low %v468_v11, %v472_v12 }
  0xf2   : > { %v480_v20 = vld [vmem:[%s10995_s9 + $0x268] sm:$0xff]  ;;  %v8719_v23 = vcombine.high %v475_v17, %v479_v18  ;;  %v483_v25 = vld [vmem:[%s10995_s9 + $0x280] sm:$0xff]  ;;  %v8718_v29 = vcombine.low %v475_v17, %v479_v18 }
  0xf3   : > { %5107 = vmatpush1.bf16.msra.mxu0 %v8678_v48  ;;  %5353 = vmatpush1.bf16.msra.mxu1 %v8680_v49  ;;  %v8721_v24 = vcombine.high %v476_v19, %v480_v20  ;;  %v487_v26 = vld [vmem:[%s10995_s9 + $0x2a0] sm:$0xff]  ;;  %v484_v27 = vld [vmem:[%s10995_s9 + $0x288] sm:$0xff]  ;;  %v8720_v30 = vcombine.low %v476_v19, %v480_v20 }
  0xf4   : > { %5108 = vmatprep.subr.bf16.mxu0 %v8687_v50  ;;  %5354 = vmatprep.subr.bf16.mxu1 %v8689_v51  ;;  %v488_v28 = vld [vmem:[%s10995_s9 + $0x2a8] sm:$0xff]  ;;  %v8727_v31 = vcombine.high %v483_v25, %v487_v26  ;;  %v491_v33 = vld [vmem:[%s10995_s9 + $0x2c0] sm:$0xff]  ;;  %v8726_v37 = vcombine.low %v483_v25, %v487_v26 }
  0xf5   : > { %5130 = vmatprep.mubr.bf16.mxu0 %v11064_v10  ;;  %5376 = vmatprep.mubr.bf16.mxu1 %v11064_v10  ;;  %v8729_v32 = vcombine.high %v484_v27, %v488_v28  ;;  %v495_v34 = vld [vmem:[%s10995_s9 + $0x2e0] sm:$0xff]  ;;  %v492_v35 = vld [vmem:[%s10995_s9 + $0x2c8] sm:$0xff]  ;;  %v8728_v38 = vcombine.low %v484_v27, %v488_v28 }
  0xf6   : > { %v496_v36 = vld [vmem:[%s10995_s9 + $0x2e8] sm:$0xff]  ;;  %v8735_v39 = vcombine.high %v491_v33, %v495_v34  ;;  %v499_v41 = vld [vmem:[%s10995_s9 + $0x300] sm:$0xff]  ;;  %v8734_v46 = vcombine.low %v491_v33, %v495_v34  ;;  %v11114_v33 = vcombine.high %v11064_v10, %v11064_v10 }
  0xf7   : > { %5109 = vmatpush1.bf16.msra.mxu0 %v8686_v57  ;;  %5355 = vmatpush1.bf16.msra.mxu1 %v8688_v58  ;;  %v8737_v40 = vcombine.high %v492_v35, %v496_v36  ;;  %v503_v42 = vld [vmem:[%s10995_s9 + $0x320] sm:$0xff]  ;;  %v500_v43 = vld [vmem:[%s10995_s9 + $0x308] sm:$0xff]  ;;  %v8736_v47 = vcombine.low %v492_v35, %v496_v36 }
  0xf8   : > { %5110 = vmatprep.subr.bf16.mxu0 %v8695_v59  ;;  %5356 = vmatprep.subr.bf16.mxu1 %v8697_v61  ;;  %v504_v44 = vld [vmem:[%s10995_s9 + $0x328] sm:$0xff]  ;;  %v8743_v48 = vcombine.high %v499_v41, %v503_v42  ;;  %v507_v50 = vld [vmem:[%s10995_s9 + $0x340] sm:$0xff]  ;;  %v8742_v55 = vcombine.low %v499_v41, %v503_v42 }
  0xf9   : > { %v8745_v49 = vcombine.high %v500_v43, %v504_v44  ;;  %v511_v51 = vld [vmem:[%s10995_s9 + $0x360] sm:$0xff]  ;;  %v508_v52 = vld [vmem:[%s10995_s9 + $0x348] sm:$0xff]  ;;  %v8744_v56 = vcombine.low %v500_v43, %v504_v44 }
  0xfa   : > { %v512_v53 = vld [vmem:[%s10995_s9 + $0x368] sm:$0xff]  ;;  %v8751_v57 = vcombine.high %v507_v50, %v511_v51  ;;  %v515_v59 = vld [vmem:[%s10995_s9 + $0x380] sm:$0xff]  ;;  %v8750_v1 = vcombine.low %v507_v50, %v511_v51 }
  0xfb   : > { %5111 = vmatpush1.bf16.msra.mxu0 %v8694_v3  ;;  %5357 = vmatpush1.bf16.msra.mxu1 %v8696_v5  ;;  %v8753_v58 = vcombine.high %v508_v52, %v512_v53  ;;  %v519_v61 = vld [vmem:[%s10995_s9 + $0x3a0] sm:$0xff]  ;;  %v516_v62 = vld [vmem:[%s10995_s9 + $0x388] sm:$0xff]  ;;  %v8752_v2 = vcombine.low %v508_v52, %v512_v53 }
  0xfc   : > { %5112 = vmatprep.subr.bf16.mxu0 %v8703_v6  ;;  %5358 = vmatprep.subr.bf16.mxu1 %v8705_v7  ;;  %v520_v63 = vld [vmem:[%s10995_s9 + $0x3a8] sm:$0xff]  ;;  %v8759_v3 = vcombine.high %v515_v59, %v519_v61  ;;  %v523_v5 = vld [vmem:[%s10995_s9 + $0x3c0] sm:$0xff]  ;;  %v8758_v9 = vcombine.low %v515_v59, %v519_v61 }
  0xfd   : > { %v8761_v4 = vcombine.high %v516_v62, %v520_v63  ;;  %v527_v6 = vld [vmem:[%s10995_s9 + $0x3e0] sm:$0xff]  ;;  %v524_v7 = vld [vmem:[%s10995_s9 + $0x3c8] sm:$0xff]  ;;  %v8760_v11 = vcombine.low %v516_v62, %v520_v63 }
  0xfe   : > { %v528_v8 = vld [vmem:[%s10995_s9 + $0x3e8] sm:$0xff]  ;;  %v8767_v12 = vcombine.high %v523_v5, %v527_v6  ;;  %v8766_v18 = vcombine.low %v523_v5, %v527_v6 }
  0xff   : > { %5113 = vmatpush1.bf16.msra.mxu0 %v8702_v13  ;;  %5359 = vmatpush1.bf16.msra.mxu1 %v8704_v14  ;;  %v8769_v13 = vcombine.high %v524_v7, %v528_v8  ;;  %v531_v14 = vld [vmem:[%s10995_s9 + $0x400] sm:$0xff]  ;;  %v536_v17 = vld [vmem:[%s10995_s9 + $0x428] sm:$0xff]  ;;  %v8768_v19 = vcombine.low %v524_v7, %v528_v8 }
 0x100   : > { %5114 = vmatprep.subr.bf16.mxu0 %v8711_v15  ;;  %5360 = vmatprep.subr.bf16.mxu1 %v8713_v16  ;;  %v535_v15 = vld [vmem:[%s10995_s9 + $0x420] sm:$0xff]  ;;  %v532_v16 = vld [vmem:[%s10995_s9 + $0x408] sm:$0xff] }
 0x101   : > { %v8775_v20 = vcombine.high %v531_v14, %v535_v15  ;;  %v540_v25 = vld [vmem:[%s10995_s9 + $0x448] sm:$0xff]  ;;  %v8774_v27 = vcombine.low %v531_v14, %v535_v15  ;;  %v8776_v28 = vcombine.low %v532_v16, %v536_v17 }
 0x102   : > { %v544_v26 = vld [vmem:[%s10995_s9 + $0x468] sm:$0xff] }
 0x103   : > { %5115 = vmatpush1.bf16.msra.mxu0 %v8710_v21  ;;  %5361 = vmatpush1.bf16.msra.mxu1 %v8712_v22  ;;  %v8777_v21 = vcombine.high %v532_v16, %v536_v17  ;;  %v539_v22 = vld [vmem:[%s10995_s9 + $0x440] sm:$0xff]  ;;  %v552_v34 = vld [vmem:[%s10995_s9 + $0x4a8] sm:$0xff]  ;;  %v8784_v36 = vcombine.low %v540_v25, %v544_v26 }
 0x104   : > { %5116 = vmatprep.subr.bf16.mxu0 %v8719_v23  ;;  %5362 = vmatprep.subr.bf16.mxu1 %v8721_v24  ;;  %v543_v23 = vld [vmem:[%s10995_s9 + $0x460] sm:$0xff]  ;;  %v11106_v24 = vrot.slane %v11055_v0, %v11044_v54  ;;  %v548_v0 = vld [vmem:[%s10995_s9 + $0x488] sm:$0xff] }
 0x105   : > { %v8782_v35 = vcombine.low %v539_v22, %v543_v23  ;;  %v556_v41 = vld [vmem:[%s10995_s9 + $0x4c8] sm:$0xff]  ;;  %v8792_v44 = vcombine.low %v548_v0, %v552_v34 }
 0x106   : > { %v560_v42 = vld [vmem:[%s10995_s9 + $0x4e8] sm:$0xff] }
 0x107   : > { %5117 = vmatpush1.bf16.msra.mxu0 %v8718_v29  ;;  %5363 = vmatpush1.bf16.msra.mxu1 %v8720_v30  ;;  %v8783_v29 = vcombine.high %v539_v22, %v543_v23  ;;  %v8785_v30 = vcombine.high %v540_v25, %v544_v26  ;;  %v564_v50 = vld [vmem:[%s10995_s9 + $0x508] sm:$0xff]  ;;  %v8800_v53 = vcombine.low %v556_v41, %v560_v42 }
 0x108   : > { %5118 = vmatprep.subr.bf16.mxu0 %v8727_v31  ;;  %5364 = vmatprep.subr.bf16.mxu1 %v8729_v32  ;;  %v547_v31 = vld [vmem:[%s10995_s9 + $0x480] sm:$0xff]  ;;  %v568_v51 = vld [vmem:[%s10995_s9 + $0x528] sm:$0xff] }
 0x109   : > { %v551_v32 = vld [vmem:[%s10995_s9 + $0x4a0] sm:$0xff]  ;;  %v572_v59 = vld [vmem:[%s10995_s9 + $0x548] sm:$0xff]  ;;  %v8808_v63 = vcombine.low %v564_v50, %v568_v51 }
 0x10a   : > { %v8790_v43 = vcombine.low %v547_v31, %v551_v32  ;;  %v576_v61 = vld [vmem:[%s10995_s9 + $0x568] sm:$0xff] }
 0x10b   : > { %5119 = vmatpush1.bf16.msra.mxu0 %v8726_v37  ;;  %5365 = vmatpush1.bf16.msra.mxu1 %v8728_v38  ;;  %v8791_v37 = vcombine.high %v547_v31, %v551_v32  ;;  %v8793_v38 = vcombine.high %v548_v0, %v552_v34  ;;  %v580_v5 = vld [vmem:[%s10995_s9 + $0x588] sm:$0xff]  ;;  %v8816_v8 = vcombine.low %v572_v59, %v576_v61 }
 0x10c   : > { %5120 = vmatprep.subr.bf16.mxu0 %v8735_v39  ;;  %5366 = vmatprep.subr.bf16.mxu1 %v8737_v40  ;;  %v555_v39 = vld [vmem:[%s10995_s9 + $0x4c0] sm:$0xff]  ;;  %v584_v6 = vld [vmem:[%s10995_s9 + $0x5a8] sm:$0xff] }
 0x10d   : > { %v559_v40 = vld [vmem:[%s10995_s9 + $0x4e0] sm:$0xff]  ;;  %v588_v14 = vld [vmem:[%s10995_s9 + $0x5c8] sm:$0xff]  ;;  %v8824_v17 = vcombine.low %v580_v5, %v584_v6 }
 0x10e   : > { %v8798_v52 = vcombine.low %v555_v39, %v559_v40  ;;  %v592_v15 = vld [vmem:[%s10995_s9 + $0x5e8] sm:$0xff] }
 0x10f   : > { %5121 = vmatpush1.bf16.msra.mxu0 %v8734_v46  ;;  %5367 = vmatpush1.bf16.msra.mxu1 %v8736_v47  ;;  %v8799_v46 = vcombine.high %v555_v39, %v559_v40  ;;  %v8801_v47 = vcombine.high %v556_v41, %v560_v42  ;;  %v596_v22 = vld [vmem:[%s10995_s9 + $0x608] sm:$0xff]  ;;  %v8832_v26 = vcombine.low %v588_v14, %v592_v15 }
 0x110   : > { %5122 = vmatprep.subr.bf16.mxu0 %v8743_v48  ;;  %5368 = vmatprep.subr.bf16.mxu1 %v8745_v49  ;;  %v563_v48 = vld [vmem:[%s10995_s9 + $0x500] sm:$0xff]  ;;  %v600_v23 = vld [vmem:[%s10995_s9 + $0x628] sm:$0xff] }
 0x111   : > { %v567_v49 = vld [vmem:[%s10995_s9 + $0x520] sm:$0xff]  ;;  %v604_v31 = vld [vmem:[%s10995_s9 + $0x648] sm:$0xff]  ;;  %v8840_v34 = vcombine.low %v596_v22, %v600_v23 }
 0x112   : > { %v8806_v62 = vcombine.low %v563_v48, %v567_v49  ;;  %v608_v32 = vld [vmem:[%s10995_s9 + $0x668] sm:$0xff] }
 0x113   : > { %5123 = vmatpush1.bf16.msra.mxu0 %v8742_v55  ;;  %5369 = vmatpush1.bf16.msra.mxu1 %v8744_v56  ;;  %v8807_v55 = vcombine.high %v563_v48, %v567_v49  ;;  %v8809_v56 = vcombine.high %v564_v50, %v568_v51  ;;  %v612_v39 = vld [vmem:[%s10995_s9 + $0x688] sm:$0xff]  ;;  %v8848_v42 = vcombine.low %v604_v31, %v608_v32 }
 0x114   : > { %5124 = vmatprep.subr.bf16.mxu0 %v8751_v57  ;;  %5370 = vmatprep.subr.bf16.mxu1 %v8753_v58  ;;  %v571_v57 = vld [vmem:[%s10995_s9 + $0x540] sm:$0xff]  ;;  %v616_v40 = vld [vmem:[%s10995_s9 + $0x6a8] sm:$0xff] }
 0x115   : > { %v575_v58 = vld [vmem:[%s10995_s9 + $0x560] sm:$0xff]  ;;  %v620_v48 = vld [vmem:[%s10995_s9 + $0x6c8] sm:$0xff]  ;;  %v8856_v51 = vcombine.low %v612_v39, %v616_v40 }
 0x116   : > { %v8814_v7 = vcombine.low %v571_v57, %v575_v58  ;;  %v624_v49 = vld [vmem:[%s10995_s9 + $0x6e8] sm:$0xff] }
 0x117   : > { %5125 = vmatpush1.bf16.msra.mxu0 %v8750_v1  ;;  %5371 = vmatpush1.bf16.msra.mxu1 %v8752_v2  ;;  %v8815_v1 = vcombine.high %v571_v57, %v575_v58  ;;  %v8817_v2 = vcombine.high %v572_v59, %v576_v61  ;;  %v628_v57 = vld [vmem:[%s10995_s9 + $0x708] sm:$0xff]  ;;  %v8864_v61 = vcombine.low %v620_v48, %v624_v49 }
 0x118   : > { %5126 = vmatprep.subr.bf16.mxu0 %v8759_v3  ;;  %5372 = vmatprep.subr.bf16.mxu1 %v8761_v4  ;;  %v579_v3 = vld [vmem:[%s10995_s9 + $0x580] sm:$0xff]  ;;  %v632_v58 = vld [vmem:[%s10995_s9 + $0x728] sm:$0xff] }
 0x119   : > { %v583_v4 = vld [vmem:[%s10995_s9 + $0x5a0] sm:$0xff] }
 0x11a   : > { %v8822_v16 = vcombine.low %v579_v3, %v583_v4 }
 0x11b   : > { %5127 = vmatpush1.bf16.msra.mxu0 %v8758_v9  ;;  %5373 = vmatpush1.bf16.msra.mxu1 %v8760_v11  ;;  %v8823_v9 = vcombine.high %v579_v3, %v583_v4  ;;  %v8825_v11 = vcombine.high %v580_v5, %v584_v6  ;;  %v636_v3 = vld [vmem:[%s10995_s9 + $0x748] sm:$0xff]  ;;  %v8872_v6 = vcombine.low %v628_v57, %v632_v58 }
 0x11c   : > { %5128 = vmatprep.subr.bf16.mxu0 %v8767_v12  ;;  %5374 = vmatprep.subr.bf16.mxu1 %v8769_v13  ;;  %v587_v12 = vld [vmem:[%s10995_s9 + $0x5c0] sm:$0xff]  ;;  %v640_v4 = vld [vmem:[%s10995_s9 + $0x768] sm:$0xff] }
 0x11d   : > { %v591_v13 = vld [vmem:[%s10995_s9 + $0x5e0] sm:$0xff] }
 0x11e   : > { %v8830_v25 = vcombine.low %v587_v12, %v591_v13 }
 0x11f   : > { %5129 = vmatpush1.bf16.msra.mxu0 %v8766_v18  ;;  %5375 = vmatpush1.bf16.msra.mxu1 %v8768_v19  ;;  %v8831_v18 = vcombine.high %v587_v12, %v591_v13  ;;  %v8833_v19 = vcombine.high %v588_v14, %v592_v15  ;;  %v644_v12 = vld [vmem:[%s10995_s9 + $0x788] sm:$0xff]  ;;  %v8880_v15 = vcombine.low %v636_v3, %v640_v4 }
 0x120   : > { %5139 = vmatprep.subr.bf16.mxu0 %v8775_v20  ;;  %5385 = vmatprep.subr.bf16.mxu1 %v8777_v21  ;;  %v595_v20 = vld [vmem:[%s10995_s9 + $0x600] sm:$0xff]  ;;  %v648_v13 = vld [vmem:[%s10995_s9 + $0x7a8] sm:$0xff] }
 0x121   : > { %v599_v21 = vld [vmem:[%s10995_s9 + $0x620] sm:$0xff] }
 0x122   : > { %5131 = vmatmul.mubr.bf16.vlgmr.msra.gmra.mrb[0].mxu0 %v11106_v24  ;;  %5377 = vmatmul.mubr.bf16.vlgmr.msra.gmra.mrb[0].mxu1 %v11106_v24  ;;  %v8838_v0 = vcombine.low %v595_v20, %v599_v21 }
 0x123   : > { %5140 = vmatpush1.bf16.msra.mxu0 %v8774_v27  ;;  %5386 = vmatpush1.bf16.msra.mxu1 %v8776_v28  ;;  %v8839_v27 = vcombine.high %v595_v20, %v599_v21  ;;  %v8841_v28 = vcombine.high %v596_v22, %v600_v23  ;;  %v1173_v20 = vcombine.high %v11049_v60, %v11049_v60  ;;  %v652_v21 = vld [vmem:[%s10995_s9 + $0x7c8] sm:$0xff] }
 0x124   : > { %5141 = vmatprep.subr.bf16.mxu0 %v8783_v29  ;;  %5387 = vmatprep.subr.bf16.mxu1 %v8785_v30  ;;  %v603_v29 = vld [vmem:[%s10995_s9 + $0x640] sm:$0xff]  ;;  %v656_v22 = vld [vmem:[%s10995_s9 + $0x7e8] sm:$0xff] }
 0x125   : > { %5171 = vmatprep.mubr.bf16.mxu0 %v11114_v33  ;;  %5417 = vmatprep.mubr.bf16.mxu1 %v11114_v33  ;;  %v607_v30 = vld [vmem:[%s10995_s9 + $0x660] sm:$0xff]  ;;  %v660_v60 = vld [vmem:[%s10995_s9 + $0x808] sm:$0xff] }
 0x126   : > { %v8846_v41 = vcombine.low %v603_v29, %v607_v30 }
 0x127   : > { %5142 = vmatpush1.bf16.msra.mxu0 %v8782_v35  ;;  %5388 = vmatpush1.bf16.msra.mxu1 %v8784_v36  ;;  %v8847_v35 = vcombine.high %v603_v29, %v607_v30  ;;  %v8849_v36 = vcombine.high %v604_v31, %v608_v32  ;;  %v663_v29 = vld [vmem:[%s10995_s9 + $0x820] sm:$0xff]  ;;  %v11179_v30 = vrot.slane %v1173_v20, %v11044_v54  ;;  %v664_v31 = vld [vmem:[%s10995_s9 + $0x828] sm:$0xff] }
 0x128   : > { %5143 = vmatprep.subr.bf16.mxu0 %v8791_v37  ;;  %5389 = vmatprep.subr.bf16.mxu1 %v8793_v38  ;;  %v611_v37 = vld [vmem:[%s10995_s9 + $0x680] sm:$0xff] }
 0x129   : > { %v615_v38 = vld [vmem:[%s10995_s9 + $0x6a0] sm:$0xff] }
 0x12a   : > { %v8854_v50 = vcombine.low %v611_v37, %v615_v38  ;;  %v707_v20 = vld [vmem:[%s10995_s9 + $0x980] sm:$0xff] }
 0x12b   : > { %5144 = vmatpush1.bf16.msra.mxu0 %v8790_v43  ;;  %5390 = vmatpush1.bf16.msra.mxu1 %v8792_v44  ;;  %v8855_v43 = vcombine.high %v611_v37, %v615_v38  ;;  %v8857_v44 = vcombine.high %v612_v39, %v616_v40  ;;  %v671_v37 = vld [vmem:[%s10995_s9 + $0x860] sm:$0xff]  ;;  %v1189_v38 = vcombine.high %v11179_v30, %v11179_v30  ;;  %v668_v40 = vld [vmem:[%s10995_s9 + $0x848] sm:$0xff] }
 0x12c   : > { %5145 = vmatprep.subr.bf16.mxu0 %v8799_v46  ;;  %5391 = vmatprep.subr.bf16.mxu1 %v8801_v47  ;;  %v619_v46 = vld [vmem:[%s10995_s9 + $0x6c0] sm:$0xff]  ;;  %v11189_v39 = vcombine.high %v11106_v24, %v11106_v24 }
 0x12d   : > { %v623_v47 = vld [vmem:[%s10995_s9 + $0x6e0] sm:$0xff] }
 0x12e   : > { %v8862_v59 = vcombine.low %v619_v46, %v623_v47 }
 0x12f   : > { %5146 = vmatpush1.bf16.msra.mxu0 %v8798_v52  ;;  %5392 = vmatpush1.bf16.msra.mxu1 %v8800_v53  ;;  %v8863_v52 = vcombine.high %v619_v46, %v623_v47  ;;  %v8865_v53 = vcombine.high %v620_v48, %v624_v49  ;;  %v675_v47 = vld [vmem:[%s10995_s9 + $0x880] sm:$0xff]  ;;  %v11196_v49 = vrot.slane %v1189_v38, %v11044_v54 }
 0x130   : > { %5147 = vmatprep.subr.bf16.mxu0 %v8807_v55  ;;  %5393 = vmatprep.subr.bf16.mxu1 %v8809_v56  ;;  %v627_v55 = vld [vmem:[%s10995_s9 + $0x700] sm:$0xff] }
 0x131   : > { %v631_v56 = vld [vmem:[%s10995_s9 + $0x720] sm:$0xff] }
 0x132   : > { %v8870_v5 = vcombine.low %v627_v55, %v631_v56  ;;  %v679_v48 = vld [vmem:[%s10995_s9 + $0x8a0] sm:$0xff] }
 0x133   : > { %5148 = vmatpush1.bf16.msra.mxu0 %v8806_v62  ;;  %5394 = vmatpush1.bf16.msra.mxu1 %v8808_v63  ;;  %v8871_v62 = vcombine.high %v627_v55, %v631_v56  ;;  %v8873_v63 = vcombine.high %v628_v57, %v632_v58  ;;  %v8919_v55 = vcombine.high %v675_v47, %v679_v48  ;;  %v683_v57 = vld [vmem:[%s10995_s9 + $0x8c0] sm:$0xff] }
 0x134   : > { %5149 = vmatprep.subr.bf16.mxu0 %v8815_v1  ;;  %5395 = vmatprep.subr.bf16.mxu1 %v8817_v2  ;;  %v635_v1 = vld [vmem:[%s10995_s9 + $0x740] sm:$0xff] }
 0x135   : > { %v639_v2 = vld [vmem:[%s10995_s9 + $0x760] sm:$0xff] }
 0x136   : > { %v8878_v14 = vcombine.low %v635_v1, %v639_v2  ;;  %v687_v58 = vld [vmem:[%s10995_s9 + $0x8e0] sm:$0xff] }
 0x137   : > { %5150 = vmatpush1.bf16.msra.mxu0 %v8814_v7  ;;  %5396 = vmatpush1.bf16.msra.mxu1 %v8816_v8  ;;  %v8879_v7 = vcombine.high %v635_v1, %v639_v2  ;;  %v8881_v8 = vcombine.high %v636_v3, %v640_v4  ;;  %v8927_v1 = vcombine.high %v683_v57, %v687_v58  ;;  %v691_v3 = vld [vmem:[%s10995_s9 + $0x900] sm:$0xff] }
 0x138   : > { %5151 = vmatprep.subr.bf16.mxu0 %v8823_v9  ;;  %5397 = vmatprep.subr.bf16.mxu1 %v8825_v11  ;;  %v643_v9 = vld [vmem:[%s10995_s9 + $0x780] sm:$0xff] }
 0x139   : > { %v647_v11 = vld [vmem:[%s10995_s9 + $0x7a0] sm:$0xff] }
 0x13a   : > { %v8886_v23 = vcombine.low %v643_v9, %v647_v11  ;;  %v695_v4 = vld [vmem:[%s10995_s9 + $0x920] sm:$0xff] }
 0x13b   : > { %5152 = vmatpush1.bf16.msra.mxu0 %v8822_v16  ;;  %5398 = vmatpush1.bf16.msra.mxu1 %v8824_v17  ;;  %v8887_v16 = vcombine.high %v643_v9, %v647_v11  ;;  %v8889_v17 = vcombine.high %v644_v12, %v648_v13  ;;  %v8935_v9 = vcombine.high %v691_v3, %v695_v4  ;;  %v727_v38 = vld [vmem:[%s10995_s9 + $0xa20] sm:$0xff] }
 0x13c   : > { %5153 = vmatprep.subr.bf16.mxu0 %v8831_v18  ;;  %5399 = vmatprep.subr.bf16.mxu1 %v8833_v19  ;;  %v651_v18 = vld [vmem:[%s10995_s9 + $0x7c0] sm:$0xff] }
 0x13d   : > { %v655_v19 = vld [vmem:[%s10995_s9 + $0x7e0] sm:$0xff] }
 0x13e   : > { %v8894_v32 = vcombine.low %v651_v18, %v655_v19 }
 0x13f   : > { %5154 = vmatpush1.bf16.msra.mxu0 %v8830_v25  ;;  %5400 = vmatpush1.bf16.msra.mxu1 %v8832_v26  ;;  %v8888_v25 = vcombine.low %v644_v12, %v648_v13  ;;  %v8895_v26 = vcombine.high %v651_v18, %v655_v19  ;;  %v699_v12 = vld [vmem:[%s10995_s9 + $0x940] sm:$0xff] }
 0x140   : > { %5155 = vmatprep.subr.bf16.mxu0 %v8839_v27  ;;  %5401 = vmatprep.subr.bf16.mxu1 %v8841_v28  ;;  %v8897_v27 = vcombine.high %v652_v21, %v656_v22  ;;  %v659_v28 = vld [vmem:[%s10995_s9 + $0x800] sm:$0xff] }
 0x141   : > { %v703_v13 = vld [vmem:[%s10995_s9 + $0x960] sm:$0xff] }
 0x142   : > { %v8943_v18 = vcombine.high %v699_v12, %v703_v13 }
 0x143   : > { %5156 = vmatpush1.bf16.msra.mxu0 %v8838_v0  ;;  %5402 = vmatpush1.bf16.msra.mxu1 %v8840_v34  ;;  %v8896_v0 = vcombine.low %v652_v21, %v656_v22  ;;  %v8903_v34 = vcombine.high %v659_v28, %v663_v29  ;;  %v711_v21 = vld [vmem:[%s10995_s9 + $0x9a0] sm:$0xff]  ;;  %v708_v22 = vld [vmem:[%s10995_s9 + $0x988] sm:$0xff] }
 0x144   : > { %5157 = vmatprep.subr.bf16.mxu0 %v8847_v35  ;;  %5403 = vmatprep.subr.bf16.mxu1 %v8849_v36  ;;  %v8905_v35 = vcombine.high %v660_v60, %v664_v31  ;;  %v667_v36 = vld [vmem:[%s10995_s9 + $0x840] sm:$0xff] }
 0x147   : > { %5158 = vmatpush1.bf16.msra.mxu0 %v8846_v41  ;;  %5404 = vmatpush1.bf16.msra.mxu1 %v8848_v42  ;;  %v672_v41 = vld [vmem:[%s10995_s9 + $0x868] sm:$0xff]  ;;  %v8902_v42 = vcombine.low %v659_v28, %v663_v29  ;;  %v715_v29 = vld [vmem:[%s10995_s9 + $0x9c0] sm:$0xff] }
 0x148   : > { %5159 = vmatprep.subr.bf16.mxu0 %v8855_v43  ;;  %5405 = vmatprep.subr.bf16.mxu1 %v8857_v44  ;;  %v8904_v43 = vcombine.low %v660_v60, %v664_v31  ;;  %v8911_v44 = vcombine.high %v667_v36, %v671_v37  ;;  %v8913_v46 = vcombine.high %v668_v40, %v672_v41  ;;  %v719_v60 = vld [vmem:[%s10995_s9 + $0x9e0] sm:$0xff]  ;;  %v716_v31 = vld [vmem:[%s10995_s9 + $0x9c8] sm:$0xff] }
 0x14b   : > { %5160 = vmatpush1.bf16.msra.mxu0 %v8854_v50  ;;  %5406 = vmatpush1.bf16.msra.mxu1 %v8856_v51  ;;  %v676_v50 = vld [vmem:[%s10995_s9 + $0x888] sm:$0xff] }
 0x14c   : > { %5161 = vmatprep.subr.bf16.mxu0 %v8863_v52  ;;  %5407 = vmatprep.subr.bf16.mxu1 %v8865_v53  ;;  %v680_v51 = vld [vmem:[%s10995_s9 + $0x8a8] sm:$0xff]  ;;  %v8910_v52 = vcombine.low %v667_v36, %v671_v37  ;;  %v8912_v53 = vcombine.low %v668_v40, %v672_v41  ;;  %v723_v37 = vld [vmem:[%s10995_s9 + $0xa00] sm:$0xff] }
 0x14d   : > { %v8921_v56 = vcombine.high %v676_v50, %v680_v51  ;;  %v724_v40 = vld [vmem:[%s10995_s9 + $0xa08] sm:$0xff] }
 0x14e   : > { %v728_v41 = vld [vmem:[%s10995_s9 + $0xa28] sm:$0xff] }
 0x14f   : > { %5162 = vmatpush1.bf16.msra.mxu0 %v8862_v59  ;;  %5408 = vmatpush1.bf16.msra.mxu1 %v8864_v61  ;;  %v684_v59 = vld [vmem:[%s10995_s9 + $0x8c8] sm:$0xff] }
 0x150   : > { %5163 = vmatprep.subr.bf16.mxu0 %v8871_v62  ;;  %5409 = vmatprep.subr.bf16.mxu1 %v8873_v63  ;;  %v688_v61 = vld [vmem:[%s10995_s9 + $0x8e8] sm:$0xff]  ;;  %v8918_v62 = vcombine.low %v675_v47, %v679_v48  ;;  %v8920_v63 = vcombine.low %v676_v50, %v680_v51  ;;  %v731_v47 = vld [vmem:[%s10995_s9 + $0xa40] sm:$0xff] }
 0x151   : > { %v8929_v2 = vcombine.high %v684_v59, %v688_v61  ;;  %v735_v48 = vld [vmem:[%s10995_s9 + $0xa60] sm:$0xff]  ;;  %v732_v50 = vld [vmem:[%s10995_s9 + $0xa48] sm:$0xff] }
 0x152   : > { %v736_v51 = vld [vmem:[%s10995_s9 + $0xa68] sm:$0xff] }
 0x153   : > { %5164 = vmatpush1.bf16.msra.mxu0 %v8870_v5  ;;  %5410 = vmatpush1.bf16.msra.mxu1 %v8872_v6  ;;  %v692_v5 = vld [vmem:[%s10995_s9 + $0x908] sm:$0xff] }
 0x154   : > { %5165 = vmatprep.subr.bf16.mxu0 %v8879_v7  ;;  %5411 = vmatprep.subr.bf16.mxu1 %v8881_v8  ;;  %v696_v6 = vld [vmem:[%s10995_s9 + $0x928] sm:$0xff]  ;;  %v8926_v7 = vcombine.low %v683_v57, %v687_v58  ;;  %v8928_v8 = vcombine.low %v684_v59, %v688_v61  ;;  %v739_v57 = vld [vmem:[%s10995_s9 + $0xa80] sm:$0xff] }
 0x155   : > { %v8937_v11 = vcombine.high %v692_v5, %v696_v6  ;;  %v743_v58 = vld [vmem:[%s10995_s9 + $0xaa0] sm:$0xff]  ;;  %v740_v59 = vld [vmem:[%s10995_s9 + $0xa88] sm:$0xff] }
 0x156   : > { %v744_v61 = vld [vmem:[%s10995_s9 + $0xaa8] sm:$0xff] }
 0x157   : > { %5166 = vmatpush1.bf16.msra.mxu0 %v8878_v14  ;;  %5412 = vmatpush1.bf16.msra.mxu1 %v8880_v15  ;;  %v700_v14 = vld [vmem:[%s10995_s9 + $0x948] sm:$0xff] }
 0x158   : > { %5167 = vmatprep.subr.bf16.mxu0 %v8887_v16  ;;  %5413 = vmatprep.subr.bf16.mxu1 %v8889_v17  ;;  %v704_v15 = vld [vmem:[%s10995_s9 + $0x968] sm:$0xff]  ;;  %v8934_v16 = vcombine.low %v691_v3, %v695_v4  ;;  %v8936_v17 = vcombine.low %v692_v5, %v696_v6  ;;  %v747_v3 = vld [vmem:[%s10995_s9 + $0xac0] sm:$0xff] }
 0x159   : > { %v8945_v19 = vcombine.high %v700_v14, %v704_v15  ;;  %v751_v4 = vld [vmem:[%s10995_s9 + $0xae0] sm:$0xff]  ;;  %v748_v5 = vld [vmem:[%s10995_s9 + $0xac8] sm:$0xff] }
 0x15a   : > { %v752_v6 = vld [vmem:[%s10995_s9 + $0xae8] sm:$0xff] }
 0x15b   : > { %5168 = vmatpush1.bf16.msra.mxu0 %v8886_v23  ;;  %5414 = vmatpush1.bf16.msra.mxu1 %v8888_v25  ;;  %v712_v23 = vld [vmem:[%s10995_s9 + $0x9a8] sm:$0xff]  ;;  %v8942_v25 = vcombine.low %v699_v12, %v703_v13  ;;  %v755_v12 = vld [vmem:[%s10995_s9 + $0xb00] sm:$0xff] }
 0x15c   : > { %5169 = vmatprep.subr.bf16.mxu0 %v8895_v26  ;;  %5415 = vmatprep.subr.bf16.mxu1 %v8897_v27  ;;  %v8944_v26 = vcombine.low %v700_v14, %v704_v15  ;;  %v8951_v27 = vcombine.high %v707_v20, %v711_v21  ;;  %v8953_v28 = vcombine.high %v708_v22, %v712_v23  ;;  %v759_v13 = vld [vmem:[%s10995_s9 + $0xb20] sm:$0xff]  ;;  %v756_v14 = vld [vmem:[%s10995_s9 + $0xb08] sm:$0xff] }
 0x15d   : > { %v760_v15 = vld [vmem:[%s10995_s9 + $0xb28] sm:$0xff] }
 0x15f   : > { %5170 = vmatpush1.bf16.msra.mxu0 %v8894_v32  ;;  %5416 = vmatpush1.bf16.msra.mxu1 %v8896_v0  ;;  %v720_v32 = vld [vmem:[%s10995_s9 + $0x9e8] sm:$0xff]  ;;  %v8950_v0 = vcombine.low %v707_v20, %v711_v21  ;;  %v763_v20 = vld [vmem:[%s10995_s9 + $0xb40] sm:$0xff] }
 0x160   : > { %5180 = vmatprep.subr.bf16.mxu0 %v8903_v34  ;;  %5426 = vmatprep.subr.bf16.mxu1 %v8905_v35  ;;  %v8952_v34 = vcombine.low %v708_v22, %v712_v23  ;;  %v8959_v35 = vcombine.high %v715_v29, %v719_v60  ;;  %v8961_v36 = vcombine.high %v716_v31, %v720_v32  ;;  %v767_v21 = vld [vmem:[%s10995_s9 + $0xb60] sm:$0xff]  ;;  %v764_v22 = vld [vmem:[%s10995_s9 + $0xb48] sm:$0xff] }
 0x161   : > { %v768_v23 = vld [vmem:[%s10995_s9 + $0xb68] sm:$0xff] }
 0x162   : > { %5172 = vmatmul.mubr.bf16.vlgmr.msra.gmra.mrb[0].mxu0 %v11189_v39  ;;  %5418 = vmatmul.mubr.bf16.vlgmr.msra.gmra.mrb[0].mxu1 %v11189_v39 }
 0x163   : > { %5181 = vmatpush1.bf16.msra.mxu0 %v8902_v42  ;;  %5427 = vmatpush1.bf16.msra.mxu1 %v8904_v43  ;;  %v8958_v42 = vcombine.low %v715_v29, %v719_v60  ;;  %v8960_v43 = vcombine.low %v716_v31, %v720_v32  ;;  %v771_v29 = vld [vmem:[%s10995_s9 + $0xb80] sm:$0xff]  ;;  %v772_v31 = vld [vmem:[%s10995_s9 + $0xb88] sm:$0xff] }
 0x164   : > { %5182 = vmatprep.subr.bf16.mxu0 %v8911_v44  ;;  %5428 = vmatprep.subr.bf16.mxu1 %v8913_v46  ;;  %v8967_v44 = vcombine.high %v723_v37, %v727_v38  ;;  %v8969_v46 = vcombine.high %v724_v40, %v728_v41  ;;  %v775_v60 = vld [vmem:[%s10995_s9 + $0xba0] sm:$0xff]  ;;  %v776_v32 = vld [vmem:[%s10995_s9 + $0xba8] sm:$0xff] }
 0x165   : > { %5212 = vmatprep.mubr.bf16.mxu0 %v11196_v49  ;;  %5458 = vmatprep.mubr.bf16.mxu1 %v11196_v49 }
 0x167   : > { %5183 = vmatpush1.bf16.msra.mxu0 %v8910_v52  ;;  %5429 = vmatpush1.bf16.msra.mxu1 %v8912_v53  ;;  %v8966_v52 = vcombine.low %v723_v37, %v727_v38  ;;  %v8968_v53 = vcombine.low %v724_v40, %v728_v41  ;;  %v779_v37 = vld [vmem:[%s10995_s9 + $0xbc0] sm:$0xff]  ;;  %v780_v40 = vld [vmem:[%s10995_s9 + $0xbc8] sm:$0xff] }
 0x168   : > { %5184 = vmatprep.subr.bf16.mxu0 %v8919_v55  ;;  %5430 = vmatprep.subr.bf16.mxu1 %v8921_v56  ;;  %v8975_v55 = vcombine.high %v731_v47, %v735_v48  ;;  %v8977_v56 = vcombine.high %v732_v50, %v736_v51  ;;  %v783_v38 = vld [vmem:[%s10995_s9 + $0xbe0] sm:$0xff]  ;;  %v784_v41 = vld [vmem:[%s10995_s9 + $0xbe8] sm:$0xff] }
 0x16b   : > { %5185 = vmatpush1.bf16.msra.mxu0 %v8918_v62  ;;  %5431 = vmatpush1.bf16.msra.mxu1 %v8920_v63  ;;  %v8974_v62 = vcombine.low %v731_v47, %v735_v48  ;;  %v8976_v63 = vcombine.low %v732_v50, %v736_v51  ;;  %v787_v47 = vld [vmem:[%s10995_s9 + $0xc00] sm:$0xff]  ;;  %v788_v50 = vld [vmem:[%s10995_s9 + $0xc08] sm:$0xff] }
 0x16c   : > { %5186 = vmatprep.subr.bf16.mxu0 %v8927_v1  ;;  %5432 = vmatprep.subr.bf16.mxu1 %v8929_v2  ;;  %v8983_v1 = vcombine.high %v739_v57, %v743_v58  ;;  %v8985_v2 = vcombine.high %v740_v59, %v744_v61  ;;  %v791_v48 = vld [vmem:[%s10995_s9 + $0xc20] sm:$0xff]  ;;  %v792_v51 = vld [vmem:[%s10995_s9 + $0xc28] sm:$0xff] }
 0x16f   : > { %5187 = vmatpush1.bf16.msra.mxu0 %v8926_v7  ;;  %5433 = vmatpush1.bf16.msra.mxu1 %v8928_v8  ;;  %v8982_v7 = vcombine.low %v739_v57, %v743_v58  ;;  %v8984_v8 = vcombine.low %v740_v59, %v744_v61  ;;  %v795_v57 = vld [vmem:[%s10995_s9 + $0xc40] sm:$0xff]  ;;  %v11264_v59 = vrot.slane %v11179_v30, %v11044_v54  ;;  %v796_v61 = vld [vmem:[%s10995_s9 + $0xc48] sm:$0xff] }
 0x170   : > { %5188 = vmatprep.subr.bf16.mxu0 %v8935_v9  ;;  %5434 = vmatprep.subr.bf16.mxu1 %v8937_v11  ;;  %v8991_v9 = vcombine.high %v747_v3, %v751_v4  ;;  %v8993_v11 = vcombine.high %v748_v5, %v752_v6  ;;  %v799_v58 = vld [vmem:[%s10995_s9 + $0xc60] sm:$0xff]  ;;  %v804_v30 = vld [vmem:[%s10995_s9 + $0xc88] sm:$0xff] }
 0x173   : > { %5189 = vmatpush1.bf16.msra.mxu0 %v8934_v16  ;;  %5435 = vmatpush1.bf16.msra.mxu1 %v8936_v17  ;;  %v8990_v16 = vcombine.low %v747_v3, %v751_v4  ;;  %v8992_v17 = vcombine.low %v748_v5, %v752_v6  ;;  %v803_v4 = vld [vmem:[%s10995_s9 + $0xc80] sm:$0xff]  ;;  %v11272_v6 = vcombine.high %v11196_v49, %v11196_v49 }
 0x174   : > { %5190 = vmatprep.subr.bf16.mxu0 %v8943_v18  ;;  %5436 = vmatprep.subr.bf16.mxu1 %v8945_v19  ;;  %v8999_v18 = vcombine.high %v755_v12, %v759_v13  ;;  %v9001_v19 = vcombine.high %v756_v14, %v760_v15  ;;  %v807_v5 = vld [vmem:[%s10995_s9 + $0xca0] sm:$0xff] }
 0x177   : > { %5191 = vmatpush1.bf16.msra.mxu0 %v8942_v25  ;;  %5437 = vmatpush1.bf16.msra.mxu1 %v8944_v26  ;;  %v8998_v25 = vcombine.low %v755_v12, %v759_v13  ;;  %v9000_v26 = vcombine.low %v756_v14, %v760_v15  ;;  %v811_v13 = vld [vmem:[%s10995_s9 + $0xcc0] sm:$0xff]  ;;  %v812_v15 = vld [vmem:[%s10995_s9 + $0xcc8] sm:$0xff] }
 0x178   : > { %5192 = vmatprep.subr.bf16.mxu0 %v8951_v27  ;;  %5438 = vmatprep.subr.bf16.mxu1 %v8953_v28  ;;  %v9007_v27 = vcombine.high %v763_v20, %v767_v21  ;;  %v9009_v28 = vcombine.high %v764_v22, %v768_v23  ;;  %v815_v14 = vld [vmem:[%s10995_s9 + $0xce0] sm:$0xff] }
 0x17b   : > { %5193 = vmatpush1.bf16.msra.mxu0 %v8950_v0  ;;  %5439 = vmatpush1.bf16.msra.mxu1 %v8952_v34  ;;  %v9006_v0 = vcombine.low %v763_v20, %v767_v21  ;;  %v9008_v34 = vcombine.low %v764_v22, %v768_v23  ;;  %v819_v21 = vld [vmem:[%s10995_s9 + $0xd00] sm:$0xff]  ;;  %v820_v23 = vld [vmem:[%s10995_s9 + $0xd08] sm:$0xff] }
 0x17c   : > { %5194 = vmatprep.subr.bf16.mxu0 %v8959_v35  ;;  %5440 = vmatprep.subr.bf16.mxu1 %v8961_v36  ;;  %v9015_v35 = vcombine.high %v771_v29, %v775_v60  ;;  %v9017_v36 = vcombine.high %v772_v31, %v776_v32  ;;  %v823_v22 = vld [vmem:[%s10995_s9 + $0xd20] sm:$0xff] }
 0x17f   : > { %5195 = vmatpush1.bf16.msra.mxu0 %v8958_v42  ;;  %5441 = vmatpush1.bf16.msra.mxu1 %v8960_v43  ;;  %v9014_v42 = vcombine.low %v771_v29, %v775_v60  ;;  %v9016_v43 = vcombine.low %v772_v31, %v776_v32  ;;  %v827_v60 = vld [vmem:[%s10995_s9 + $0xd40] sm:$0xff]  ;;  %v828_v32 = vld [vmem:[%s10995_s9 + $0xd48] sm:$0xff] }
 0x180   : > { %5196 = vmatprep.subr.bf16.mxu0 %v8967_v44  ;;  %5442 = vmatprep.subr.bf16.mxu1 %v8969_v46  ;;  %v9023_v44 = vcombine.high %v779_v37, %v783_v38  ;;  %v9025_v46 = vcombine.high %v780_v40, %v784_v41  ;;  %v831_v31 = vld [vmem:[%s10995_s9 + $0xd60] sm:$0xff] }
 0x183   : > { %5197 = vmatpush1.bf16.msra.mxu0 %v8966_v52  ;;  %5443 = vmatpush1.bf16.msra.mxu1 %v8968_v53  ;;  %v9022_v52 = vcombine.low %v779_v37, %v783_v38  ;;  %v9024_v53 = vcombine.low %v780_v40, %v784_v41  ;;  %v835_v38 = vld [vmem:[%s10995_s9 + $0xd80] sm:$0xff]  ;;  %v836_v41 = vld [vmem:[%s10995_s9 + $0xd88] sm:$0xff] }
 0x184   : > { %5198 = vmatprep.subr.bf16.mxu0 %v8975_v55  ;;  %5444 = vmatprep.subr.bf16.mxu1 %v8977_v56  ;;  %v9031_v55 = vcombine.high %v787_v47, %v791_v48  ;;  %v9033_v56 = vcombine.high %v788_v50, %v792_v51  ;;  %v839_v40 = vld [vmem:[%s10995_s9 + $0xda0] sm:$0xff] }
 0x187   : > { %5199 = vmatpush1.bf16.msra.mxu0 %v8974_v62  ;;  %5445 = vmatpush1.bf16.msra.mxu1 %v8976_v63  ;;  %v800_v62 = vld [vmem:[%s10995_s9 + $0xc68] sm:$0xff]  ;;  %v9030_v63 = vcombine.low %v787_v47, %v791_v48  ;;  %v843_v48 = vld [vmem:[%s10995_s9 + $0xdc0] sm:$0xff] }
 0x188   : > { %5200 = vmatprep.subr.bf16.mxu0 %v8983_v1  ;;  %5446 = vmatprep.subr.bf16.mxu1 %v8985_v2  ;;  %v9032_v1 = vcombine.low %v788_v50, %v792_v51  ;;  %v9039_v2 = vcombine.high %v795_v57, %v799_v58  ;;  %v9041_v3 = vcombine.high %v796_v61, %v800_v62  ;;  %v847_v50 = vld [vmem:[%s10995_s9 + $0xde0] sm:$0xff]  ;;  %v844_v51 = vld [vmem:[%s10995_s9 + $0xdc8] sm:$0xff] }
 0x18b   : > { %5201 = vmatpush1.bf16.msra.mxu0 %v8982_v7  ;;  %5447 = vmatpush1.bf16.msra.mxu1 %v8984_v8  ;;  %v808_v7 = vld [vmem:[%s10995_s9 + $0xca8] sm:$0xff]  ;;  %v9038_v8 = vcombine.low %v795_v57, %v799_v58  ;;  %v851_v58 = vld [vmem:[%s10995_s9 + $0xe00] sm:$0xff] }
 0x18c   : > { %5202 = vmatprep.subr.bf16.mxu0 %v8991_v9  ;;  %5448 = vmatprep.subr.bf16.mxu1 %v8993_v11  ;;  %v9040_v9 = vcombine.low %v796_v61, %v800_v62  ;;  %v9047_v11 = vcombine.high %v803_v4, %v807_v5  ;;  %v9049_v12 = vcombine.high %v804_v30, %v808_v7  ;;  %v855_v61 = vld [vmem:[%s10995_s9 + $0xe20] sm:$0xff]  ;;  %v852_v62 = vld [vmem:[%s10995_s9 + $0xe08] sm:$0xff] }
 0x18f   : > { %5203 = vmatpush1.bf16.msra.mxu0 %v8990_v16  ;;  %5449 = vmatpush1.bf16.msra.mxu1 %v8992_v17  ;;  %v816_v16 = vld [vmem:[%s10995_s9 + $0xce8] sm:$0xff]  ;;  %v9046_v17 = vcombine.low %v803_v4, %v807_v5  ;;  %v859_v5 = vld [vmem:[%s10995_s9 + $0xe40] sm:$0xff] }
 0x190   : > { %5204 = vmatprep.subr.bf16.mxu0 %v8999_v18  ;;  %5450 = vmatprep.subr.bf16.mxu1 %v9001_v19  ;;  %v9048_v18 = vcombine.low %v804_v30, %v808_v7  ;;  %v9055_v19 = vcombine.high %v811_v13, %v815_v14  ;;  %v9057_v20 = vcombine.high %v812_v15, %v816_v16  ;;  %v863_v30 = vld [vmem:[%s10995_s9 + $0xe60] sm:$0xff]  ;;  %v860_v7 = vld [vmem:[%s10995_s9 + $0xe48] sm:$0xff] }
 0x193   : > { %5205 = vmatpush1.bf16.msra.mxu0 %v8998_v25  ;;  %5451 = vmatpush1.bf16.msra.mxu1 %v9000_v26  ;;  %v824_v25 = vld [vmem:[%s10995_s9 + $0xd28] sm:$0xff]  ;;  %v9054_v26 = vcombine.low %v811_v13, %v815_v14  ;;  %v867_v14 = vld [vmem:[%s10995_s9 + $0xe80] sm:$0xff] }
 0x194   : > { %5206 = vmatprep.subr.bf16.mxu0 %v9007_v27  ;;  %5452 = vmatprep.subr.bf16.mxu1 %v9009_v28  ;;  %v9056_v27 = vcombine.low %v812_v15, %v816_v16  ;;  %v9063_v28 = vcombine.high %v819_v21, %v823_v22  ;;  %v9065_v29 = vcombine.high %v820_v23, %v824_v25  ;;  %v871_v15 = vld [vmem:[%s10995_s9 + $0xea0] sm:$0xff]  ;;  %v868_v16 = vld [vmem:[%s10995_s9 + $0xe88] sm:$0xff] }
 0x197   : > { %5207 = vmatpush1.bf16.msra.mxu0 %v9006_v0  ;;  %5453 = vmatpush1.bf16.msra.mxu1 %v9008_v34  ;;  %v832_v0 = vld [vmem:[%s10995_s9 + $0xd68] sm:$0xff]  ;;  %v9062_v34 = vcombine.low %v819_v21, %v823_v22  ;;  %v875_v22 = vld [vmem:[%s10995_s9 + $0xec0] sm:$0xff] }
 0x198   : > { %5208 = vmatprep.subr.bf16.mxu0 %v9015_v35  ;;  %5454 = vmatprep.subr.bf16.mxu1 %v9017_v36  ;;  %v9064_v35 = vcombine.low %v820_v23, %v824_v25  ;;  %v9071_v36 = vcombine.high %v827_v60, %v831_v31  ;;  %v9073_v37 = vcombine.high %v828_v32, %v832_v0  ;;  %v879_v23 = vld [vmem:[%s10995_s9 + $0xee0] sm:$0xff]  ;;  %v876_v25 = vld [vmem:[%s10995_s9 + $0xec8] sm:$0xff] }
 0x19b   : > { %5209 = vmatpush1.bf16.msra.mxu0 %v9014_v42  ;;  %5455 = vmatpush1.bf16.msra.mxu1 %v9016_v43  ;;  %v840_v42 = vld [vmem:[%s10995_s9 + $0xda8] sm:$0xff]  ;;  %v9070_v43 = vcombine.low %v827_v60, %v831_v31  ;;  %v883_v31 = vld [vmem:[%s10995_s9 + $0xf00] sm:$0xff] }
 0x19c   : > { %5210 = vmatprep.subr.bf16.mxu0 %v9023_v44  ;;  %5456 = vmatprep.subr.bf16.mxu1 %v9025_v46  ;;  %v9072_v44 = vcombine.low %v828_v32, %v832_v0  ;;  %v9079_v46 = vcombine.high %v835_v38, %v839_v40  ;;  %v9081_v47 = vcombine.high %v836_v41, %v840_v42  ;;  %v887_v32 = vld [vmem:[%s10995_s9 + $0xf20] sm:$0xff]  ;;  %v884_v0 = vld [vmem:[%s10995_s9 + $0xf08] sm:$0xff] }
 0x19f   : > { %5211 = vmatpush1.bf16.msra.mxu0 %v9022_v52  ;;  %5457 = vmatpush1.bf16.msra.mxu1 %v9024_v53  ;;  %v848_v52 = vld [vmem:[%s10995_s9 + $0xde8] sm:$0xff]  ;;  %v9078_v53 = vcombine.low %v835_v38, %v839_v40  ;;  %v891_v40 = vld [vmem:[%s10995_s9 + $0xf40] sm:$0xff] }
 0x1a0   : > { %5221 = vmatprep.subr.bf16.mxu0 %v9031_v55  ;;  %5467 = vmatprep.subr.bf16.mxu1 %v9033_v56  ;;  %v9080_v55 = vcombine.low %v836_v41, %v840_v42  ;;  %v9087_v56 = vcombine.high %v843_v48, %v847_v50  ;;  %v9089_v57 = vcombine.high %v844_v51, %v848_v52  ;;  %v895_v41 = vld [vmem:[%s10995_s9 + $0xf60] sm:$0xff]  ;;  %v892_v42 = vld [vmem:[%s10995_s9 + $0xf48] sm:$0xff] }
 0x1a2   : > { %5213 = vmatmul.mubr.bf16.vlgmr.msra.gmra.mrb[0].mxu0 %v11264_v59  ;;  %5459 = vmatmul.mubr.bf16.vlgmr.msra.gmra.mrb[0].mxu1 %v11264_v59 }
 0x1a3   : > { %5222 = vmatpush1.bf16.msra.mxu0 %v9030_v63  ;;  %5468 = vmatpush1.bf16.msra.mxu1 %v9032_v1  ;;  %v856_v63 = vld [vmem:[%s10995_s9 + $0xe28] sm:$0xff]  ;;  %v9086_v1 = vcombine.low %v843_v48, %v847_v50  ;;  %v899_v50 = vld [vmem:[%s10995_s9 + $0xf80] sm:$0xff] }
 0x1a4   : > { %5223 = vmatprep.subr.bf16.mxu0 %v9039_v2  ;;  %5469 = vmatprep.subr.bf16.mxu1 %v9041_v3  ;;  %v9088_v2 = vcombine.low %v844_v51, %v848_v52  ;;  %v9095_v3 = vcombine.high %v851_v58, %v855_v61  ;;  %v9097_v4 = vcombine.high %v852_v62, %v856_v63  ;;  %v903_v51 = vld [vmem:[%s10995_s9 + $0xfa0] sm:$0xff]  ;;  %v900_v52 = vld [vmem:[%s10995_s9 + $0xf88] sm:$0xff] }
 0x1a5   : > { %5253 = vmatprep.mubr.bf16.mxu0 %v11272_v6  ;;  %5499 = vmatprep.mubr.bf16.mxu1 %v11272_v6 }
 0x1a7   : > { %5224 = vmatpush1.bf16.msra.mxu0 %v9038_v8  ;;  %5470 = vmatpush1.bf16.msra.mxu1 %v9040_v9  ;;  %v864_v8 = vld [vmem:[%s10995_s9 + $0xe68] sm:$0xff]  ;;  %v9094_v9 = vcombine.low %v851_v58, %v855_v61  ;;  %v907_v61 = vld [vmem:[%s10995_s9 + $0xfc0] sm:$0xff] }
 0x1a8   : > { %5225 = vmatprep.subr.bf16.mxu0 %v9047_v11  ;;  %5471 = vmatprep.subr.bf16.mxu1 %v9049_v12  ;;  %v9096_v11 = vcombine.low %v852_v62, %v856_v63  ;;  %v9103_v12 = vcombine.high %v859_v5, %v863_v30  ;;  %v9105_v13 = vcombine.high %v860_v7, %v864_v8  ;;  %v911_v62 = vld [vmem:[%s10995_s9 + $0xfe0] sm:$0xff]  ;;  %v908_v63 = vld [vmem:[%s10995_s9 + $0xfc8] sm:$0xff] }
 0x1ab   : > { %5226 = vmatpush1.bf16.msra.mxu0 %v9046_v17  ;;  %5472 = vmatpush1.bf16.msra.mxu1 %v9048_v18  ;;  %v872_v17 = vld [vmem:[%s10995_s9 + $0xea8] sm:$0xff]  ;;  %v9102_v18 = vcombine.low %v859_v5, %v863_v30  ;;  %v915_v30 = vld [vmem:[%s10995_s9 + $0x1000] sm:$0xff] }
 0x1ac   : > { %5227 = vmatprep.subr.bf16.mxu0 %v9055_v19  ;;  %5473 = vmatprep.subr.bf16.mxu1 %v9057_v20  ;;  %v9104_v19 = vcombine.low %v860_v7, %v864_v8  ;;  %v9111_v20 = vcombine.high %v867_v14, %v871_v15  ;;  %v9113_v21 = vcombine.high %v868_v16, %v872_v17  ;;  %v919_v7 = vld [vmem:[%s10995_s9 + $0x1020] sm:$0xff]  ;;  %v916_v8 = vld [vmem:[%s10995_s9 + $0x1008] sm:$0xff] }
 0x1af   : > { %5228 = vmatpush1.bf16.msra.mxu0 %v9054_v26  ;;  %5474 = vmatpush1.bf16.msra.mxu1 %v9056_v27  ;;  %v880_v26 = vld [vmem:[%s10995_s9 + $0xee8] sm:$0xff]  ;;  %v9110_v27 = vcombine.low %v867_v14, %v871_v15  ;;  %v9159_v14 = vcombine.high %v915_v30, %v919_v7 }
 0x1b0   : > { %5229 = vmatprep.subr.bf16.mxu0 %v9063_v28  ;;  %5475 = vmatprep.subr.bf16.mxu1 %v9065_v29  ;;  %v9112_v28 = vcombine.low %v868_v16, %v872_v17  ;;  %v9119_v29 = vcombine.high %v875_v22, %v879_v23  ;;  %v9121_v60 = vcombine.high %v876_v25, %v880_v26  ;;  %v923_v16 = vld [vmem:[%s10995_s9 + $0x1040] sm:$0xff] }
 0x1b1   : > { %v927_v17 = vld [vmem:[%s10995_s9 + $0x1060] sm:$0xff] }
 0x1b3   : > { %5230 = vmatpush1.bf16.msra.mxu0 %v9062_v34  ;;  %5476 = vmatpush1.bf16.msra.mxu1 %v9064_v35  ;;  %v888_v34 = vld [vmem:[%s10995_s9 + $0xf28] sm:$0xff]  ;;  %v9118_v35 = vcombine.low %v875_v22, %v879_v23  ;;  %v9158_v22 = vcombine.low %v915_v30, %v919_v7 }
 0x1b4   : > { %5231 = vmatprep.subr.bf16.mxu0 %v9071_v36  ;;  %5477 = vmatprep.subr.bf16.mxu1 %v9073_v37  ;;  %v9120_v36 = vcombine.low %v876_v25, %v880_v26  ;;  %v9127_v37 = vcombine.high %v883_v31, %v887_v32  ;;  %v9129_v38 = vcombine.high %v884_v0, %v888_v34  ;;  %v968_v30 = vld [vmem:[%s10995_s9 + $0x11a8] sm:$0xff] }
 0x1b5   : > { %v9167_v25 = vcombine.high %v923_v16, %v927_v17 }
 0x1b7   : > { %5232 = vmatpush1.bf16.msra.mxu0 %v9070_v43  ;;  %5478 = vmatpush1.bf16.msra.mxu1 %v9072_v44  ;;  %v896_v43 = vld [vmem:[%s10995_s9 + $0xf68] sm:$0xff]  ;;  %v9126_v44 = vcombine.low %v883_v31, %v887_v32  ;;  %v9166_v32 = vcombine.low %v923_v16, %v927_v17 }
 0x1b8   : > { %5233 = vmatprep.subr.bf16.mxu0 %v9079_v46  ;;  %5479 = vmatprep.subr.bf16.mxu1 %v9081_v47  ;;  %v9128_v46 = vcombine.low %v884_v0, %v888_v34  ;;  %v9135_v47 = vcombine.high %v891_v40, %v895_v41  ;;  %v9137_v48 = vcombine.high %v892_v42, %v896_v43  ;;  %v936_v31 = vld [vmem:[%s10995_s9 + $0x10a8] sm:$0xff] }
 0x1b9   : > { %v976_v16 = vld [vmem:[%s10995_s9 + $0x11e8] sm:$0xff] }
 0x1bb   : > { %5234 = vmatpush1.bf16.msra.mxu0 %v9078_v53  ;;  %5480 = vmatpush1.bf16.msra.mxu1 %v9080_v55  ;;  %v904_v53 = vld [vmem:[%s10995_s9 + $0xfa8] sm:$0xff]  ;;  %v9134_v55 = vcombine.low %v891_v40, %v895_v41 }
 0x1bc   : > { %5235 = vmatprep.subr.bf16.mxu0 %v9087_v56  ;;  %5481 = vmatprep.subr.bf16.mxu1 %v9089_v57  ;;  %v9136_v56 = vcombine.low %v892_v42, %v896_v43  ;;  %v9143_v57 = vcombine.high %v899_v50, %v903_v51  ;;  %v9145_v58 = vcombine.high %v900_v52, %v904_v53  ;;  %v944_v40 = vld [vmem:[%s10995_s9 + $0x10e8] sm:$0xff] }
 0x1bf   : > { %5236 = vmatpush1.bf16.msra.mxu0 %v9086_v1  ;;  %5482 = vmatpush1.bf16.msra.mxu1 %v9088_v2  ;;  %v912_v1 = vld [vmem:[%s10995_s9 + $0xfe8] sm:$0xff]  ;;  %v9142_v2 = vcombine.low %v899_v50, %v903_v51 }
 0x1c0   : > { %5237 = vmatprep.subr.bf16.mxu0 %v9095_v3  ;;  %5483 = vmatprep.subr.bf16.mxu1 %v9097_v4  ;;  %v9144_v3 = vcombine.low %v900_v52, %v904_v53  ;;  %v9151_v4 = vcombine.high %v907_v61, %v911_v62  ;;  %v9153_v5 = vcombine.high %v908_v63, %v912_v1  ;;  %v952_v50 = vld [vmem:[%s10995_s9 + $0x1128] sm:$0xff] }
 0x1c3   : > { %5238 = vmatpush1.bf16.msra.mxu0 %v9094_v9  ;;  %5484 = vmatpush1.bf16.msra.mxu1 %v9096_v11  ;;  %v920_v9 = vld [vmem:[%s10995_s9 + $0x1028] sm:$0xff]  ;;  %v11337_v11 = vld.sshfl [vmem:[%s10988_s24 + $0x8] sm:$0x33 pattern:$0x75316420] }
 0x1c4   : > { %5239 = vmatprep.subr.bf16.mxu0 %v9103_v12  ;;  %5485 = vmatprep.subr.bf16.mxu1 %v9105_v13  ;;  %v9150_v12 = vcombine.low %v907_v61, %v911_v62  ;;  %v9152_v13 = vcombine.low %v908_v63, %v912_v1  ;;  %v9161_v15 = vcombine.high %v916_v8, %v920_v9  ;;  %v960_v61 = vld [vmem:[%s10995_s9 + $0x1168] sm:$0xff] }
 0x1c5   : > { %v9160_v23 = vcombine.low %v916_v8, %v920_v9 }
 0x1c7   : > { %5240 = vmatpush1.bf16.msra.mxu0 %v9102_v18  ;;  %5486 = vmatpush1.bf16.msra.mxu1 %v9104_v19  ;;  %v1229_v18 = vcombine.high %v11337_v11, %v11337_v11  ;;  %v11345_v19 = vcombine.high %v11264_v59, %v11264_v59 }
 0x1c8   : > { %5241 = vmatprep.subr.bf16.mxu0 %v9111_v20  ;;  %5487 = vmatprep.subr.bf16.mxu1 %v9113_v21  ;;  %v924_v20 = vld [vmem:[%s10995_s9 + $0x1048] sm:$0xff] }
 0x1c9   : > { %v928_v21 = vld [vmem:[%s10995_s9 + $0x1068] sm:$0xff] }
 0x1ca   : > { %v9169_v26 = vcombine.high %v924_v20, %v928_v21  ;;  %v9168_v0 = vcombine.low %v924_v20, %v928_v21 }
 0x1cb   : > { %5242 = vmatpush1.bf16.msra.mxu0 %v9110_v27  ;;  %5488 = vmatpush1.bf16.msra.mxu1 %v9112_v28  ;;  %v931_v27 = vld [vmem:[%s10995_s9 + $0x1080] sm:$0xff] }
 0x1cc   : > { %5243 = vmatprep.subr.bf16.mxu0 %v9119_v29  ;;  %5489 = vmatprep.subr.bf16.mxu1 %v9121_v60  ;;  %v935_v28 = vld [vmem:[%s10995_s9 + $0x10a0] sm:$0xff]  ;;  %v11352_v29 = vrot.slane %v1229_v18, %v11044_v54  ;;  %v932_v60 = vld [vmem:[%s10995_s9 + $0x1088] sm:$0xff] }
 0x1cd   : > { %v9175_v34 = vcombine.high %v931_v27, %v935_v28  ;;  %v9174_v41 = vcombine.low %v931_v27, %v935_v28  ;;  %v9176_v42 = vcombine.low %v932_v60, %v936_v31 }
 0x1cf   : > { %5244 = vmatpush1.bf16.msra.mxu0 %v9118_v35  ;;  %5490 = vmatpush1.bf16.msra.mxu1 %v9120_v36  ;;  %v9177_v35 = vcombine.high %v932_v60, %v936_v31  ;;  %v939_v36 = vld [vmem:[%s10995_s9 + $0x10c0] sm:$0xff] }
 0x1d0   : > { %5245 = vmatprep.subr.bf16.mxu0 %v9127_v37  ;;  %5491 = vmatprep.subr.bf16.mxu1 %v9129_v38  ;;  %v943_v37 = vld [vmem:[%s10995_s9 + $0x10e0] sm:$0xff]  ;;  %v940_v38 = vld [vmem:[%s10995_s9 + $0x10c8] sm:$0xff] }
 0x1d1   : > { %v9183_v43 = vcombine.high %v939_v36, %v943_v37  ;;  %v9182_v51 = vcombine.low %v939_v36, %v943_v37  ;;  %v9184_v52 = vcombine.low %v940_v38, %v944_v40 }
 0x1d3   : > { %5246 = vmatpush1.bf16.msra.mxu0 %v9126_v44  ;;  %5492 = vmatpush1.bf16.msra.mxu1 %v9128_v46  ;;  %v9185_v44 = vcombine.high %v940_v38, %v944_v40  ;;  %v947_v46 = vld [vmem:[%s10995_s9 + $0x1100] sm:$0xff] }
 0x1d4   : > { %5247 = vmatprep.subr.bf16.mxu0 %v9135_v47  ;;  %5493 = vmatprep.subr.bf16.mxu1 %v9137_v48  ;;  %v951_v47 = vld [vmem:[%s10995_s9 + $0x1120] sm:$0xff]  ;;  %v948_v48 = vld [vmem:[%s10995_s9 + $0x1108] sm:$0xff] }
 0x1d5   : > { %v9191_v53 = vcombine.high %v947_v46, %v951_v47  ;;  %v9190_v62 = vcombine.low %v947_v46, %v951_v47  ;;  %v9192_v63 = vcombine.low %v948_v48, %v952_v50 }
 0x1d7   : > { %5248 = vmatpush1.bf16.msra.mxu0 %v9134_v55  ;;  %5494 = vmatpush1.bf16.msra.mxu1 %v9136_v56  ;;  %v9193_v55 = vcombine.high %v948_v48, %v952_v50  ;;  %v955_v56 = vld [vmem:[%s10995_s9 + $0x1140] sm:$0xff] }
 0x1d8   : > { %5249 = vmatprep.subr.bf16.mxu0 %v9143_v57  ;;  %5495 = vmatprep.subr.bf16.mxu1 %v9145_v58  ;;  %v959_v57 = vld [vmem:[%s10995_s9 + $0x1160] sm:$0xff]  ;;  %v956_v58 = vld [vmem:[%s10995_s9 + $0x1148] sm:$0xff] }
 0x1d9   : > { %v9199_v1 = vcombine.high %v955_v56, %v959_v57  ;;  %v9198_v7 = vcombine.low %v955_v56, %v959_v57  ;;  %v9200_v8 = vcombine.low %v956_v58, %v960_v61 }
 0x1db   : > { %5250 = vmatpush1.bf16.msra.mxu0 %v9142_v2  ;;  %5496 = vmatpush1.bf16.msra.mxu1 %v9144_v3  ;;  %v9201_v2 = vcombine.high %v956_v58, %v960_v61  ;;  %v963_v3 = vld [vmem:[%s10995_s9 + $0x1180] sm:$0xff] }
 0x1dc   : > { %5251 = vmatprep.subr.bf16.mxu0 %v9151_v4  ;;  %5497 = vmatprep.subr.bf16.mxu1 %v9153_v5  ;;  %v967_v4 = vld [vmem:[%s10995_s9 + $0x11a0] sm:$0xff]  ;;  %v964_v5 = vld [vmem:[%s10995_s9 + $0x1188] sm:$0xff] }
 0x1dd   : > { %v9207_v9 = vcombine.high %v963_v3, %v967_v4  ;;  %v9206_v17 = vcombine.low %v963_v3, %v967_v4  ;;  %v9208_v18 = vcombine.low %v964_v5, %v968_v30 }
 0x1df   : > { %5252 = vmatpush1.bf16.msra.mxu0 %v9150_v12  ;;  %5498 = vmatpush1.bf16.msra.mxu1 %v9152_v13  ;;  %v9209_v12 = vcombine.high %v964_v5, %v968_v30  ;;  %v971_v13 = vld [vmem:[%s10995_s9 + $0x11c0] sm:$0xff] }
 0x1e0   : > { %5262 = vmatprep.subr.bf16.mxu0 %v9159_v14  ;;  %5508 = vmatprep.subr.bf16.mxu1 %v9161_v15  ;;  %v975_v14 = vld [vmem:[%s10995_s9 + $0x11e0] sm:$0xff]  ;;  %v972_v15 = vld [vmem:[%s10995_s9 + $0x11c8] sm:$0xff] }
 0x1e1   : > { %v9215_v20 = vcombine.high %v971_v13, %v975_v14  ;;  %v9217_v21 = vcombine.high %v972_v15, %v976_v16  ;;  %v9214_v27 = vcombine.low %v971_v13, %v975_v14  ;;  %v9216_v28 = vcombine.low %v972_v15, %v976_v16 }
 0x1e2   : > { %5254 = vmatmul.mubr.bf16.vlgmr.msra.gmra.mrb[0].mxu0 %v11345_v19  ;;  %5500 = vmatmul.mubr.bf16.vlgmr.msra.gmra.mrb[0].mxu1 %v11345_v19 }
 0x1e3   : > { %5263 = vmatpush1.bf16.msra.mxu0 %v9158_v22  ;;  %5509 = vmatpush1.bf16.msra.mxu1 %v9160_v23  ;;  %v979_v22 = vld [vmem:[%s10995_s9 + $0x1200] sm:$0xff] }
 0x1e4   : > { %5264 = vmatprep.subr.bf16.mxu0 %v9167_v25  ;;  %5510 = vmatprep.subr.bf16.mxu1 %v9169_v26  ;;  %v983_v23 = vld [vmem:[%s10995_s9 + $0x1220] sm:$0xff]  ;;  %v980_v25 = vld [vmem:[%s10995_s9 + $0x1208] sm:$0xff] }
 0x1e5   : > { %5294 = vmatprep.mubr.bf16.mxu0 %v11352_v29  ;;  %5540 = vmatprep.mubr.bf16.mxu1 %v11352_v29  ;;  %v984_v26 = vld [vmem:[%s10995_s9 + $0x1228] sm:$0xff]  ;;  %v9223_v60 = vcombine.high %v979_v22, %v983_v23  ;;  %v9222_v36 = vcombine.low %v979_v22, %v983_v23 }
 0x1e6   : > { %v9225_v31 = vcombine.high %v980_v25, %v984_v26  ;;  %v9224_v37 = vcombine.low %v980_v25, %v984_v26 }
 0x1e7   : > { %5265 = vmatpush1.bf16.msra.mxu0 %v9166_v32  ;;  %5511 = vmatpush1.bf16.msra.mxu1 %v9168_v0  ;;  %v987_v32 = vld [vmem:[%s10995_s9 + $0x1240] sm:$0xff] }
 0x1e8   : > { %5266 = vmatprep.subr.bf16.mxu0 %v9175_v34  ;;  %5512 = vmatprep.subr.bf16.mxu1 %v9177_v35  ;;  %v991_v0 = vld [vmem:[%s10995_s9 + $0x1260] sm:$0xff]  ;;  %v988_v34 = vld [vmem:[%s10995_s9 + $0x1248] sm:$0xff] }
 0x1e9   : > { %v992_v35 = vld [vmem:[%s10995_s9 + $0x1268] sm:$0xff]  ;;  %v9231_v38 = vcombine.high %v987_v32, %v991_v0  ;;  %v9230_v46 = vcombine.low %v987_v32, %v991_v0 }
 0x1ea   : > { %v9233_v40 = vcombine.high %v988_v34, %v992_v35  ;;  %v9232_v47 = vcombine.low %v988_v34, %v992_v35 }
 0x1eb   : > { %5267 = vmatpush1.bf16.msra.mxu0 %v9174_v41  ;;  %5513 = vmatpush1.bf16.msra.mxu1 %v9176_v42  ;;  %v995_v41 = vld [vmem:[%s10995_s9 + $0x1280] sm:$0xff] }
 0x1ec   : > { %5268 = vmatprep.subr.bf16.mxu0 %v9183_v43  ;;  %5514 = vmatprep.subr.bf16.mxu1 %v9185_v44  ;;  %v999_v42 = vld [vmem:[%s10995_s9 + $0x12a0] sm:$0xff]  ;;  %v996_v43 = vld [vmem:[%s10995_s9 + $0x1288] sm:$0xff] }
 0x1ed   : > { %v1000_v44 = vld [vmem:[%s10995_s9 + $0x12a8] sm:$0xff]  ;;  %v9239_v48 = vcombine.high %v995_v41, %v999_v42  ;;  %v9238_v56 = vcombine.low %v995_v41, %v999_v42 }
 0x1ee   : > { %v9241_v50 = vcombine.high %v996_v43, %v1000_v44  ;;  %v9240_v57 = vcombine.low %v996_v43, %v1000_v44 }
 0x1ef   : > { %5269 = vmatpush1.bf16.msra.mxu0 %v9182_v51  ;;  %5515 = vmatpush1.bf16.msra.mxu1 %v9184_v52  ;;  %v1003_v51 = vld [vmem:[%s10995_s9 + $0x12c0] sm:$0xff] }
 0x1f0   : > { %5270 = vmatprep.subr.bf16.mxu0 %v9191_v53  ;;  %5516 = vmatprep.subr.bf16.mxu1 %v9193_v55  ;;  %v1007_v52 = vld [vmem:[%s10995_s9 + $0x12e0] sm:$0xff]  ;;  %v1004_v53 = vld [vmem:[%s10995_s9 + $0x12c8] sm:$0xff] }
 0x1f1   : > { %v1008_v55 = vld [vmem:[%s10995_s9 + $0x12e8] sm:$0xff]  ;;  %v9247_v58 = vcombine.high %v1003_v51, %v1007_v52  ;;  %v9246_v3 = vcombine.low %v1003_v51, %v1007_v52 }
 0x1f2   : > { %v9249_v61 = vcombine.high %v1004_v53, %v1008_v55  ;;  %v9248_v4 = vcombine.low %v1004_v53, %v1008_v55  ;;  %v1056_v51 = vld [vmem:[%s10995_s9 + $0x1468] sm:$0xff] }
 0x1f3   : > { %5271 = vmatpush1.bf16.msra.mxu0 %v9190_v62  ;;  %5517 = vmatpush1.bf16.msra.mxu1 %v9192_v63  ;;  %v1011_v62 = vld [vmem:[%s10995_s9 + $0x1300] sm:$0xff] }
 0x1f4   : > { %5272 = vmatprep.subr.bf16.mxu0 %v9199_v1  ;;  %5518 = vmatprep.subr.bf16.mxu1 %v9201_v2  ;;  %v1015_v63 = vld [vmem:[%s10995_s9 + $0x1320] sm:$0xff]  ;;  %v1012_v1 = vld [vmem:[%s10995_s9 + $0x1308] sm:$0xff] }
 0x1f5   : > { %v1016_v2 = vld [vmem:[%s10995_s9 + $0x1328] sm:$0xff]  ;;  %v9255_v5 = vcombine.high %v1011_v62, %v1015_v63  ;;  %v9254_v13 = vcombine.low %v1011_v62, %v1015_v63 }
 0x1f6   : > { %v9257_v30 = vcombine.high %v1012_v1, %v1016_v2  ;;  %v9256_v14 = vcombine.low %v1012_v1, %v1016_v2 }
 0x1f7   : > { %5273 = vmatpush1.bf16.msra.mxu0 %v9198_v7  ;;  %5519 = vmatpush1.bf16.msra.mxu1 %v9200_v8  ;;  %v1019_v7 = vld [vmem:[%s10995_s9 + $0x1340] sm:$0xff] }
 0x1f8   : > { %5274 = vmatprep.subr.bf16.mxu0 %v9207_v9  ;;  %5520 = vmatprep.subr.bf16.mxu1 %v9209_v12  ;;  %v1023_v8 = vld [vmem:[%s10995_s9 + $0x1360] sm:$0xff]  ;;  %v1020_v9 = vld [vmem:[%s10995_s9 + $0x1348] sm:$0xff] }
 0x1f9   : > { %v1024_v12 = vld [vmem:[%s10995_s9 + $0x1368] sm:$0xff]  ;;  %v9263_v15 = vcombine.high %v1019_v7, %v1023_v8  ;;  %v9262_v22 = vcombine.low %v1019_v7, %v1023_v8 }
 0x1fa   : > { %v9265_v16 = vcombine.high %v1020_v9, %v1024_v12  ;;  %v9264_v23 = vcombine.low %v1020_v9, %v1024_v12 }
 0x1fb   : > { %5275 = vmatpush1.bf16.msra.mxu0 %v9206_v17  ;;  %5521 = vmatpush1.bf16.msra.mxu1 %v9208_v18  ;;  %v1027_v17 = vld [vmem:[%s10995_s9 + $0x1380] sm:$0xff] }
 0x1fc   : > { %5276 = vmatprep.subr.bf16.mxu0 %v9215_v20  ;;  %5522 = vmatprep.subr.bf16.mxu1 %v9217_v21  ;;  %v1031_v18 = vld [vmem:[%s10995_s9 + $0x13a0] sm:$0xff]  ;;  %v1028_v20 = vld [vmem:[%s10995_s9 + $0x1388] sm:$0xff] }
 0x1fd   : > { %v1032_v21 = vld [vmem:[%s10995_s9 + $0x13a8] sm:$0xff]  ;;  %v9271_v25 = vcombine.high %v1027_v17, %v1031_v18  ;;  %v9270_v32 = vcombine.low %v1027_v17, %v1031_v18 }
 0x1fe   : > { %v9273_v26 = vcombine.high %v1028_v20, %v1032_v21  ;;  %v9272_v0 = vcombine.low %v1028_v20, %v1032_v21 }
 0x1ff   : > { %5277 = vmatpush1.bf16.msra.mxu0 %v9214_v27  ;;  %5523 = vmatpush1.bf16.msra.mxu1 %v9216_v28  ;;  %v1035_v27 = vld [vmem:[%s10995_s9 + $0x13c0] sm:$0xff] }
 0x200   : > { %5278 = vmatprep.subr.bf16.mxu0 %v9223_v60  ;;  %5524 = vmatprep.subr.bf16.mxu1 %v9225_v31  ;;  %v1039_v28 = vld [vmem:[%s10995_s9 + $0x13e0] sm:$0xff]  ;;  %v1036_v60 = vld [vmem:[%s10995_s9 + $0x13c8] sm:$0xff] }
 0x201   : > { %v1040_v31 = vld [vmem:[%s10995_s9 + $0x13e8] sm:$0xff]  ;;  %v9279_v34 = vcombine.high %v1035_v27, %v1039_v28  ;;  %v9278_v41 = vcombine.low %v1035_v27, %v1039_v28 }
 0x202   : > { %v9281_v35 = vcombine.high %v1036_v60, %v1040_v31  ;;  %v9280_v42 = vcombine.low %v1036_v60, %v1040_v31 }
 0x203   : > { %5279 = vmatpush1.bf16.msra.mxu0 %v9222_v36  ;;  %5525 = vmatpush1.bf16.msra.mxu1 %v9224_v37  ;;  %v1043_v36 = vld [vmem:[%s10995_s9 + $0x1400] sm:$0xff] }
 0x204   : > { %5280 = vmatprep.subr.bf16.mxu0 %v9231_v38  ;;  %5526 = vmatprep.subr.bf16.mxu1 %v9233_v40  ;;  %v1047_v37 = vld [vmem:[%s10995_s9 + $0x1420] sm:$0xff]  ;;  %v1044_v38 = vld [vmem:[%s10995_s9 + $0x1408] sm:$0xff] }
 0x205   : > { %v1048_v40 = vld [vmem:[%s10995_s9 + $0x1428] sm:$0xff]  ;;  %v9287_v43 = vcombine.high %v1043_v36, %v1047_v37  ;;  %v9286_v52 = vcombine.low %v1043_v36, %v1047_v37 }
 0x206   : > { %v9289_v44 = vcombine.high %v1044_v38, %v1048_v40  ;;  %v9288_v53 = vcombine.low %v1044_v38, %v1048_v40 }
 0x207   : > { %5281 = vmatpush1.bf16.msra.mxu0 %v9230_v46  ;;  %5527 = vmatpush1.bf16.msra.mxu1 %v9232_v47  ;;  %v1051_v46 = vld [vmem:[%s10995_s9 + $0x1440] sm:$0xff] }
 0x208   : > { %5282 = vmatprep.subr.bf16.mxu0 %v9239_v48  ;;  %5528 = vmatprep.subr.bf16.mxu1 %v9241_v50  ;;  %v1055_v47 = vld [vmem:[%s10995_s9 + $0x1460] sm:$0xff]  ;;  %v11420_v48 = vrot.slane %v11337_v11, %v11044_v54  ;;  %v1052_v50 = vld [vmem:[%s10995_s9 + $0x1448] sm:$0xff] }
 0x209   : > { %v9295_v55 = vcombine.high %v1051_v46, %v1055_v47  ;;  %v1060_v54 = vld [vmem:[%s10995_s9 + $0x1488] sm:$0xff]  ;;  %v9294_v62 = vcombine.low %v1051_v46, %v1055_v47  ;;  %v9296_v63 = vcombine.low %v1052_v50, %v1056_v51 }
 0x20a   : > { %v1064_v11 = vld [vmem:[%s10995_s9 + $0x14a8] sm:$0xff] }
 0x20b   : > { %5283 = vmatpush1.bf16.msra.mxu0 %v9238_v56  ;;  %5529 = vmatpush1.bf16.msra.mxu1 %v9240_v57  ;;  %v9297_v56 = vcombine.high %v1052_v50, %v1056_v51  ;;  %v1059_v57 = vld [vmem:[%s10995_s9 + $0x1480] sm:$0xff]  ;;  %v9305_v2 = vcombine.high %v1060_v54, %v1064_v11  ;;  %v9304_v8 = vcombine.low %v1060_v54, %v1064_v11 }
 0x20c   : > { %5284 = vmatprep.subr.bf16.mxu0 %v9247_v58  ;;  %5530 = vmatprep.subr.bf16.mxu1 %v9249_v61  ;;  %v1063_v58 = vld [vmem:[%s10995_s9 + $0x14a0] sm:$0xff]  ;;  %v11428_v61 = vcombine.high %v11352_v29, %v11352_v29 }
 0x20d   : > { %v9303_v1 = vcombine.high %v1059_v57, %v1063_v58  ;;  %v9302_v7 = vcombine.low %v1059_v57, %v1063_v58 }
 0x20f   : > { %5285 = vmatpush1.bf16.msra.mxu0 %v9246_v3  ;;  %5531 = vmatpush1.bf16.msra.mxu1 %v9248_v4  ;;  %v1067_v3 = vld [vmem:[%s10995_s9 + $0x14c0] sm:$0xff] }
 0x210   : > { %5286 = vmatprep.subr.bf16.mxu0 %v9255_v5  ;;  %5532 = vmatprep.subr.bf16.mxu1 %v9257_v30  ;;  %v1071_v4 = vld [vmem:[%s10995_s9 + $0x14e0] sm:$0xff]  ;;  %v1068_v5 = vld [vmem:[%s10995_s9 + $0x14c8] sm:$0xff] }
 0x211   : > { %v1072_v30 = vld [vmem:[%s10995_s9 + $0x14e8] sm:$0xff]  ;;  %v9311_v9 = vcombine.high %v1067_v3, %v1071_v4  ;;  %v9310_v17 = vcombine.low %v1067_v3, %v1071_v4 }
 0x212   : > { %v9313_v12 = vcombine.high %v1068_v5, %v1072_v30  ;;  %v9312_v18 = vcombine.low %v1068_v5, %v1072_v30 }
 0x213   : > { %5287 = vmatpush1.bf16.msra.mxu0 %v9254_v13  ;;  %5533 = vmatpush1.bf16.msra.mxu1 %v9256_v14  ;;  %v1075_v13 = vld [vmem:[%s10995_s9 + $0x1500] sm:$0xff] }
 0x214   : > { %5288 = vmatprep.subr.bf16.mxu0 %v9263_v15  ;;  %5534 = vmatprep.subr.bf16.mxu1 %v9265_v16  ;;  %v1079_v14 = vld [vmem:[%s10995_s9 + $0x1520] sm:$0xff]  ;;  %v1076_v15 = vld [vmem:[%s10995_s9 + $0x1508] sm:$0xff] }
 0x215   : > { %v1080_v16 = vld [vmem:[%s10995_s9 + $0x1528] sm:$0xff]  ;;  %v9319_v20 = vcombine.high %v1075_v13, %v1079_v14  ;;  %v9318_v27 = vcombine.low %v1075_v13, %v1079_v14 }
 0x216   : > { %v9321_v21 = vcombine.high %v1076_v15, %v1080_v16  ;;  %v9320_v28 = vcombine.low %v1076_v15, %v1080_v16 }
 0x217   : > { %5289 = vmatpush1.bf16.msra.mxu0 %v9262_v22  ;;  %5535 = vmatpush1.bf16.msra.mxu1 %v9264_v23  ;;  %v1083_v22 = vld [vmem:[%s10995_s9 + $0x1540] sm:$0xff] }
 0x218   : > { %5290 = vmatprep.subr.bf16.mxu0 %v9271_v25  ;;  %5536 = vmatprep.subr.bf16.mxu1 %v9273_v26  ;;  %v1087_v23 = vld [vmem:[%s10995_s9 + $0x1560] sm:$0xff]  ;;  %v1084_v25 = vld [vmem:[%s10995_s9 + $0x1548] sm:$0xff] }
 0x219   : > { %v1088_v26 = vld [vmem:[%s10995_s9 + $0x1568] sm:$0xff]  ;;  %v9327_v60 = vcombine.high %v1083_v22, %v1087_v23  ;;  %v9326_v36 = vcombine.low %v1083_v22, %v1087_v23 }
 0x21a   : > { %v9329_v31 = vcombine.high %v1084_v25, %v1088_v26  ;;  %v9328_v37 = vcombine.low %v1084_v25, %v1088_v26 }
 0x21b   : > { %5291 = vmatpush1.bf16.msra.mxu0 %v9270_v32  ;;  %5537 = vmatpush1.bf16.msra.mxu1 %v9272_v0  ;;  %v1091_v32 = vld [vmem:[%s10995_s9 + $0x1580] sm:$0xff] }
 0x21c   : > { %5292 = vmatprep.subr.bf16.mxu0 %v9279_v34  ;;  %5538 = vmatprep.subr.bf16.mxu1 %v9281_v35  ;;  %v1095_v0 = vld [vmem:[%s10995_s9 + $0x15a0] sm:$0xff]  ;;  %v1092_v34 = vld [vmem:[%s10995_s9 + $0x1588] sm:$0xff] }
 0x21d   : > { %v1096_v35 = vld [vmem:[%s10995_s9 + $0x15a8] sm:$0xff]  ;;  %v9335_v38 = vcombine.high %v1091_v32, %v1095_v0  ;;  %v9334_v46 = vcombine.low %v1091_v32, %v1095_v0 }
 0x21e   : > { %v9337_v40 = vcombine.high %v1092_v34, %v1096_v35  ;;  %v9336_v47 = vcombine.low %v1092_v34, %v1096_v35 }
 0x21f   : > { %5293 = vmatpush1.bf16.msra.mxu0 %v9278_v41  ;;  %5539 = vmatpush1.bf16.msra.mxu1 %v9280_v42  ;;  %v1099_v41 = vld [vmem:[%s10995_s9 + $0x15c0] sm:$0xff] }
 0x220   : > { %5303 = vmatprep.subr.bf16.mxu0 %v9287_v43  ;;  %5549 = vmatprep.subr.bf16.mxu1 %v9289_v44  ;;  %v1103_v42 = vld [vmem:[%s10995_s9 + $0x15e0] sm:$0xff]  ;;  %v1100_v43 = vld [vmem:[%s10995_s9 + $0x15c8] sm:$0xff] }
 0x221   : > { %v1104_v44 = vld [vmem:[%s10995_s9 + $0x15e8] sm:$0xff]  ;;  %v9343_v50 = vcombine.high %v1099_v41, %v1103_v42  ;;  %v9342_v57 = vcombine.low %v1099_v41, %v1103_v42 }
 0x222   : > { %5295 = vmatmul.mubr.bf16.vlgmr.msra.gmra.mrb[0].mxu0 %v11420_v48  ;;  %5541 = vmatmul.mubr.bf16.vlgmr.msra.gmra.mrb[0].mxu1 %v11420_v48  ;;  %v9345_v51 = vcombine.high %v1100_v43, %v1104_v44  ;;  %v9344_v58 = vcombine.low %v1100_v43, %v1104_v44 }
 0x223   : > { %5304 = vmatpush1.bf16.msra.mxu0 %v9286_v52  ;;  %5550 = vmatpush1.bf16.msra.mxu1 %v9288_v53  ;;  %v1107_v52 = vld [vmem:[%s10995_s9 + $0x1600] sm:$0xff] }
 0x224   : > { %5305 = vmatprep.subr.bf16.mxu0 %v9295_v55  ;;  %5551 = vmatprep.subr.bf16.mxu1 %v9297_v56  ;;  %v1111_v53 = vld [vmem:[%s10995_s9 + $0x1620] sm:$0xff]  ;;  %v1108_v55 = vld [vmem:[%s10995_s9 + $0x1608] sm:$0xff] }
 0x225   : > { %5335 = vmatprep.mubr.bf16.mxu0 %v11428_v61  ;;  %5581 = vmatprep.mubr.bf16.mxu1 %v11428_v61  ;;  %v1112_v56 = vld [vmem:[%s10995_s9 + $0x1628] sm:$0xff]  ;;  %v9351_v54 = vcombine.high %v1107_v52, %v1111_v53  ;;  %v9350_v3 = vcombine.low %v1107_v52, %v1111_v53 }
 0x226   : > { %v9353_v11 = vcombine.high %v1108_v55, %v1112_v56  ;;  %v9352_v4 = vcombine.low %v1108_v55, %v1112_v56 }
 0x227   : > { %5306 = vmatpush1.bf16.msra.mxu0 %v9294_v62  ;;  %5552 = vmatpush1.bf16.msra.mxu1 %v9296_v63  ;;  %v1115_v62 = vld [vmem:[%s10995_s9 + $0x1640] sm:$0xff] }
 0x228   : > { %5307 = vmatprep.subr.bf16.mxu0 %v9303_v1  ;;  %5553 = vmatprep.subr.bf16.mxu1 %v9305_v2  ;;  %v1119_v63 = vld [vmem:[%s10995_s9 + $0x1660] sm:$0xff]  ;;  %v1116_v1 = vld [vmem:[%s10995_s9 + $0x1648] sm:$0xff] }
 0x229   : > { %v1120_v2 = vld [vmem:[%s10995_s9 + $0x1668] sm:$0xff]  ;;  %v9359_v5 = vcombine.high %v1115_v62, %v1119_v63  ;;  %v9358_v13 = vcombine.low %v1115_v62, %v1119_v63 }
 0x22a   : > { %v9361_v30 = vcombine.high %v1116_v1, %v1120_v2  ;;  %v9360_v14 = vcombine.low %v1116_v1, %v1120_v2 }
 0x22b   : > { %5308 = vmatpush1.bf16.msra.mxu0 %v9302_v7  ;;  %5554 = vmatpush1.bf16.msra.mxu1 %v9304_v8  ;;  %v1123_v7 = vld [vmem:[%s10995_s9 + $0x1680] sm:$0xff] }
 0x22c   : > { %5309 = vmatprep.subr.bf16.mxu0 %v9311_v9  ;;  %5555 = vmatprep.subr.bf16.mxu1 %v9313_v12  ;;  %v1127_v8 = vld [vmem:[%s10995_s9 + $0x16a0] sm:$0xff]  ;;  %v1124_v9 = vld [vmem:[%s10995_s9 + $0x1688] sm:$0xff] }
 0x22d   : > { %v1128_v12 = vld [vmem:[%s10995_s9 + $0x16a8] sm:$0xff]  ;;  %v9367_v15 = vcombine.high %v1123_v7, %v1127_v8  ;;  %v9366_v22 = vcombine.low %v1123_v7, %v1127_v8 }
 0x22e   : > { %v9369_v16 = vcombine.high %v1124_v9, %v1128_v12  ;;  %v9368_v23 = vcombine.low %v1124_v9, %v1128_v12 }
 0x22f   : > { %5310 = vmatpush1.bf16.msra.mxu0 %v9310_v17  ;;  %5556 = vmatpush1.bf16.msra.mxu1 %v9312_v18  ;;  %v1131_v17 = vld [vmem:[%s10995_s9 + $0x16c0] sm:$0xff] }
 0x230   : > { %5311 = vmatprep.subr.bf16.mxu0 %v9319_v20  ;;  %5557 = vmatprep.subr.bf16.mxu1 %v9321_v21  ;;  %v1135_v18 = vld [vmem:[%s10995_s9 + $0x16e0] sm:$0xff]  ;;  %v1132_v20 = vld [vmem:[%s10995_s9 + $0x16c8] sm:$0xff] }
 0x231   : > { %v1136_v21 = vld [vmem:[%s10995_s9 + $0x16e8] sm:$0xff]  ;;  %v9375_v25 = vcombine.high %v1131_v17, %v1135_v18  ;;  %v9374_v32 = vcombine.low %v1131_v17, %v1135_v18  ;;  %v418_v17 = vld [vmem:[%s10995_s9 + $0x78] sm:$0xff] }
 0x232   : > { %v9377_v26 = vcombine.high %v1132_v20, %v1136_v21  ;;  %v9376_v0 = vcombine.low %v1132_v20, %v1136_v21 }
 0x233   : > { %5312 = vmatpush1.bf16.msra.mxu0 %v9318_v27  ;;  %5558 = vmatpush1.bf16.msra.mxu1 %v9320_v28  ;;  %v1139_v27 = vld [vmem:[%s10995_s9 + $0x1700] sm:$0xff] }
 0x234   : > { %5313 = vmatprep.subr.bf16.mxu0 %v9327_v60  ;;  %5559 = vmatprep.subr.bf16.mxu1 %v9329_v31  ;;  %v1143_v28 = vld [vmem:[%s10995_s9 + $0x1720] sm:$0xff]  ;;  %v1140_v60 = vld [vmem:[%s10995_s9 + $0x1708] sm:$0xff] }
 0x235   : > { %v1144_v31 = vld [vmem:[%s10995_s9 + $0x1728] sm:$0xff]  ;;  %v9383_v34 = vcombine.high %v1139_v27, %v1143_v28  ;;  %v9382_v41 = vcombine.low %v1139_v27, %v1143_v28  ;;  %v426_v27 = vld [vmem:[%s10995_s9 + $0xb8] sm:$0xff] }
 0x236   : > { %v9385_v35 = vcombine.high %v1140_v60, %v1144_v31  ;;  %v9384_v42 = vcombine.low %v1140_v60, %v1144_v31 }
 0x237   : > { %5314 = vmatpush1.bf16.msra.mxu0 %v9326_v36  ;;  %5560 = vmatpush1.bf16.msra.mxu1 %v9328_v37  ;;  %v1147_v36 = vld [vmem:[%s10995_s9 + $0x1740] sm:$0xff] }
 0x238   : > { %5315 = vmatprep.subr.bf16.mxu0 %v9335_v38  ;;  %5561 = vmatprep.subr.bf16.mxu1 %v9337_v40  ;;  %v1151_v37 = vld [vmem:[%s10995_s9 + $0x1760] sm:$0xff]  ;;  %v1148_v38 = vld [vmem:[%s10995_s9 + $0x1748] sm:$0xff] }
 0x239   : > { %v1152_v40 = vld [vmem:[%s10995_s9 + $0x1768] sm:$0xff]  ;;  %v9391_v43 = vcombine.high %v1147_v36, %v1151_v37  ;;  %v9390_v52 = vcombine.low %v1147_v36, %v1151_v37  ;;  %v434_v36 = vld [vmem:[%s10995_s9 + $0xf8] sm:$0xff] }
 0x23a   : > { %v9393_v44 = vcombine.high %v1148_v38, %v1152_v40  ;;  %v9392_v53 = vcombine.low %v1148_v38, %v1152_v40 }
 0x23b   : > { %5316 = vmatpush1.bf16.msra.mxu0 %v9334_v46  ;;  %5562 = vmatpush1.bf16.msra.mxu1 %v9336_v47  ;;  %v1155_v46 = vld [vmem:[%s10995_s9 + $0x1780] sm:$0xff] }
 0x23c   : > { %5317 = vmatprep.subr.bf16.mxu0 %v9343_v50  ;;  %5563 = vmatprep.subr.bf16.mxu1 %v9345_v51  ;;  %v1159_v47 = vld [vmem:[%s10995_s9 + $0x17a0] sm:$0xff]  ;;  %v1156_v50 = vld [vmem:[%s10995_s9 + $0x1788] sm:$0xff] }
 0x23d   : > { %v1160_v51 = vld [vmem:[%s10995_s9 + $0x17a8] sm:$0xff]  ;;  %v9399_v55 = vcombine.high %v1155_v46, %v1159_v47  ;;  %v9398_v62 = vcombine.low %v1155_v46, %v1159_v47  ;;  %v442_v46 = vld [vmem:[%s10995_s9 + $0x138] sm:$0xff] }
 0x23e   : > { %v9401_v56 = vcombine.high %v1156_v50, %v1160_v51  ;;  %v9400_v63 = vcombine.low %v1156_v50, %v1160_v51 }
 0x23f   : > { %5318 = vmatpush1.bf16.msra.mxu0 %v9342_v57  ;;  %5564 = vmatpush1.bf16.msra.mxu1 %v9344_v58  ;;  %v1163_v57 = vld [vmem:[%s10995_s9 + $0x17c0] sm:$0xff] }
 0x240   : > { %5319 = vmatprep.subr.bf16.mxu0 %v9351_v54  ;;  %5565 = vmatprep.subr.bf16.mxu1 %v9353_v11  ;;  %v1167_v58 = vld [vmem:[%s10995_s9 + $0x17e0] sm:$0xff]  ;;  %v1164_v54 = vld [vmem:[%s10995_s9 + $0x17c8] sm:$0xff] }
 0x241   : > { %v1168_v11 = vld [vmem:[%s10995_s9 + $0x17e8] sm:$0xff]  ;;  %v9407_v1 = vcombine.high %v1163_v57, %v1167_v58  ;;  %v9406_v7 = vcombine.low %v1163_v57, %v1167_v58 }
 0x242   : > { %v9409_v2 = vcombine.high %v1164_v54, %v1168_v11  ;;  %v9408_v8 = vcombine.low %v1164_v54, %v1168_v11 }
 0x243   : > { %5320 = vmatpush1.bf16.msra.mxu0 %v9350_v3  ;;  %5566 = vmatpush1.bf16.msra.mxu1 %v9352_v4  ;;  %v405_v3 = vld [vmem:[%s10995_s9 + $0x10] sm:$0xff] }
 0x244   : > { %5321 = vmatprep.subr.bf16.mxu0 %v9359_v5  ;;  %5567 = vmatprep.subr.bf16.mxu1 %v9361_v30  ;;  %v409_v4 = vld [vmem:[%s10995_s9 + $0x30] sm:$0xff]  ;;  %v406_v5 = vld [vmem:[%s10995_s9 + $0x18] sm:$0xff] }
 0x245   : > { %v410_v30 = vld [vmem:[%s10995_s9 + $0x38] sm:$0xff]  ;;  %v8651_v9 = vcombine.high %v405_v3, %v409_v4  ;;  %v8650_v18 = vcombine.low %v405_v3, %v409_v4 }
 0x246   : > { %v8653_v12 = vcombine.high %v406_v5, %v410_v30  ;;  %v8652_v20 = vcombine.low %v406_v5, %v410_v30 }
 0x247   : > { %5322 = vmatpush1.bf16.msra.mxu0 %v9358_v13  ;;  %5568 = vmatpush1.bf16.msra.mxu1 %v9360_v14  ;;  %v413_v13 = vld [vmem:[%s10995_s9 + $0x50] sm:$0xff] }
 0x248   : > { %5323 = vmatprep.subr.bf16.mxu0 %v9367_v15  ;;  %5569 = vmatprep.subr.bf16.mxu1 %v9369_v16  ;;  %v417_v14 = vld [vmem:[%s10995_s9 + $0x70] sm:$0xff]  ;;  %v11496_v15 = vcombine.high %v11420_v48, %v11420_v48  ;;  %v414_v16 = vld [vmem:[%s10995_s9 + $0x58] sm:$0xff] }
 0x249   : > { %v8659_v21 = vcombine.high %v413_v13, %v417_v14  ;;  %v8658_v28 = vcombine.low %v413_v13, %v417_v14  ;;  %v8660_v60 = vcombine.low %v414_v16, %v418_v17 }
 0x24b   : > { %5324 = vmatpush1.bf16.msra.mxu0 %v9366_v22  ;;  %5570 = vmatpush1.bf16.msra.mxu1 %v9368_v23  ;;  %v8661_v22 = vcombine.high %v414_v16, %v418_v17  ;;  %v421_v23 = vld [vmem:[%s10995_s9 + $0x90] sm:$0xff] }
 0x24c   : > { %5325 = vmatprep.subr.bf16.mxu0 %v9375_v25  ;;  %5571 = vmatprep.subr.bf16.mxu1 %v9377_v26  ;;  %v425_v25 = vld [vmem:[%s10995_s9 + $0xb0] sm:$0xff]  ;;  %v422_v26 = vld [vmem:[%s10995_s9 + $0x98] sm:$0xff] }
 0x24d   : > { %v8667_v31 = vcombine.high %v421_v23, %v425_v25  ;;  %v8666_v37 = vcombine.low %v421_v23, %v425_v25  ;;  %v8668_v38 = vcombine.low %v422_v26, %v426_v27 }
 0x24f   : > { %5326 = vmatpush1.bf16.msra.mxu0 %v9374_v32  ;;  %5572 = vmatpush1.bf16.msra.mxu1 %v9376_v0  ;;  %v8669_v32 = vcombine.high %v422_v26, %v426_v27  ;;  %v429_v0 = vld [vmem:[%s10995_s9 + $0xd0] sm:$0xff] }
 0x250   : > { %5327 = vmatprep.subr.bf16.mxu0 %v9383_v34  ;;  %5573 = vmatprep.subr.bf16.mxu1 %v9385_v35  ;;  %v433_v34 = vld [vmem:[%s10995_s9 + $0xf0] sm:$0xff]  ;;  %v430_v35 = vld [vmem:[%s10995_s9 + $0xd8] sm:$0xff] }
 0x251   : > { %v8675_v40 = vcombine.high %v429_v0, %v433_v34  ;;  %v8674_v47 = vcombine.low %v429_v0, %v433_v34 }
 0x253   : > { %5328 = vmatpush1.bf16.msra.mxu0 %v9382_v41  ;;  %5574 = vmatpush1.bf16.msra.mxu1 %v9384_v42  ;;  %v8677_v41 = vcombine.high %v430_v35, %v434_v36  ;;  %v437_v42 = vld [vmem:[%s10995_s9 + $0x110] sm:$0xff] }
 0x254   : > { %5329 = vmatprep.subr.bf16.mxu0 %v9391_v43  ;;  %5575 = vmatprep.subr.bf16.mxu1 %v9393_v44  ;;  %v441_v43 = vld [vmem:[%s10995_s9 + $0x130] sm:$0xff]  ;;  %v438_v44 = vld [vmem:[%s10995_s9 + $0x118] sm:$0xff] }
 0x255   : > { %v8683_v50 = vcombine.high %v437_v42, %v441_v43  ;;  %v8685_v51 = vcombine.high %v438_v44, %v442_v46  ;;  %v8682_v57 = vcombine.low %v437_v42, %v441_v43  ;;  %v8684_v58 = vcombine.low %v438_v44, %v442_v46 }
 0x257   : > { %5330 = vmatpush1.bf16.msra.mxu0 %v9390_v52  ;;  %5576 = vmatpush1.bf16.msra.mxu1 %v9392_v53  ;;  %v445_v52 = vld [vmem:[%s10995_s9 + $0x150] sm:$0xff] }
 0x258   : > { %5331 = vmatprep.subr.bf16.mxu0 %v9399_v55  ;;  %5577 = vmatprep.subr.bf16.mxu1 %v9401_v56  ;;  %v449_v53 = vld [vmem:[%s10995_s9 + $0x170] sm:$0xff]  ;;  %v446_v55 = vld [vmem:[%s10995_s9 + $0x158] sm:$0xff] }
 0x259   : > { %v450_v56 = vld [vmem:[%s10995_s9 + $0x178] sm:$0xff]  ;;  %v8691_v54 = vcombine.high %v445_v52, %v449_v53  ;;  %v8690_v3 = vcombine.low %v445_v52, %v449_v53 }
 0x25a   : > { %v8693_v11 = vcombine.high %v446_v55, %v450_v56  ;;  %v8692_v4 = vcombine.low %v446_v55, %v450_v56 }
 0x25b   : > { %5332 = vmatpush1.bf16.msra.mxu0 %v9398_v62  ;;  %5578 = vmatpush1.bf16.msra.mxu1 %v9400_v63  ;;  %v453_v62 = vld [vmem:[%s10995_s9 + $0x190] sm:$0xff] }
 0x25c   : > { %5333 = vmatprep.subr.bf16.mxu0 %v9407_v1  ;;  %5579 = vmatprep.subr.bf16.mxu1 %v9409_v2  ;;  %v457_v63 = vld [vmem:[%s10995_s9 + $0x1b0] sm:$0xff]  ;;  %v454_v1 = vld [vmem:[%s10995_s9 + $0x198] sm:$0xff] }
 0x25d   : > { %v458_v2 = vld [vmem:[%s10995_s9 + $0x1b8] sm:$0xff]  ;;  %v8699_v5 = vcombine.high %v453_v62, %v457_v63  ;;  %v8698_v13 = vcombine.low %v453_v62, %v457_v63 }
 0x25e   : > { %v8701_v30 = vcombine.high %v454_v1, %v458_v2  ;;  %v8700_v14 = vcombine.low %v454_v1, %v458_v2 }
 0x25f   : > { %5334 = vmatpush1.bf16.msra.mxu0 %v9406_v7  ;;  %5580 = vmatpush1.bf16.msra.mxu1 %v9408_v8  ;;  %v461_v7 = vld [vmem:[%s10995_s9 + $0x1d0] sm:$0xff] }
 0x260   : > { %5590 = vmatprep.subr.bf16.mxu0 %v8651_v9  ;;  %5836 = vmatprep.subr.bf16.mxu1 %v8653_v12  ;;  %v465_v8 = vld [vmem:[%s10995_s9 + $0x1f0] sm:$0xff]  ;;  %v462_v9 = vld [vmem:[%s10995_s9 + $0x1d8] sm:$0xff] }
 0x261   : > { %v466_v12 = vld [vmem:[%s10995_s9 + $0x1f8] sm:$0xff]  ;;  %v8707_v16 = vcombine.high %v461_v7, %v465_v8  ;;  %v8706_v23 = vcombine.low %v461_v7, %v465_v8 }
 0x262   : > { %5336 = vmatmul.mubr.bf16.vlgmr.msra.gmra.mrb[0].mxu0 %v11496_v15  ;;  %5582 = vmatmul.mubr.bf16.vlgmr.msra.gmra.mrb[0].mxu1 %v11496_v15  ;;  %v8709_v17 = vcombine.high %v462_v9, %v466_v12  ;;  %v8708_v25 = vcombine.low %v462_v9, %v466_v12 }
 0x263   : > { %5591 = vmatpush1.bf16.msra.mxu0 %v8650_v18  ;;  %5837 = vmatpush1.bf16.msra.mxu1 %v8652_v20  ;;  %v469_v18 = vld [vmem:[%s10995_s9 + $0x210] sm:$0xff] }
 0x264   : > { %5592 = vmatprep.subr.bf16.mxu0 %v8659_v21  ;;  %5838 = vmatprep.subr.bf16.mxu1 %v8661_v22  ;;  %v473_v20 = vld [vmem:[%s10995_s9 + $0x230] sm:$0xff]  ;;  %v470_v21 = vld [vmem:[%s10995_s9 + $0x218] sm:$0xff] }
 0x265   : > { %5622 = vmatprep.mubr.bf16.mxu0 %v11064_v10  ;;  %5868 = vmatprep.mubr.bf16.mxu1 %v11064_v10  ;;  %v8676_v10 = vcombine.low %v430_v35, %v434_v36  ;;  %v474_v22 = vld [vmem:[%s10995_s9 + $0x238] sm:$0xff]  ;;  %v8715_v26 = vcombine.high %v469_v18, %v473_v20  ;;  %v8714_v0 = vcombine.low %v469_v18, %v473_v20 }
 0x266   : > { %v8717_v27 = vcombine.high %v470_v21, %v474_v22  ;;  %v8716_v34 = vcombine.low %v470_v21, %v474_v22 }
 0x267   : > { %5593 = vmatpush1.bf16.msra.mxu0 %v8658_v28  ;;  %5839 = vmatpush1.bf16.msra.mxu1 %v8660_v60  ;;  %v477_v28 = vld [vmem:[%s10995_s9 + $0x250] sm:$0xff] }
 0x268   : > { %5594 = vmatprep.subr.bf16.mxu0 %v8667_v31  ;;  %5840 = vmatprep.subr.bf16.mxu1 %v8669_v32  ;;  %v481_v60 = vld [vmem:[%s10995_s9 + $0x270] sm:$0xff]  ;;  %v478_v31 = vld [vmem:[%s10995_s9 + $0x258] sm:$0xff] }
 0x269   : > { %v482_v32 = vld [vmem:[%s10995_s9 + $0x278] sm:$0xff]  ;;  %v8723_v35 = vcombine.high %v477_v28, %v481_v60  ;;  %v8722_v42 = vcombine.low %v477_v28, %v481_v60 }
 0x26a   : > { %v8725_v36 = vcombine.high %v478_v31, %v482_v32  ;;  %v8724_v43 = vcombine.low %v478_v31, %v482_v32 }
 0x26b   : > { %5595 = vmatpush1.bf16.msra.mxu0 %v8666_v37  ;;  %5841 = vmatpush1.bf16.msra.mxu1 %v8668_v38  ;;  %v485_v37 = vld [vmem:[%s10995_s9 + $0x290] sm:$0xff] }
 0x26c   : > { %5596 = vmatprep.subr.bf16.mxu0 %v8675_v40  ;;  %5842 = vmatprep.subr.bf16.mxu1 %v8677_v41  ;;  %v489_v38 = vld [vmem:[%s10995_s9 + $0x2b0] sm:$0xff]  ;;  %v486_v40 = vld [vmem:[%s10995_s9 + $0x298] sm:$0xff] }
 0x26d   : > { %v490_v41 = vld [vmem:[%s10995_s9 + $0x2b8] sm:$0xff]  ;;  %v8731_v44 = vcombine.high %v485_v37, %v489_v38  ;;  %v8730_v52 = vcombine.low %v485_v37, %v489_v38 }
 0x26e   : > { %v8733_v46 = vcombine.high %v486_v40, %v490_v41  ;;  %v8732_v53 = vcombine.low %v486_v40, %v490_v41 }
 0x26f   : > { %5597 = vmatpush1.bf16.msra.mxu0 %v8674_v47  ;;  %5843 = vmatpush1.bf16.msra.mxu1 %v8676_v10  ;;  %v493_v47 = vld [vmem:[%s10995_s9 + $0x2d0] sm:$0xff] }
 0x270   : > { %5598 = vmatprep.subr.bf16.mxu0 %v8683_v50  ;;  %5844 = vmatprep.subr.bf16.mxu1 %v8685_v51  ;;  %v497_v10 = vld [vmem:[%s10995_s9 + $0x2f0] sm:$0xff]  ;;  %v494_v50 = vld [vmem:[%s10995_s9 + $0x2d8] sm:$0xff] }
 0x271   : > { %v498_v51 = vld [vmem:[%s10995_s9 + $0x2f8] sm:$0xff]  ;;  %v8739_v55 = vcombine.high %v493_v47, %v497_v10  ;;  %v8738_v62 = vcombine.low %v493_v47, %v497_v10 }
 0x272   : > { %v8741_v56 = vcombine.high %v494_v50, %v498_v51  ;;  %v8740_v63 = vcombine.low %v494_v50, %v498_v51 }
 0x273   : > { %5599 = vmatpush1.bf16.msra.mxu0 %v8682_v57  ;;  %5845 = vmatpush1.bf16.msra.mxu1 %v8684_v58  ;;  %v501_v57 = vld [vmem:[%s10995_s9 + $0x310] sm:$0xff] }
 0x274   : > { %5600 = vmatprep.subr.bf16.mxu0 %v8691_v54  ;;  %5846 = vmatprep.subr.bf16.mxu1 %v8693_v11  ;;  %v505_v58 = vld [vmem:[%s10995_s9 + $0x330] sm:$0xff]  ;;  %v502_v54 = vld [vmem:[%s10995_s9 + $0x318] sm:$0xff] }
 0x275   : > { %v506_v11 = vld [vmem:[%s10995_s9 + $0x338] sm:$0xff]  ;;  %v8747_v1 = vcombine.high %v501_v57, %v505_v58  ;;  %v8746_v7 = vcombine.low %v501_v57, %v505_v58 }
 0x276   : > { %v8749_v2 = vcombine.high %v502_v54, %v506_v11  ;;  %v8748_v8 = vcombine.low %v502_v54, %v506_v11 }
 0x277   : > { %5601 = vmatpush1.bf16.msra.mxu0 %v8690_v3  ;;  %5847 = vmatpush1.bf16.msra.mxu1 %v8692_v4  ;;  %v509_v3 = vld [vmem:[%s10995_s9 + $0x350] sm:$0xff] }
 0x278   : > { %5602 = vmatprep.subr.bf16.mxu0 %v8699_v5  ;;  %5848 = vmatprep.subr.bf16.mxu1 %v8701_v30  ;;  %v513_v4 = vld [vmem:[%s10995_s9 + $0x370] sm:$0xff]  ;;  %v510_v5 = vld [vmem:[%s10995_s9 + $0x358] sm:$0xff] }
 0x279   : > { %v514_v30 = vld [vmem:[%s10995_s9 + $0x378] sm:$0xff]  ;;  %v8755_v9 = vcombine.high %v509_v3, %v513_v4  ;;  %v8754_v18 = vcombine.low %v509_v3, %v513_v4 }
 0x27a   : > { %v8757_v12 = vcombine.high %v510_v5, %v514_v30  ;;  %v8756_v20 = vcombine.low %v510_v5, %v514_v30  ;;  %v565_v30 = vld [vmem:[%s10995_s9 + $0x510] sm:$0xff] }
 0x27b   : > { %5603 = vmatpush1.bf16.msra.mxu0 %v8698_v13  ;;  %5849 = vmatpush1.bf16.msra.mxu1 %v8700_v14  ;;  %v517_v13 = vld [vmem:[%s10995_s9 + $0x390] sm:$0xff] }
 0x27c   : > { %5604 = vmatprep.subr.bf16.mxu0 %v8707_v16  ;;  %5850 = vmatprep.subr.bf16.mxu1 %v8709_v17  ;;  %v521_v14 = vld [vmem:[%s10995_s9 + $0x3b0] sm:$0xff]  ;;  %v518_v16 = vld [vmem:[%s10995_s9 + $0x398] sm:$0xff] }
 0x27d   : > { %v522_v17 = vld [vmem:[%s10995_s9 + $0x3b8] sm:$0xff]  ;;  %v8763_v21 = vcombine.high %v517_v13, %v521_v14  ;;  %v8762_v28 = vcombine.low %v517_v13, %v521_v14 }
 0x27e   : > { %v8765_v22 = vcombine.high %v518_v16, %v522_v17  ;;  %v8764_v60 = vcombine.low %v518_v16, %v522_v17  ;;  %v573_v16 = vld [vmem:[%s10995_s9 + $0x550] sm:$0xff] }
 0x27f   : > { %5605 = vmatpush1.bf16.msra.mxu0 %v8706_v23  ;;  %5851 = vmatpush1.bf16.msra.mxu1 %v8708_v25  ;;  %v525_v23 = vld [vmem:[%s10995_s9 + $0x3d0] sm:$0xff] }
 0x280   : > { %5606 = vmatprep.subr.bf16.mxu0 %v8715_v26  ;;  %5852 = vmatprep.subr.bf16.mxu1 %v8717_v27  ;;  %v529_v25 = vld [vmem:[%s10995_s9 + $0x3f0] sm:$0xff]  ;;  %v526_v26 = vld [vmem:[%s10995_s9 + $0x3d8] sm:$0xff] }
 0x281   : > { %v530_v27 = vld [vmem:[%s10995_s9 + $0x3f8] sm:$0xff]  ;;  %v8771_v31 = vcombine.high %v525_v23, %v529_v25  ;;  %v8770_v37 = vcombine.low %v525_v23, %v529_v25  ;;  %v577_v17 = vld [vmem:[%s10995_s9 + $0x570] sm:$0xff] }
 0x282   : > { %v8773_v32 = vcombine.high %v526_v26, %v530_v27  ;;  %v8772_v38 = vcombine.low %v526_v26, %v530_v27  ;;  %v8819_v23 = vcombine.high %v573_v16, %v577_v17  ;;  %v581_v26 = vld [vmem:[%s10995_s9 + $0x590] sm:$0xff] }
 0x283   : > { %5607 = vmatpush1.bf16.msra.mxu0 %v8714_v0  ;;  %5853 = vmatpush1.bf16.msra.mxu1 %v8716_v34  ;;  %v533_v0 = vld [vmem:[%s10995_s9 + $0x410] sm:$0xff] }
 0x284   : > { %5608 = vmatprep.subr.bf16.mxu0 %v8723_v35  ;;  %5854 = vmatprep.subr.bf16.mxu1 %v8725_v36  ;;  %v537_v34 = vld [vmem:[%s10995_s9 + $0x430] sm:$0xff]  ;;  %v534_v35 = vld [vmem:[%s10995_s9 + $0x418] sm:$0xff] }
 0x285   : > { %v538_v36 = vld [vmem:[%s10995_s9 + $0x438] sm:$0xff]  ;;  %v8779_v40 = vcombine.high %v533_v0, %v537_v34  ;;  %v8778_v47 = vcombine.low %v533_v0, %v537_v34  ;;  %v585_v27 = vld [vmem:[%s10995_s9 + $0x5b0] sm:$0xff] }
 0x286   : > { %v8781_v41 = vcombine.high %v534_v35, %v538_v36  ;;  %v8780_v10 = vcombine.low %v534_v35, %v538_v36  ;;  %v8827_v0 = vcombine.high %v581_v26, %v585_v27  ;;  %v589_v35 = vld [vmem:[%s10995_s9 + $0x5d0] sm:$0xff] }
 0x287   : > { %5609 = vmatpush1.bf16.msra.mxu0 %v8722_v42  ;;  %5855 = vmatpush1.bf16.msra.mxu1 %v8724_v43  ;;  %v541_v42 = vld [vmem:[%s10995_s9 + $0x450] sm:$0xff] }
 0x288   : > { %5610 = vmatprep.subr.bf16.mxu0 %v8731_v44  ;;  %5856 = vmatprep.subr.bf16.mxu1 %v8733_v46  ;;  %v545_v43 = vld [vmem:[%s10995_s9 + $0x470] sm:$0xff]  ;;  %v542_v44 = vld [vmem:[%s10995_s9 + $0x458] sm:$0xff] }
 0x289   : > { %v546_v46 = vld [vmem:[%s10995_s9 + $0x478] sm:$0xff]  ;;  %v8787_v50 = vcombine.high %v541_v42, %v545_v43  ;;  %v8786_v57 = vcombine.low %v541_v42, %v545_v43  ;;  %v593_v36 = vld [vmem:[%s10995_s9 + $0x5f0] sm:$0xff] }
 0x28a   : > { %v8789_v51 = vcombine.high %v542_v44, %v546_v46  ;;  %v8788_v58 = vcombine.low %v542_v44, %v546_v46  ;;  %v8835_v42 = vcombine.high %v589_v35, %v593_v36  ;;  %v597_v44 = vld [vmem:[%s10995_s9 + $0x610] sm:$0xff] }
 0x28b   : > { %5611 = vmatpush1.bf16.msra.mxu0 %v8730_v52  ;;  %5857 = vmatpush1.bf16.msra.mxu1 %v8732_v53  ;;  %v549_v52 = vld [vmem:[%s10995_s9 + $0x490] sm:$0xff] }
 0x28c   : > { %5612 = vmatprep.subr.bf16.mxu0 %v8739_v55  ;;  %5858 = vmatprep.subr.bf16.mxu1 %v8741_v56  ;;  %v553_v53 = vld [vmem:[%s10995_s9 + $0x4b0] sm:$0xff]  ;;  %v550_v55 = vld [vmem:[%s10995_s9 + $0x498] sm:$0xff] }
 0x28d   : > { %v554_v56 = vld [vmem:[%s10995_s9 + $0x4b8] sm:$0xff]  ;;  %v8795_v54 = vcombine.high %v549_v52, %v553_v53  ;;  %v601_v46 = vld [vmem:[%s10995_s9 + $0x630] sm:$0xff] }
 0x28e   : > { %v8797_v11 = vcombine.high %v550_v55, %v554_v56  ;;  %v8796_v3 = vcombine.low %v550_v55, %v554_v56  ;;  %v605_v55 = vld [vmem:[%s10995_s9 + $0x650] sm:$0xff] }
 0x28f   : > { %5613 = vmatpush1.bf16.msra.mxu0 %v8738_v62  ;;  %5859 = vmatpush1.bf16.msra.mxu1 %v8740_v63  ;;  %v557_v62 = vld [vmem:[%s10995_s9 + $0x4d0] sm:$0xff] }
 0x290   : > { %5614 = vmatprep.subr.bf16.mxu0 %v8747_v1  ;;  %5860 = vmatprep.subr.bf16.mxu1 %v8749_v2  ;;  %v561_v63 = vld [vmem:[%s10995_s9 + $0x4f0] sm:$0xff]  ;;  %v558_v1 = vld [vmem:[%s10995_s9 + $0x4d8] sm:$0xff] }
 0x291   : > { %v562_v2 = vld [vmem:[%s10995_s9 + $0x4f8] sm:$0xff]  ;;  %v8803_v4 = vcombine.high %v557_v62, %v561_v63  ;;  %v609_v56 = vld [vmem:[%s10995_s9 + $0x670] sm:$0xff] }
 0x292   : > { %v8805_v5 = vcombine.high %v558_v1, %v562_v2 }
 0x293   : > { %5615 = vmatpush1.bf16.msra.mxu0 %v8746_v7  ;;  %5861 = vmatpush1.bf16.msra.mxu1 %v8748_v8  ;;  %v569_v7 = vld [vmem:[%s10995_s9 + $0x530] sm:$0xff]  ;;  %v566_v8 = vld [vmem:[%s10995_s9 + $0x518] sm:$0xff] }
 0x294   : > { %5616 = vmatprep.subr.bf16.mxu0 %v8755_v9  ;;  %5862 = vmatprep.subr.bf16.mxu1 %v8757_v12  ;;  %v570_v9 = vld [vmem:[%s10995_s9 + $0x538] sm:$0xff]  ;;  %v8802_v12 = vcombine.low %v557_v62, %v561_v63  ;;  %v8811_v13 = vcombine.high %v565_v30, %v569_v7  ;;  %v8851_v62 = vcombine.high %v605_v55, %v609_v56 }
 0x295   : > { %v8813_v14 = vcombine.high %v566_v8, %v570_v9 }
 0x297   : > { %5617 = vmatpush1.bf16.msra.mxu0 %v8754_v18  ;;  %5863 = vmatpush1.bf16.msra.mxu1 %v8756_v20  ;;  %v574_v18 = vld [vmem:[%s10995_s9 + $0x558] sm:$0xff] }
 0x298   : > { %5618 = vmatprep.subr.bf16.mxu0 %v8763_v21  ;;  %5864 = vmatprep.subr.bf16.mxu1 %v8765_v22  ;;  %v578_v20 = vld [vmem:[%s10995_s9 + $0x578] sm:$0xff]  ;;  %v8810_v21 = vcombine.low %v565_v30, %v569_v7  ;;  %v8812_v22 = vcombine.low %v566_v8, %v570_v9  ;;  %v621_v8 = vld [vmem:[%s10995_s9 + $0x6d0] sm:$0xff] }
 0x299   : > { %v8821_v25 = vcombine.high %v574_v18, %v578_v20  ;;  %v625_v9 = vld [vmem:[%s10995_s9 + $0x6f0] sm:$0xff] }
 0x29b   : > { %5619 = vmatpush1.bf16.msra.mxu0 %v8762_v28  ;;  %5865 = vmatpush1.bf16.msra.mxu1 %v8764_v60  ;;  %v582_v28 = vld [vmem:[%s10995_s9 + $0x598] sm:$0xff] }
 0x29c   : > { %5620 = vmatprep.subr.bf16.mxu0 %v8771_v31  ;;  %5866 = vmatprep.subr.bf16.mxu1 %v8773_v32  ;;  %v586_v60 = vld [vmem:[%s10995_s9 + $0x5b8] sm:$0xff]  ;;  %v8818_v31 = vcombine.low %v573_v16, %v577_v17  ;;  %v8820_v32 = vcombine.low %v574_v18, %v578_v20  ;;  %v8867_v16 = vcombine.high %v621_v8, %v625_v9  ;;  %v629_v18 = vld [vmem:[%s10995_s9 + $0x710] sm:$0xff] }
 0x29d   : > { %v8829_v34 = vcombine.high %v582_v28, %v586_v60  ;;  %v633_v20 = vld [vmem:[%s10995_s9 + $0x730] sm:$0xff] }
 0x29f   : > { %5621 = vmatpush1.bf16.msra.mxu0 %v8770_v37  ;;  %5867 = vmatpush1.bf16.msra.mxu1 %v8772_v38  ;;  %v590_v37 = vld [vmem:[%s10995_s9 + $0x5d8] sm:$0xff] }
 0x2a0   : > { %5631 = vmatprep.subr.bf16.mxu0 %v8779_v40  ;;  %5877 = vmatprep.subr.bf16.mxu1 %v8781_v41  ;;  %v594_v38 = vld [vmem:[%s10995_s9 + $0x5f8] sm:$0xff]  ;;  %v8826_v40 = vcombine.low %v581_v26, %v585_v27  ;;  %v8828_v41 = vcombine.low %v582_v28, %v586_v60  ;;  %v8875_v26 = vcombine.high %v629_v18, %v633_v20  ;;  %v637_v28 = vld [vmem:[%s10995_s9 + $0x750] sm:$0xff] }
 0x2a1   : > { %v8837_v43 = vcombine.high %v590_v37, %v594_v38  ;;  %v641_v60 = vld [vmem:[%s10995_s9 + $0x770] sm:$0xff] }
 0x2a2   : > { %5623 = vmatmul.mubr.bf16.vlgmr.msra.gmra.mrb[4].mxu0 %v11106_v24  ;;  %5869 = vmatmul.mubr.bf16.vlgmr.msra.gmra.mrb[4].mxu1 %v11106_v24  ;;  %v8794_v24 = vcombine.low %v549_v52, %v553_v53  ;;  %v8843_v52 = vcombine.high %v597_v44, %v601_v46 }
 0x2a3   : > { %5632 = vmatpush1.bf16.msra.mxu0 %v8778_v47  ;;  %5878 = vmatpush1.bf16.msra.mxu1 %v8780_v10  ;;  %v598_v47 = vld [vmem:[%s10995_s9 + $0x618] sm:$0xff] }
 0x2a4   : > { %5633 = vmatprep.subr.bf16.mxu0 %v8787_v50  ;;  %5879 = vmatprep.subr.bf16.mxu1 %v8789_v51  ;;  %v602_v10 = vld [vmem:[%s10995_s9 + $0x638] sm:$0xff]  ;;  %v8834_v50 = vcombine.low %v589_v35, %v593_v36  ;;  %v8836_v51 = vcombine.low %v590_v37, %v594_v38  ;;  %v8883_v35 = vcombine.high %v637_v28, %v641_v60  ;;  %v645_v37 = vld [vmem:[%s10995_s9 + $0x790] sm:$0xff] }
 0x2a5   : > { %5663 = vmatprep.mubr.bf16.mxu0 %v11114_v33  ;;  %5909 = vmatprep.mubr.bf16.mxu1 %v11114_v33  ;;  %v8804_v33 = vcombine.low %v558_v1, %v562_v2  ;;  %v8845_v53 = vcombine.high %v598_v47, %v602_v10  ;;  %v613_v1 = vld [vmem:[%s10995_s9 + $0x690] sm:$0xff] }
 0x2a6   : > { %v617_v2 = vld [vmem:[%s10995_s9 + $0x6b0] sm:$0xff] }
 0x2a7   : > { %5634 = vmatpush1.bf16.msra.mxu0 %v8786_v57  ;;  %5880 = vmatpush1.bf16.msra.mxu1 %v8788_v58  ;;  %v606_v57 = vld [vmem:[%s10995_s9 + $0x658] sm:$0xff]  ;;  %v8859_v30 = vcombine.high %v613_v1, %v617_v2  ;;  %v649_v38 = vld [vmem:[%s10995_s9 + $0x7b0] sm:$0xff] }
 0x2a8   : > { %5635 = vmatprep.subr.bf16.mxu0 %v8795_v54  ;;  %5881 = vmatprep.subr.bf16.mxu1 %v8797_v11  ;;  %v610_v58 = vld [vmem:[%s10995_s9 + $0x678] sm:$0xff]  ;;  %v8842_v54 = vcombine.low %v597_v44, %v601_v46  ;;  %v8844_v11 = vcombine.low %v598_v47, %v602_v10  ;;  %v8891_v44 = vcombine.high %v645_v37, %v649_v38  ;;  %v653_v47 = vld [vmem:[%s10995_s9 + $0x7d0] sm:$0xff] }
 0x2a9   : > { %v8853_v63 = vcombine.high %v606_v57, %v610_v58  ;;  %v657_v10 = vld [vmem:[%s10995_s9 + $0x7f0] sm:$0xff] }
 0x2ab   : > { %5636 = vmatpush1.bf16.msra.mxu0 %v8794_v24  ;;  %5882 = vmatpush1.bf16.msra.mxu1 %v8796_v3  ;;  %v614_v24 = vld [vmem:[%s10995_s9 + $0x698] sm:$0xff] }
 0x2ac   : > { %5637 = vmatprep.subr.bf16.mxu0 %v8803_v4  ;;  %5883 = vmatprep.subr.bf16.mxu1 %v8805_v5  ;;  %v618_v3 = vld [vmem:[%s10995_s9 + $0x6b8] sm:$0xff]  ;;  %v8850_v4 = vcombine.low %v605_v55, %v609_v56  ;;  %v8852_v5 = vcombine.low %v606_v57, %v610_v58  ;;  %v8899_v55 = vcombine.high %v653_v47, %v657_v10  ;;  %v661_v57 = vld [vmem:[%s10995_s9 + $0x810] sm:$0xff] }
 0x2ad   : > { %v8861_v7 = vcombine.high %v614_v24, %v618_v3  ;;  %v665_v58 = vld [vmem:[%s10995_s9 + $0x830] sm:$0xff] }
 0x2af   : > { %5638 = vmatpush1.bf16.msra.mxu0 %v8802_v12  ;;  %5884 = vmatpush1.bf16.msra.mxu1 %v8804_v33  ;;  %v622_v12 = vld [vmem:[%s10995_s9 + $0x6d8] sm:$0xff] }
 0x2b0   : > { %5639 = vmatprep.subr.bf16.mxu0 %v8811_v13  ;;  %5885 = vmatprep.subr.bf16.mxu1 %v8813_v14  ;;  %v626_v33 = vld [vmem:[%s10995_s9 + $0x6f8] sm:$0xff]  ;;  %v8858_v13 = vcombine.low %v613_v1, %v617_v2  ;;  %v8860_v14 = vcombine.low %v614_v24, %v618_v3  ;;  %v8907_v1 = vcombine.high %v661_v57, %v665_v58  ;;  %v669_v24 = vld [vmem:[%s10995_s9 + $0x850] sm:$0xff] }
 0x2b1   : > { %v8869_v17 = vcombine.high %v622_v12, %v626_v33  ;;  %v673_v3 = vld [vmem:[%s10995_s9 + $0x870] sm:$0xff] }
 0x2b3   : > { %5640 = vmatpush1.bf16.msra.mxu0 %v8810_v21  ;;  %5886 = vmatpush1.bf16.msra.mxu1 %v8812_v22  ;;  %v630_v21 = vld [vmem:[%s10995_s9 + $0x718] sm:$0xff] }
 0x2b4   : > { %5641 = vmatprep.subr.bf16.mxu0 %v8819_v23  ;;  %5887 = vmatprep.subr.bf16.mxu1 %v8821_v25  ;;  %v634_v22 = vld [vmem:[%s10995_s9 + $0x738] sm:$0xff]  ;;  %v8866_v23 = vcombine.low %v621_v8, %v625_v9  ;;  %v8868_v25 = vcombine.low %v622_v12, %v626_v33  ;;  %v8915_v8 = vcombine.high %v669_v24, %v673_v3  ;;  %v677_v12 = vld [vmem:[%s10995_s9 + $0x890] sm:$0xff] }
 0x2b5   : > { %v8877_v27 = vcombine.high %v630_v21, %v634_v22  ;;  %v681_v33 = vld [vmem:[%s10995_s9 + $0x8b0] sm:$0xff] }
 0x2b7   : > { %5642 = vmatpush1.bf16.msra.mxu0 %v8818_v31  ;;  %5888 = vmatpush1.bf16.msra.mxu1 %v8820_v32  ;;  %v638_v31 = vld [vmem:[%s10995_s9 + $0x758] sm:$0xff] }
 0x2b8   : > { %5643 = vmatprep.subr.bf16.mxu0 %v8827_v0  ;;  %5889 = vmatprep.subr.bf16.mxu1 %v8829_v34  ;;  %v642_v32 = vld [vmem:[%s10995_s9 + $0x778] sm:$0xff]  ;;  %v8874_v0 = vcombine.low %v629_v18, %v633_v20  ;;  %v8876_v34 = vcombine.low %v630_v21, %v634_v22  ;;  %v8923_v18 = vcombine.high %v677_v12, %v681_v33  ;;  %v685_v21 = vld [vmem:[%s10995_s9 + $0x8d0] sm:$0xff] }
 0x2b9   : > { %v8885_v36 = vcombine.high %v638_v31, %v642_v32  ;;  %v689_v22 = vld [vmem:[%s10995_s9 + $0x8f0] sm:$0xff] }
 0x2bb   : > { %5644 = vmatpush1.bf16.msra.mxu0 %v8826_v40  ;;  %5890 = vmatpush1.bf16.msra.mxu1 %v8828_v41  ;;  %v646_v40 = vld [vmem:[%s10995_s9 + $0x798] sm:$0xff] }
 0x2bc   : > { %5645 = vmatprep.subr.bf16.mxu0 %v8835_v42  ;;  %5891 = vmatprep.subr.bf16.mxu1 %v8837_v43  ;;  %v650_v41 = vld [vmem:[%s10995_s9 + $0x7b8] sm:$0xff]  ;;  %v8882_v42 = vcombine.low %v637_v28, %v641_v60  ;;  %v8884_v43 = vcombine.low %v638_v31, %v642_v32  ;;  %v693_v60 = vld [vmem:[%s10995_s9 + $0x910] sm:$0xff] }
 0x2bd   : > { %v8893_v46 = vcombine.high %v646_v40, %v650_v41  ;;  %v697_v31 = vld [vmem:[%s10995_s9 + $0x930] sm:$0xff]  ;;  %v694_v32 = vld [vmem:[%s10995_s9 + $0x918] sm:$0xff] }
 0x2bf   : > { %5646 = vmatpush1.bf16.msra.mxu0 %v8834_v50  ;;  %5892 = vmatpush1.bf16.msra.mxu1 %v8836_v51  ;;  %v654_v50 = vld [vmem:[%s10995_s9 + $0x7d8] sm:$0xff] }
 0x2c0   : > { %5647 = vmatprep.subr.bf16.mxu0 %v8843_v52  ;;  %5893 = vmatprep.subr.bf16.mxu1 %v8845_v53  ;;  %v658_v51 = vld [vmem:[%s10995_s9 + $0x7f8] sm:$0xff]  ;;  %v8890_v52 = vcombine.low %v645_v37, %v649_v38  ;;  %v8892_v53 = vcombine.low %v646_v40, %v650_v41  ;;  %v701_v37 = vld [vmem:[%s10995_s9 + $0x950] sm:$0xff] }
 0x2c1   : > { %v8901_v56 = vcombine.high %v654_v50, %v658_v51  ;;  %v705_v38 = vld [vmem:[%s10995_s9 + $0x970] sm:$0xff]  ;;  %v702_v40 = vld [vmem:[%s10995_s9 + $0x958] sm:$0xff] }
 0x2c2   : > { %v706_v41 = vld [vmem:[%s10995_s9 + $0x978] sm:$0xff] }
 0x2c3   : > { %5648 = vmatpush1.bf16.msra.mxu0 %v8842_v54  ;;  %5894 = vmatpush1.bf16.msra.mxu1 %v8844_v11  ;;  %v662_v54 = vld [vmem:[%s10995_s9 + $0x818] sm:$0xff] }
 0x2c4   : > { %5649 = vmatprep.subr.bf16.mxu0 %v8851_v62  ;;  %5895 = vmatprep.subr.bf16.mxu1 %v8853_v63  ;;  %v666_v11 = vld [vmem:[%s10995_s9 + $0x838] sm:$0xff]  ;;  %v8898_v62 = vcombine.low %v653_v47, %v657_v10  ;;  %v8900_v63 = vcombine.low %v654_v50, %v658_v51  ;;  %v709_v47 = vld [vmem:[%s10995_s9 + $0x990] sm:$0xff] }
 0x2c5   : > { %v8909_v2 = vcombine.high %v662_v54, %v666_v11  ;;  %v713_v10 = vld [vmem:[%s10995_s9 + $0x9b0] sm:$0xff]  ;;  %v710_v50 = vld [vmem:[%s10995_s9 + $0x998] sm:$0xff] }
 0x2c6   : > { %v714_v51 = vld [vmem:[%s10995_s9 + $0x9b8] sm:$0xff] }
 0x2c7   : > { %5650 = vmatpush1.bf16.msra.mxu0 %v8850_v4  ;;  %5896 = vmatpush1.bf16.msra.mxu1 %v8852_v5  ;;  %v670_v4 = vld [vmem:[%s10995_s9 + $0x858] sm:$0xff] }
 0x2c8   : > { %5651 = vmatprep.subr.bf16.mxu0 %v8859_v30  ;;  %5897 = vmatprep.subr.bf16.mxu1 %v8861_v7  ;;  %v674_v5 = vld [vmem:[%s10995_s9 + $0x878] sm:$0xff]  ;;  %v8906_v30 = vcombine.low %v661_v57, %v665_v58  ;;  %v8908_v7 = vcombine.low %v662_v54, %v666_v11  ;;  %v717_v57 = vld [vmem:[%s10995_s9 + $0x9d0] sm:$0xff] }
 0x2c9   : > { %v8917_v9 = vcombine.high %v670_v4, %v674_v5  ;;  %v721_v58 = vld [vmem:[%s10995_s9 + $0x9f0] sm:$0xff]  ;;  %v718_v54 = vld [vmem:[%s10995_s9 + $0x9d8] sm:$0xff] }
 0x2ca   : > { %v722_v11 = vld [vmem:[%s10995_s9 + $0x9f8] sm:$0xff] }
 0x2cb   : > { %5652 = vmatpush1.bf16.msra.mxu0 %v8858_v13  ;;  %5898 = vmatpush1.bf16.msra.mxu1 %v8860_v14  ;;  %v678_v13 = vld [vmem:[%s10995_s9 + $0x898] sm:$0xff] }
 0x2cc   : > { %5653 = vmatprep.subr.bf16.mxu0 %v8867_v16  ;;  %5899 = vmatprep.subr.bf16.mxu1 %v8869_v17  ;;  %v682_v14 = vld [vmem:[%s10995_s9 + $0x8b8] sm:$0xff]  ;;  %v8914_v16 = vcombine.low %v669_v24, %v673_v3  ;;  %v8916_v17 = vcombine.low %v670_v4, %v674_v5  ;;  %v725_v24 = vld [vmem:[%s10995_s9 + $0xa10] sm:$0xff] }
 0x2cd   : > { %v8925_v20 = vcombine.high %v678_v13, %v682_v14  ;;  %v729_v3 = vld [vmem:[%s10995_s9 + $0xa30] sm:$0xff]  ;;  %v726_v4 = vld [vmem:[%s10995_s9 + $0xa18] sm:$0xff] }
 0x2ce   : > { %v730_v5 = vld [vmem:[%s10995_s9 + $0xa38] sm:$0xff] }
 0x2cf   : > { %5654 = vmatpush1.bf16.msra.mxu0 %v8866_v23  ;;  %5900 = vmatpush1.bf16.msra.mxu1 %v8868_v25  ;;  %v686_v23 = vld [vmem:[%s10995_s9 + $0x8d8] sm:$0xff] }
 0x2d0   : > { %5655 = vmatprep.subr.bf16.mxu0 %v8875_v26  ;;  %5901 = vmatprep.subr.bf16.mxu1 %v8877_v27  ;;  %v690_v25 = vld [vmem:[%s10995_s9 + $0x8f8] sm:$0xff]  ;;  %v8924_v26 = vcombine.low %v678_v13, %v682_v14  ;;  %v8931_v27 = vcombine.high %v685_v21, %v689_v22 }
 0x2d1   : > { %v8933_v28 = vcombine.high %v686_v23, %v690_v25  ;;  %v734_v13 = vld [vmem:[%s10995_s9 + $0xa58] sm:$0xff] }
 0x2d2   : > { %v738_v14 = vld [vmem:[%s10995_s9 + $0xa78] sm:$0xff] }
 0x2d3   : > { %5656 = vmatpush1.bf16.msra.mxu0 %v8874_v0  ;;  %5902 = vmatpush1.bf16.msra.mxu1 %v8876_v34  ;;  %v698_v0 = vld [vmem:[%s10995_s9 + $0x938] sm:$0xff]  ;;  %v8930_v34 = vcombine.low %v685_v21, %v689_v22  ;;  %v741_v21 = vld [vmem:[%s10995_s9 + $0xa90] sm:$0xff] }
 0x2d4   : > { %5657 = vmatprep.subr.bf16.mxu0 %v8883_v35  ;;  %5903 = vmatprep.subr.bf16.mxu1 %v8885_v36  ;;  %v8939_v35 = vcombine.high %v693_v60, %v697_v31  ;;  %v8941_v36 = vcombine.high %v694_v32, %v698_v0  ;;  %v745_v22 = vld [vmem:[%s10995_s9 + $0xab0] sm:$0xff] }
 0x2d7   : > { %5658 = vmatpush1.bf16.msra.mxu0 %v8882_v42  ;;  %5904 = vmatpush1.bf16.msra.mxu1 %v8884_v43  ;;  %v8938_v42 = vcombine.low %v693_v60, %v697_v31  ;;  %v8940_v43 = vcombine.low %v694_v32, %v698_v0  ;;  %v749_v60 = vld [vmem:[%s10995_s9 + $0xad0] sm:$0xff]  ;;  %v750_v32 = vld [vmem:[%s10995_s9 + $0xad8] sm:$0xff] }
 0x2d8   : > { %5659 = vmatprep.subr.bf16.mxu0 %v8891_v44  ;;  %5905 = vmatprep.subr.bf16.mxu1 %v8893_v46  ;;  %v8947_v44 = vcombine.high %v701_v37, %v705_v38  ;;  %v8949_v46 = vcombine.high %v702_v40, %v706_v41  ;;  %v753_v31 = vld [vmem:[%s10995_s9 + $0xaf0] sm:$0xff]  ;;  %v754_v0 = vld [vmem:[%s10995_s9 + $0xaf8] sm:$0xff] }
 0x2db   : > { %5660 = vmatpush1.bf16.msra.mxu0 %v8890_v52  ;;  %5906 = vmatpush1.bf16.msra.mxu1 %v8892_v53  ;;  %v8946_v52 = vcombine.low %v701_v37, %v705_v38  ;;  %v8948_v53 = vcombine.low %v702_v40, %v706_v41  ;;  %v757_v37 = vld [vmem:[%s10995_s9 + $0xb10] sm:$0xff]  ;;  %v758_v40 = vld [vmem:[%s10995_s9 + $0xb18] sm:$0xff] }
 0x2dc   : > { %5661 = vmatprep.subr.bf16.mxu0 %v8899_v55  ;;  %5907 = vmatprep.subr.bf16.mxu1 %v8901_v56  ;;  %v8955_v55 = vcombine.high %v709_v47, %v713_v10  ;;  %v8957_v56 = vcombine.high %v710_v50, %v714_v51  ;;  %v761_v38 = vld [vmem:[%s10995_s9 + $0xb30] sm:$0xff]  ;;  %v762_v41 = vld [vmem:[%s10995_s9 + $0xb38] sm:$0xff] }
 0x2df   : > { %5662 = vmatpush1.bf16.msra.mxu0 %v8898_v62  ;;  %5908 = vmatpush1.bf16.msra.mxu1 %v8900_v63  ;;  %v8954_v62 = vcombine.low %v709_v47, %v713_v10  ;;  %v8956_v63 = vcombine.low %v710_v50, %v714_v51  ;;  %v765_v47 = vld [vmem:[%s10995_s9 + $0xb50] sm:$0xff]  ;;  %v766_v50 = vld [vmem:[%s10995_s9 + $0xb58] sm:$0xff] }
 0x2e0   : > { %5672 = vmatprep.subr.bf16.mxu0 %v8907_v1  ;;  %5918 = vmatprep.subr.bf16.mxu1 %v8909_v2  ;;  %v8963_v1 = vcombine.high %v717_v57, %v721_v58  ;;  %v8965_v2 = vcombine.high %v718_v54, %v722_v11  ;;  %v769_v10 = vld [vmem:[%s10995_s9 + $0xb70] sm:$0xff]  ;;  %v770_v51 = vld [vmem:[%s10995_s9 + $0xb78] sm:$0xff] }
 0x2e2   : > { %5664 = vmatmul.mubr.bf16.vlgmr.msra.gmra.mrb[4].mxu0 %v11189_v39  ;;  %5910 = vmatmul.mubr.bf16.vlgmr.msra.gmra.mrb[4].mxu1 %v11189_v39  ;;  %v8922_v39 = vcombine.low %v677_v12, %v681_v33  ;;  %v733_v12 = vld [vmem:[%s10995_s9 + $0xa50] sm:$0xff] }
 0x2e3   : > { %5673 = vmatpush1.bf16.msra.mxu0 %v8906_v30  ;;  %5919 = vmatpush1.bf16.msra.mxu1 %v8908_v7  ;;  %v8962_v30 = vcombine.low %v717_v57, %v721_v58  ;;  %v8964_v7 = vcombine.low %v718_v54, %v722_v11  ;;  %v737_v33 = vld [vmem:[%s10995_s9 + $0xa70] sm:$0xff]  ;;  %v774_v54 = vld [vmem:[%s10995_s9 + $0xb98] sm:$0xff] }
 0x2e4   : > { %5674 = vmatprep.subr.bf16.mxu0 %v8915_v8  ;;  %5920 = vmatprep.subr.bf16.mxu1 %v8917_v9  ;;  %v8971_v8 = vcombine.high %v725_v24, %v729_v3  ;;  %v8973_v9 = vcombine.high %v726_v4, %v730_v5  ;;  %v773_v57 = vld [vmem:[%s10995_s9 + $0xb90] sm:$0xff]  ;;  %v778_v11 = vld [vmem:[%s10995_s9 + $0xbb8] sm:$0xff] }
 0x2e5   : > { %5704 = vmatprep.mubr.bf16.mxu0 %v11196_v49  ;;  %5950 = vmatprep.mubr.bf16.mxu1 %v11196_v49  ;;  %v8932_v49 = vcombine.low %v686_v23, %v690_v25  ;;  %v742_v23 = vld [vmem:[%s10995_s9 + $0xa98] sm:$0xff]  ;;  %v777_v58 = vld [vmem:[%s10995_s9 + $0xbb0] sm:$0xff] }
 0x2e6   : > { %v746_v25 = vld [vmem:[%s10995_s9 + $0xab8] sm:$0xff] }
 0x2e7   : > { %5675 = vmatpush1.bf16.msra.mxu0 %v8914_v16  ;;  %5921 = vmatpush1.bf16.msra.mxu1 %v8916_v17  ;;  %v8970_v16 = vcombine.low %v725_v24, %v729_v3  ;;  %v8972_v17 = vcombine.low %v726_v4, %v730_v5  ;;  %v781_v24 = vld [vmem:[%s10995_s9 + $0xbd0] sm:$0xff]  ;;  %v782_v4 = vld [vmem:[%s10995_s9 + $0xbd8] sm:$0xff] }
 0x2e8   : > { %5676 = vmatprep.subr.bf16.mxu0 %v8923_v18  ;;  %5922 = vmatprep.subr.bf16.mxu1 %v8925_v20  ;;  %v8979_v18 = vcombine.high %v733_v12, %v737_v33  ;;  %v8981_v20 = vcombine.high %v734_v13, %v738_v14  ;;  %v785_v3 = vld [vmem:[%s10995_s9 + $0xbf0] sm:$0xff]  ;;  %v786_v5 = vld [vmem:[%s10995_s9 + $0xbf8] sm:$0xff] }
 0x2eb   : > { %5677 = vmatpush1.bf16.msra.mxu0 %v8922_v39  ;;  %5923 = vmatpush1.bf16.msra.mxu1 %v8924_v26  ;;  %v8978_v39 = vcombine.low %v733_v12, %v737_v33  ;;  %v8980_v26 = vcombine.low %v734_v13, %v738_v14  ;;  %v789_v12 = vld [vmem:[%s10995_s9 + $0xc10] sm:$0xff]  ;;  %v790_v13 = vld [vmem:[%s10995_s9 + $0xc18] sm:$0xff] }
 0x2ec   : > { %5678 = vmatprep.subr.bf16.mxu0 %v8931_v27  ;;  %5924 = vmatprep.subr.bf16.mxu1 %v8933_v28  ;;  %v8987_v27 = vcombine.high %v741_v21, %v745_v22  ;;  %v8989_v28 = vcombine.high %v742_v23, %v746_v25  ;;  %v793_v33 = vld [vmem:[%s10995_s9 + $0xc30] sm:$0xff]  ;;  %v794_v14 = vld [vmem:[%s10995_s9 + $0xc38] sm:$0xff] }
 0x2ef   : > { %5679 = vmatpush1.bf16.msra.mxu0 %v8930_v34  ;;  %5925 = vmatpush1.bf16.msra.mxu1 %v8932_v49  ;;  %v8986_v34 = vcombine.low %v741_v21, %v745_v22  ;;  %v8988_v49 = vcombine.low %v742_v23, %v746_v25  ;;  %v797_v21 = vld [vmem:[%s10995_s9 + $0xc50] sm:$0xff]  ;;  %v798_v23 = vld [vmem:[%s10995_s9 + $0xc58] sm:$0xff] }
 0x2f0   : > { %5680 = vmatprep.subr.bf16.mxu0 %v8939_v35  ;;  %5926 = vmatprep.subr.bf16.mxu1 %v8941_v36  ;;  %v8995_v35 = vcombine.high %v749_v60, %v753_v31  ;;  %v8997_v36 = vcombine.high %v750_v32, %v754_v0  ;;  %v801_v22 = vld [vmem:[%s10995_s9 + $0xc70] sm:$0xff]  ;;  %v802_v25 = vld [vmem:[%s10995_s9 + $0xc78] sm:$0xff] }
 0x2f3   : > { %5681 = vmatpush1.bf16.msra.mxu0 %v8938_v42  ;;  %5927 = vmatpush1.bf16.msra.mxu1 %v8940_v43  ;;  %v8994_v42 = vcombine.low %v749_v60, %v753_v31  ;;  %v8996_v43 = vcombine.low %v750_v32, %v754_v0  ;;  %v805_v60 = vld [vmem:[%s10995_s9 + $0xc90] sm:$0xff]  ;;  %v806_v32 = vld [vmem:[%s10995_s9 + $0xc98] sm:$0xff] }
 0x2f4   : > { %5682 = vmatprep.subr.bf16.mxu0 %v8947_v44  ;;  %5928 = vmatprep.subr.bf16.mxu1 %v8949_v46  ;;  %v9003_v44 = vcombine.high %v757_v37, %v761_v38  ;;  %v9005_v46 = vcombine.high %v758_v40, %v762_v41  ;;  %v809_v31 = vld [vmem:[%s10995_s9 + $0xcb0] sm:$0xff]  ;;  %v810_v0 = vld [vmem:[%s10995_s9 + $0xcb8] sm:$0xff] }
 0x2f7   : > { %5683 = vmatpush1.bf16.msra.mxu0 %v8946_v52  ;;  %5929 = vmatpush1.bf16.msra.mxu1 %v8948_v53  ;;  %v9002_v52 = vcombine.low %v757_v37, %v761_v38  ;;  %v9004_v53 = vcombine.low %v758_v40, %v762_v41  ;;  %v813_v37 = vld [vmem:[%s10995_s9 + $0xcd0] sm:$0xff]  ;;  %v814_v40 = vld [vmem:[%s10995_s9 + $0xcd8] sm:$0xff] }
 0x2f8   : > { %5684 = vmatprep.subr.bf16.mxu0 %v8955_v55  ;;  %5930 = vmatprep.subr.bf16.mxu1 %v8957_v56  ;;  %v9011_v55 = vcombine.high %v765_v47, %v769_v10  ;;  %v9013_v56 = vcombine.high %v766_v50, %v770_v51  ;;  %v817_v38 = vld [vmem:[%s10995_s9 + $0xcf0] sm:$0xff]  ;;  %v818_v41 = vld [vmem:[%s10995_s9 + $0xcf8] sm:$0xff] }
 0x2fb   : > { %5685 = vmatpush1.bf16.msra.mxu0 %v8954_v62  ;;  %5931 = vmatpush1.bf16.msra.mxu1 %v8956_v63  ;;  %v9010_v62 = vcombine.low %v765_v47, %v769_v10  ;;  %v9012_v63 = vcombine.low %v766_v50, %v770_v51  ;;  %v825_v47 = vld [vmem:[%s10995_s9 + $0xd30] sm:$0xff]  ;;  %v822_v10 = vld [vmem:[%s10995_s9 + $0xd18] sm:$0xff]  ;;  %v9058_v51 = vcombine.low %v813_v37, %v817_v38 }
 0x2fc   : > { %5686 = vmatprep.subr.bf16.mxu0 %v8963_v1  ;;  %5932 = vmatprep.subr.bf16.mxu1 %v8965_v2  ;;  %v9019_v1 = vcombine.high %v773_v57, %v777_v58  ;;  %v9021_v2 = vcombine.high %v774_v54, %v778_v11  ;;  %v826_v50 = vld [vmem:[%s10995_s9 + $0xd38] sm:$0xff] }
 0x2ff   : > { %5687 = vmatpush1.bf16.msra.mxu0 %v8962_v30  ;;  %5933 = vmatpush1.bf16.msra.mxu1 %v8964_v7  ;;  %v9018_v30 = vcombine.low %v773_v57, %v777_v58  ;;  %v9020_v7 = vcombine.low %v774_v54, %v778_v11  ;;  %v829_v57 = vld [vmem:[%s10995_s9 + $0xd50] sm:$0xff]  ;;  %v830_v54 = vld [vmem:[%s10995_s9 + $0xd58] sm:$0xff] }
 0x300   : > { %5688 = vmatprep.subr.bf16.mxu0 %v8971_v8  ;;  %5934 = vmatprep.subr.bf16.mxu1 %v8973_v9  ;;  %v9027_v8 = vcombine.high %v781_v24, %v785_v3  ;;  %v9029_v9 = vcombine.high %v782_v4, %v786_v5  ;;  %v833_v58 = vld [vmem:[%s10995_s9 + $0xd70] sm:$0xff]  ;;  %v834_v11 = vld [vmem:[%s10995_s9 + $0xd78] sm:$0xff] }
 0x303   : > { %5689 = vmatpush1.bf16.msra.mxu0 %v8970_v16  ;;  %5935 = vmatpush1.bf16.msra.mxu1 %v8972_v17  ;;  %v9026_v16 = vcombine.low %v781_v24, %v785_v3  ;;  %v9028_v17 = vcombine.low %v782_v4, %v786_v5  ;;  %v9077_v24 = vcombine.high %v830_v54, %v834_v11  ;;  %v837_v3 = vld [vmem:[%s10995_s9 + $0xd90] sm:$0xff]  ;;  %v838_v5 = vld [vmem:[%s10995_s9 + $0xd98] sm:$0xff] }
 0x304   : > { %5690 = vmatprep.subr.bf16.mxu0 %v8979_v18  ;;  %5936 = vmatprep.subr.bf16.mxu1 %v8981_v20  ;;  %v9035_v18 = vcombine.high %v789_v12, %v793_v33  ;;  %v9037_v20 = vcombine.high %v790_v13, %v794_v14  ;;  %v841_v4 = vld [vmem:[%s10995_s9 + $0xdb0] sm:$0xff] }
 0x307   : > { %5691 = vmatpush1.bf16.msra.mxu0 %v8978_v39  ;;  %5937 = vmatpush1.bf16.msra.mxu1 %v8980_v26  ;;  %v9034_v39 = vcombine.low %v789_v12, %v793_v33  ;;  %v9036_v26 = vcombine.low %v790_v13, %v794_v14  ;;  %v845_v14 = vld [vmem:[%s10995_s9 + $0xdd0] sm:$0xff] }
 0x308   : > { %5692 = vmatprep.subr.bf16.mxu0 %v8987_v27  ;;  %5938 = vmatprep.subr.bf16.mxu1 %v8989_v28  ;;  %v9043_v27 = vcombine.high %v797_v21, %v801_v22  ;;  %v9045_v28 = vcombine.high %v798_v23, %v802_v25 }
 0x30b   : > { %5693 = vmatpush1.bf16.msra.mxu0 %v8986_v34  ;;  %5939 = vmatpush1.bf16.msra.mxu1 %v8988_v49  ;;  %v9042_v34 = vcombine.low %v797_v21, %v801_v22  ;;  %v9044_v49 = vcombine.low %v798_v23, %v802_v25  ;;  %v850_v21 = vld [vmem:[%s10995_s9 + $0xdf8] sm:$0xff] }
 0x30c   : > { %5694 = vmatprep.subr.bf16.mxu0 %v8995_v35  ;;  %5940 = vmatprep.subr.bf16.mxu1 %v8997_v36  ;;  %v9051_v35 = vcombine.high %v805_v60, %v809_v31  ;;  %v9053_v36 = vcombine.high %v806_v32, %v810_v0 }
 0x30f   : > { %5695 = vmatpush1.bf16.msra.mxu0 %v8994_v42  ;;  %5941 = vmatpush1.bf16.msra.mxu1 %v8996_v43  ;;  %v9052_v42 = vcombine.low %v806_v32, %v810_v0  ;;  %v9059_v43 = vcombine.high %v813_v37, %v817_v38  ;;  %v854_v37 = vld [vmem:[%s10995_s9 + $0xe18] sm:$0xff] }
 0x310   : > { %5696 = vmatprep.subr.bf16.mxu0 %v9003_v44  ;;  %5942 = vmatprep.subr.bf16.mxu1 %v9005_v46  ;;  %v9061_v44 = vcombine.high %v814_v40, %v818_v41  ;;  %v821_v46 = vld [vmem:[%s10995_s9 + $0xd10] sm:$0xff]  ;;  %v858_v38 = vld [vmem:[%s10995_s9 + $0xe38] sm:$0xff] }
 0x313   : > { %5697 = vmatpush1.bf16.msra.mxu0 %v9002_v52  ;;  %5943 = vmatpush1.bf16.msra.mxu1 %v9004_v53  ;;  %v9067_v52 = vcombine.high %v821_v46, %v825_v47  ;;  %v9069_v53 = vcombine.high %v822_v10, %v826_v50 }
 0x314   : > { %5698 = vmatprep.subr.bf16.mxu0 %v9011_v55  ;;  %5944 = vmatprep.subr.bf16.mxu1 %v9013_v56  ;;  %v10693_v55 = vmov 1983009808  }
 0x315   : > { %v6093_v56 = vunpack.c.l.s4 %v10693_v55 }
 0x317   : > { %5699 = vmatpush1.bf16.msra.mxu0 %v9010_v62  ;;  %5945 = vmatpush1.bf16.msra.mxu1 %v9012_v63  ;;  %v9066_v62 = vcombine.low %v821_v46, %v825_v47  ;;  %v9068_v63 = vcombine.low %v822_v10, %v826_v50  ;;  %v861_v46 = vld [vmem:[%s10995_s9 + $0xe50] sm:$0xff]  ;;  %v862_v50 = vld [vmem:[%s10995_s9 + $0xe58] sm:$0xff] }
 0x318   : > { %5700 = vmatprep.subr.bf16.mxu0 %v9019_v1  ;;  %5946 = vmatprep.subr.bf16.mxu1 %v9021_v2  ;;  %v9075_v1 = vcombine.high %v829_v57, %v833_v58  ;;  %v6094_v2 = vunpack.c.0.s8 %v6093_v56  ;;  %v865_v47 = vld [vmem:[%s10995_s9 + $0xe70] sm:$0xff] }
 0x319   : > { %v869_v56 = vld [vmem:[%s10995_s9 + $0xe90] sm:$0xff] }
 0x31a   : > { %v11729_v33 = vsub.s32 %v6094_v2, %v11037_v45  ;;  %v877_v2 = vld [vmem:[%s10995_s9 + $0xed0] sm:$0xff] }
 0x31b   : > { %5701 = vmatpush1.bf16.msra.mxu0 %v9018_v30  ;;  %5947 = vmatpush1.bf16.msra.mxu1 %v9020_v7  ;;  %v842_v30 = vld [vmem:[%s10995_s9 + $0xdb8] sm:$0xff]  ;;  %v9074_v7 = vcombine.low %v829_v57, %v833_v58  ;;  %v873_v57 = vld [vmem:[%s10995_s9 + $0xeb0] sm:$0xff] }
 0x31c   : > { %5702 = vmatprep.subr.bf16.mxu0 %v9027_v8  ;;  %5948 = vmatprep.subr.bf16.mxu1 %v9029_v9  ;;  %v9076_v8 = vcombine.low %v830_v54, %v834_v11  ;;  %v9083_v9 = vcombine.high %v837_v3, %v841_v4  ;;  %v9085_v13 = vcombine.high %v838_v5, %v842_v30  ;;  %v870_v58 = vld [vmem:[%s10995_s9 + $0xe98] sm:$0xff] }
 0x31d   : > { %v874_v54 = vld [vmem:[%s10995_s9 + $0xeb8] sm:$0xff]  ;;  %v9106_v11 = vcombine.low %v861_v46, %v865_v47 }
 0x31f   : > { %5703 = vmatpush1.bf16.msra.mxu0 %v9026_v16  ;;  %5949 = vmatpush1.bf16.msra.mxu1 %v9028_v17  ;;  %v849_v16 = vld [vmem:[%s10995_s9 + $0xdf0] sm:$0xff] }
 0x320   : > { %5713 = vmatprep.subr.bf16.mxu0 %v9035_v18  ;;  %5959 = vmatprep.subr.bf16.mxu1 %v9037_v20  ;;  %v846_v20 = vld [vmem:[%s10995_s9 + $0xdd8] sm:$0xff] }
 0x322   : > { %5705 = vmatmul.mubr.bf16.vlgmr.msra.gmra.mrb[4].mxu0 %v11264_v59  ;;  %5951 = vmatmul.mubr.bf16.vlgmr.msra.gmra.mrb[4].mxu1 %v11264_v59  ;;  %v9050_v59 = vcombine.low %v805_v60, %v809_v31  ;;  %v9084_v60 = vcombine.low %v838_v5, %v842_v30  ;;  %v9091_v31 = vcombine.high %v845_v14, %v849_v16 }
 0x323   : > { %5714 = vmatpush1.bf16.msra.mxu0 %v9034_v39  ;;  %5960 = vmatpush1.bf16.msra.mxu1 %v9036_v26  ;;  %v9082_v39 = vcombine.low %v837_v3, %v841_v4  ;;  %v878_v3 = vld [vmem:[%s10995_s9 + $0xed8] sm:$0xff]  ;;  %v9114_v5 = vcombine.low %v869_v56, %v873_v57  ;;  %v9116_v30 = vcombine.low %v870_v58, %v874_v54 }
 0x324   : > { %5715 = vmatprep.subr.bf16.mxu0 %v9043_v27  ;;  %5961 = vmatprep.subr.bf16.mxu1 %v9045_v28  ;;  %v882_v4 = vld [vmem:[%s10995_s9 + $0xef8] sm:$0xff] }
 0x325   : > { %5745 = vmatprep.mubr.bf16.mxu0 %v11272_v6  ;;  %5991 = vmatprep.mubr.bf16.mxu1 %v11272_v6  ;;  %v9060_v6 = vcombine.low %v814_v40, %v818_v41  ;;  %v399_v40 = vld [vmem:[#allocation2] sm:$0xff]  ;;  %v9090_v41 = vcombine.low %v845_v14, %v849_v16 }
 0x326   : > { %v890_v14 = vld [vmem:[%s10995_s9 + $0xf38] sm:$0xff] }
 0x327   : > { %5716 = vmatpush1.bf16.msra.mxu0 %v9042_v34  ;;  %5962 = vmatpush1.bf16.msra.mxu1 %v9044_v49  ;;  %v9093_v34 = vcombine.high %v846_v20, %v850_v21  ;;  %v853_v49 = vld [vmem:[%s10995_s9 + $0xe10] sm:$0xff] }
 0x328   : > { %5717 = vmatprep.subr.bf16.mxu0 %v9051_v35  ;;  %5963 = vmatprep.subr.bf16.mxu1 %v9053_v36  ;;  %v857_v35 = vld [vmem:[%s10995_s9 + $0xe30] sm:$0xff] }
 0x32b   : > { %5718 = vmatpush1.bf16.msra.mxu0 %v9050_v59  ;;  %5964 = vmatpush1.bf16.msra.mxu1 %v9052_v42  ;;  %v9092_v42 = vcombine.low %v846_v20, %v850_v21  ;;  %v893_v21 = vld [vmem:[%s10995_s9 + $0xf50] sm:$0xff] }
 0x32c   : > { %5719 = vmatprep.subr.bf16.mxu0 %v9059_v43  ;;  %5965 = vmatprep.subr.bf16.mxu1 %v9061_v44  ;;  %v9099_v43 = vcombine.high %v853_v49, %v857_v35  ;;  %v9101_v44 = vcombine.high %v854_v37, %v858_v38 }
 0x32f   : > { %5720 = vmatpush1.bf16.msra.mxu0 %v9058_v51  ;;  %5966 = vmatpush1.bf16.msra.mxu1 %v9060_v6  ;;  %v866_v51 = vld [vmem:[%s10995_s9 + $0xe78] sm:$0xff]  ;;  %v9098_v6 = vcombine.low %v853_v49, %v857_v35 }
 0x330   : > { %5721 = vmatprep.subr.bf16.mxu0 %v9067_v52  ;;  %5967 = vmatprep.subr.bf16.mxu1 %v9069_v53  ;;  %v9100_v52 = vcombine.low %v854_v37, %v858_v38  ;;  %v9107_v53 = vcombine.high %v861_v46, %v865_v47  ;;  %v9109_v55 = vcombine.high %v862_v50, %v866_v51  ;;  %v909_v37 = vld [vmem:[%s10995_s9 + $0xfd0] sm:$0xff] }
 0x331   : > { %v913_v38 = vld [vmem:[%s10995_s9 + $0xff0] sm:$0xff] }
 0x332   : > { %v917_v46 = vld [vmem:[%s10995_s9 + $0x1010] sm:$0xff] }
 0x333   : > { %5722 = vmatpush1.bf16.msra.mxu0 %v9066_v62  ;;  %5968 = vmatpush1.bf16.msra.mxu1 %v9068_v63  ;;  %v9108_v62 = vcombine.low %v862_v50, %v866_v51  ;;  %v9115_v63 = vcombine.high %v869_v56, %v873_v57  ;;  %v921_v47 = vld [vmem:[%s10995_s9 + $0x1030] sm:$0xff]  ;;  %v922_v50 = vld [vmem:[%s10995_s9 + $0x1038] sm:$0xff]  ;;  %v9154_v51 = vcombine.low %v909_v37, %v913_v38 }
 0x334   : > { %5723 = vmatprep.subr.bf16.mxu0 %v9075_v1  ;;  %5969 = vmatprep.subr.bf16.mxu1 %v9077_v24  ;;  %v9117_v1 = vcombine.high %v870_v58, %v874_v54  ;;  %v881_v24 = vld [vmem:[%s10995_s9 + $0xef0] sm:$0xff]  ;;  %v926_v57 = vld [vmem:[%s10995_s9 + $0x1058] sm:$0xff]  ;;  %v9162_v54 = vcombine.low %v917_v46, %v921_v47 }
 0x335   : > { %v5337_v12 = vpop.f32.mrb[0].mxu0  ;;  %v5583_v17 = vpop.f32.mrb[0].mxu1  ;;  %v9122_v16 = vcombine.low %v877_v2, %v881_v24  ;;  %v929_v56 = vld [vmem:[%s10995_s9 + $0x1070] sm:$0xff]  ;;  %v930_v58 = vld [vmem:[%s10995_s9 + $0x1078] sm:$0xff] }
 0x336   : > { %v5339_v18 = vpop.f32.mrb[1].mxu0  ;;  %v5585_v23 = vpop.f32.mrb[1].mxu1 }
 0x337   : > { %v6090_v22 = vcombine.low %v5337_v12, %v5339_v18  ;;  %v5341_v25 = vpop.f32.mrb[2].mxu0  ;;  %5724 = vmatpush1.bf16.msra.mxu0 %v9074_v7  ;;  %v6091_v26 = vcombine.low %v5583_v17, %v5585_v23  ;;  %v5587_v27 = vpop.f32.mrb[2].mxu1  ;;  %5970 = vmatpush1.bf16.msra.mxu1 %v9076_v8  ;;  %v9123_v7 = vcombine.high %v877_v2, %v881_v24  ;;  %v889_v12 = vld [vmem:[%s10995_s9 + $0xf30] sm:$0xff]  ;;  %v894_v23 = vld [vmem:[%s10995_s9 + $0xf58] sm:$0xff] }
 0x338   : > { %v5342_v28 = vpop.f32.mrb[3].mxu0  ;;  %5725 = vmatprep.subr.bf16.mxu0 %v9083_v9  ;;  %v5588_v0 = vpop.f32.mrb[3].mxu1  ;;  %5971 = vmatprep.subr.bf16.mxu1 %v9085_v13  ;;  %v9125_v8 = vcombine.high %v878_v3, %v882_v4  ;;  %v885_v9 = vld [vmem:[%s10995_s9 + $0xf10] sm:$0xff]  ;;  %v886_v13 = vld [vmem:[%s10995_s9 + $0xf18] sm:$0xff]  ;;  %v9124_v17 = vcombine.low %v878_v3, %v882_v4 }
 0x339   : > { %v6098_v32 = vrot.slane %v6090_v22, %v11729_v33  ;;  %v6105_v36 = vrot.slane %v6091_v26, %v11729_v33  ;;  %v9131_v18 = vcombine.high %v885_v9, %v889_v12  ;;  %v9133_v20 = vcombine.high %v886_v13, %v890_v14  ;;  %v897_v22 = vld [vmem:[%s10995_s9 + $0xf70] sm:$0xff]  ;;  %v898_v25 = vld [vmem:[%s10995_s9 + $0xf78] sm:$0xff] }
 0x33a   : > { %v9132_v26 = vcombine.low %v886_v13, %v890_v14  ;;  %v9139_v27 = vcombine.high %v893_v21, %v897_v22  ;;  %v9141_v28 = vcombine.high %v894_v23, %v898_v25  ;;  %v906_v0 = vld [vmem:[%s10995_s9 + $0xfb8] sm:$0xff]  ;;  %v9140_v49 = vcombine.low %v894_v23, %v898_v25  ;;  %v937_v2 = vld [vmem:[%s10995_s9 + $0x10b0] sm:$0xff] }
 0x33b   : > { %5726 = vmatpush1.bf16.msra.mxu0 %v9082_v39  ;;  %v6106_v59 = vcombine.low %v6098_v32, %v6105_v36  ;;  %5972 = vmatpush1.bf16.msra.mxu1 %v9084_v60  ;;  %v9130_v39 = vcombine.low %v885_v9, %v889_v12  ;;  %v901_v60 = vld [vmem:[%s10995_s9 + $0xf90] sm:$0xff]  ;;  %v902_v32 = vld [vmem:[%s10995_s9 + $0xf98] sm:$0xff] }
 0x33c   : > { %5727 = vmatprep.subr.bf16.mxu0 %v9091_v31  ;;  %5973 = vmatprep.subr.bf16.mxu1 %v9093_v34  ;;  %v905_v31 = vld [vmem:[%s10995_s9 + $0xfb0] sm:$0xff]  ;;  %v9138_v34 = vcombine.low %v893_v21, %v897_v22  ;;  %v9149_v36 = vcombine.high %v902_v32, %v906_v0  ;;  %v934_v24 = vld [vmem:[%s10995_s9 + $0x1098] sm:$0xff] }
 0x33d   : > { %v6126_v10 = vadd.f32 %v6106_v59, %v399_v40  ;;  %v9147_v35 = vcombine.high %v901_v60, %v905_v31  ;;  %v910_v40 = vld [vmem:[%s10995_s9 + $0xfd8] sm:$0xff]  ;;  %v9146_v59 = vcombine.low %v901_v60, %v905_v31  ;;  %v945_v9 = vld [vmem:[%s10995_s9 + $0x10f0] sm:$0xff] }
 0x33e   : > { %v938_v3 = vld [vmem:[%s10995_s9 + $0x10b8] sm:$0xff] }
 0x33f   : > { %5728 = vmatpush1.bf16.msra.mxu0 %v9090_v41  ;;  %6128 = vst [vmem:[#allocation2] sm:$0xff] %v6126_v10  ;;  %5974 = vmatpush1.bf16.msra.mxu1 %v9092_v42  ;;  %v914_v41 = vld [vmem:[%s10995_s9 + $0xff8] sm:$0xff]  ;;  %v9148_v42 = vcombine.low %v902_v32, %v906_v0  ;;  %v9180_v14 = vcombine.low %v934_v24, %v938_v3 }
 0x340   : > { %5729 = vmatprep.subr.bf16.mxu0 %v9099_v43  ;;  %5975 = vmatprep.subr.bf16.mxu1 %v9101_v44  ;;  %v9155_v43 = vcombine.high %v909_v37, %v913_v38  ;;  %v9157_v44 = vcombine.high %v910_v40, %v914_v41  ;;  %v918_v10 = vld [vmem:[%s10995_s9 + $0x1018] sm:$0xff] }
 0x341   : > { %v942_v12 = vld [vmem:[%s10995_s9 + $0x10d8] sm:$0xff] }
 0x342   : > { %v946_v13 = vld [vmem:[%s10995_s9 + $0x10f8] sm:$0xff] }
 0x343   : > { %5730 = vmatpush1.bf16.msra.mxu0 %v9098_v6  ;;  %5976 = vmatpush1.bf16.msra.mxu1 %v9100_v52  ;;  %v9156_v6 = vcombine.low %v910_v40, %v914_v41  ;;  %v9163_v52 = vcombine.high %v917_v46, %v921_v47  ;;  %v950_v21 = vld [vmem:[%s10995_s9 + $0x1118] sm:$0xff] }
 0x344   : > { %5731 = vmatprep.subr.bf16.mxu0 %v9107_v53  ;;  %5977 = vmatprep.subr.bf16.mxu1 %v9109_v55  ;;  %v9165_v53 = vcombine.high %v918_v10, %v922_v50  ;;  %v925_v55 = vld [vmem:[%s10995_s9 + $0x1050] sm:$0xff]  ;;  %v954_v22 = vld [vmem:[%s10995_s9 + $0x1138] sm:$0xff] }
 0x345   : > { %v9170_v4 = vcombine.low %v925_v55, %v929_v56  ;;  %v962_v60 = vld [vmem:[%s10995_s9 + $0x1178] sm:$0xff]  ;;  %v9196_v32 = vcombine.low %v950_v21, %v954_v22 }
 0x346   : > { %v970_v37 = vld [vmem:[%s10995_s9 + $0x11b8] sm:$0xff] }
 0x347   : > { %5732 = vmatpush1.bf16.msra.mxu0 %v9106_v11  ;;  %5978 = vmatpush1.bf16.msra.mxu1 %v9108_v62  ;;  %v9164_v11 = vcombine.low %v918_v10, %v922_v50  ;;  %v9171_v62 = vcombine.high %v925_v55, %v929_v56  ;;  %v978_v46 = vld [vmem:[%s10995_s9 + $0x11f8] sm:$0xff] }
 0x348   : > { %5733 = vmatprep.subr.bf16.mxu0 %v9115_v63  ;;  %5979 = vmatprep.subr.bf16.mxu1 %v9117_v1  ;;  %v9173_v63 = vcombine.high %v926_v57, %v930_v58  ;;  %v933_v1 = vld [vmem:[%s10995_s9 + $0x1090] sm:$0xff]  ;;  %v986_v55 = vld [vmem:[%s10995_s9 + $0x1238] sm:$0xff] }
 0x34b   : > { %5734 = vmatpush1.bf16.msra.mxu0 %v9114_v5  ;;  %5980 = vmatpush1.bf16.msra.mxu1 %v9116_v30  ;;  %v9172_v5 = vcombine.low %v926_v57, %v930_v58  ;;  %v9179_v30 = vcombine.high %v933_v1, %v937_v2 }
 0x34c   : > { %5735 = vmatprep.subr.bf16.mxu0 %v9123_v7  ;;  %5981 = vmatprep.subr.bf16.mxu1 %v9125_v8  ;;  %v9181_v7 = vcombine.high %v934_v24, %v938_v3  ;;  %v941_v8 = vld [vmem:[%s10995_s9 + $0x10d0] sm:$0xff] }
 0x34d   : > { %v9186_v23 = vcombine.low %v941_v8, %v945_v9 }
 0x34f   : > { %5736 = vmatpush1.bf16.msra.mxu0 %v9122_v16  ;;  %5982 = vmatpush1.bf16.msra.mxu1 %v9124_v17  ;;  %v9187_v16 = vcombine.high %v941_v8, %v945_v9  ;;  %v9189_v17 = vcombine.high %v942_v12, %v946_v13  ;;  %v1002_v8 = vld [vmem:[%s10995_s9 + $0x12b8] sm:$0xff] }
 0x350   : > { %5737 = vmatprep.subr.bf16.mxu0 %v9131_v18  ;;  %5983 = vmatprep.subr.bf16.mxu1 %v9133_v20  ;;  %v949_v18 = vld [vmem:[%s10995_s9 + $0x1110] sm:$0xff] }
 0x351   : > { %v953_v20 = vld [vmem:[%s10995_s9 + $0x1130] sm:$0xff] }
 0x352   : > { %v9195_v25 = vcombine.high %v949_v18, %v953_v20  ;;  %v9194_v31 = vcombine.low %v949_v18, %v953_v20  ;;  %v1010_v18 = vld [vmem:[%s10995_s9 + $0x12f8] sm:$0xff] }
 0x353   : > { %5738 = vmatpush1.bf16.msra.mxu0 %v9130_v39  ;;  %5984 = vmatpush1.bf16.msra.mxu1 %v9132_v26  ;;  %v9197_v39 = vcombine.high %v950_v21, %v954_v22  ;;  %v957_v26 = vld [vmem:[%s10995_s9 + $0x1150] sm:$0xff] }
 0x354   : > { %5739 = vmatprep.subr.bf16.mxu0 %v9139_v27  ;;  %5985 = vmatprep.subr.bf16.mxu1 %v9141_v28  ;;  %v961_v27 = vld [vmem:[%s10995_s9 + $0x1170] sm:$0xff]  ;;  %v958_v28 = vld [vmem:[%s10995_s9 + $0x1158] sm:$0xff] }
 0x355   : > { %v9203_v0 = vcombine.high %v957_v26, %v961_v27  ;;  %v9202_v38 = vcombine.low %v957_v26, %v961_v27  ;;  %v9204_v40 = vcombine.low %v958_v28, %v962_v60  ;;  %v1018_v26 = vld [vmem:[%s10995_s9 + $0x1338] sm:$0xff] }
 0x357   : > { %5740 = vmatpush1.bf16.msra.mxu0 %v9138_v34  ;;  %5986 = vmatpush1.bf16.msra.mxu1 %v9140_v49  ;;  %v9205_v34 = vcombine.high %v958_v28, %v962_v60  ;;  %v965_v49 = vld [vmem:[%s10995_s9 + $0x1190] sm:$0xff] }
 0x358   : > { %5741 = vmatprep.subr.bf16.mxu0 %v9147_v35  ;;  %5987 = vmatprep.subr.bf16.mxu1 %v9149_v36  ;;  %v969_v35 = vld [vmem:[%s10995_s9 + $0x11b0] sm:$0xff]  ;;  %v966_v36 = vld [vmem:[%s10995_s9 + $0x1198] sm:$0xff] }
 0x359   : > { %v9211_v41 = vcombine.high %v965_v49, %v969_v35  ;;  %v9210_v47 = vcombine.low %v965_v49, %v969_v35  ;;  %v9212_v10 = vcombine.low %v966_v36, %v970_v37  ;;  %v1026_v49 = vld [vmem:[%s10995_s9 + $0x1378] sm:$0xff] }
 0x35b   : > { %5742 = vmatpush1.bf16.msra.mxu0 %v9146_v59  ;;  %5988 = vmatpush1.bf16.msra.mxu1 %v9148_v42  ;;  %v9213_v59 = vcombine.high %v966_v36, %v970_v37  ;;  %v973_v42 = vld [vmem:[%s10995_s9 + $0x11d0] sm:$0xff] }
 0x35c   : > { %5743 = vmatprep.subr.bf16.mxu0 %v9155_v43  ;;  %5989 = vmatprep.subr.bf16.mxu1 %v9157_v44  ;;  %v977_v43 = vld [vmem:[%s10995_s9 + $0x11f0] sm:$0xff]  ;;  %v974_v44 = vld [vmem:[%s10995_s9 + $0x11d8] sm:$0xff] }
 0x35d   : > { %v9219_v50 = vcombine.high %v973_v42, %v977_v43  ;;  %v9218_v56 = vcombine.low %v973_v42, %v977_v43  ;;  %v9220_v57 = vcombine.low %v974_v44, %v978_v46  ;;  %v1034_v42 = vld [vmem:[%s10995_s9 + $0x13b8] sm:$0xff] }
 0x35f   : > { %5744 = vmatpush1.bf16.msra.mxu0 %v9154_v51  ;;  %5990 = vmatpush1.bf16.msra.mxu1 %v9156_v6  ;;  %v9221_v51 = vcombine.high %v974_v44, %v978_v46  ;;  %v981_v6 = vld [vmem:[%s10995_s9 + $0x1210] sm:$0xff] }
 0x360   : > { %5754 = vmatprep.subr.bf16.mxu0 %v9163_v52  ;;  %6000 = vmatprep.subr.bf16.mxu1 %v9165_v53  ;;  %v985_v52 = vld [vmem:[%s10995_s9 + $0x1230] sm:$0xff]  ;;  %v982_v53 = vld [vmem:[%s10995_s9 + $0x1218] sm:$0xff] }
 0x361   : > { %v9227_v58 = vcombine.high %v981_v6, %v985_v52  ;;  %v9228_v24 = vcombine.low %v982_v53, %v986_v55 }
 0x362   : > { %5746 = vmatmul.mubr.bf16.vlgmr.msra.gmra.mrb[4].mxu0 %v11345_v19  ;;  %5992 = vmatmul.mubr.bf16.vlgmr.msra.gmra.mrb[4].mxu1 %v11345_v19  ;;  %v9178_v19 = vcombine.low %v933_v1, %v937_v2  ;;  %v994_v1 = vld [vmem:[%s10995_s9 + $0x1278] sm:$0xff]  ;;  %v9226_v2 = vcombine.low %v981_v6, %v985_v52 }
 0x363   : > { %5755 = vmatpush1.bf16.msra.mxu0 %v9162_v54  ;;  %6001 = vmatpush1.bf16.msra.mxu1 %v9164_v11  ;;  %v9229_v54 = vcombine.high %v982_v53, %v986_v55  ;;  %v989_v11 = vld [vmem:[%s10995_s9 + $0x1250] sm:$0xff]  ;;  %v1042_v6 = vld [vmem:[%s10995_s9 + $0x13f8] sm:$0xff] }
 0x364   : > { %5756 = vmatprep.subr.bf16.mxu0 %v9171_v62  ;;  %6002 = vmatprep.subr.bf16.mxu1 %v9173_v63  ;;  %v993_v62 = vld [vmem:[%s10995_s9 + $0x1270] sm:$0xff]  ;;  %v990_v63 = vld [vmem:[%s10995_s9 + $0x1258] sm:$0xff] }
 0x365   : > { %5786 = vmatprep.mubr.bf16.mxu0 %v11352_v29  ;;  %6032 = vmatprep.mubr.bf16.mxu1 %v11352_v29  ;;  %v9188_v29 = vcombine.low %v942_v12, %v946_v13  ;;  %v9235_v3 = vcombine.high %v989_v11, %v993_v62  ;;  %v9234_v9 = vcombine.low %v989_v11, %v993_v62  ;;  %v1050_v11 = vld [vmem:[%s10995_s9 + $0x1438] sm:$0xff] }
 0x366   : > { %v9236_v12 = vcombine.low %v990_v63, %v994_v1 }
 0x367   : > { %5757 = vmatpush1.bf16.msra.mxu0 %v9170_v4  ;;  %6003 = vmatpush1.bf16.msra.mxu1 %v9172_v5  ;;  %v9237_v4 = vcombine.high %v990_v63, %v994_v1  ;;  %v997_v5 = vld [vmem:[%s10995_s9 + $0x1290] sm:$0xff] }
 0x368   : > { %5758 = vmatprep.subr.bf16.mxu0 %v9179_v30  ;;  %6004 = vmatprep.subr.bf16.mxu1 %v9181_v7  ;;  %v1001_v30 = vld [vmem:[%s10995_s9 + $0x12b0] sm:$0xff]  ;;  %v998_v7 = vld [vmem:[%s10995_s9 + $0x1298] sm:$0xff] }
 0x369   : > { %v9243_v13 = vcombine.high %v997_v5, %v1001_v30  ;;  %v9242_v20 = vcombine.low %v997_v5, %v1001_v30  ;;  %v9244_v21 = vcombine.low %v998_v7, %v1002_v8  ;;  %v1058_v5 = vld [vmem:[%s10995_s9 + $0x1478] sm:$0xff] }
 0x36b   : > { %5759 = vmatpush1.bf16.msra.mxu0 %v9178_v19  ;;  %6005 = vmatpush1.bf16.msra.mxu1 %v9180_v14  ;;  %v9245_v19 = vcombine.high %v998_v7, %v1002_v8  ;;  %v1005_v14 = vld [vmem:[%s10995_s9 + $0x12d0] sm:$0xff] }
 0x36c   : > { %5760 = vmatprep.subr.bf16.mxu0 %v9187_v16  ;;  %6006 = vmatprep.subr.bf16.mxu1 %v9189_v17  ;;  %v1009_v16 = vld [vmem:[%s10995_s9 + $0x12f0] sm:$0xff]  ;;  %v1006_v17 = vld [vmem:[%s10995_s9 + $0x12d8] sm:$0xff] }
 0x36d   : > { %v9251_v22 = vcombine.high %v1005_v14, %v1009_v16  ;;  %v9250_v27 = vcombine.low %v1005_v14, %v1009_v16  ;;  %v9252_v28 = vcombine.low %v1006_v17, %v1010_v18  ;;  %v1066_v14 = vld [vmem:[%s10995_s9 + $0x14b8] sm:$0xff] }
 0x36f   : > { %5761 = vmatpush1.bf16.msra.mxu0 %v9186_v23  ;;  %6007 = vmatpush1.bf16.msra.mxu1 %v9188_v29  ;;  %v9253_v23 = vcombine.high %v1006_v17, %v1010_v18  ;;  %v1013_v29 = vld [vmem:[%s10995_s9 + $0x1310] sm:$0xff] }
 0x370   : > { %5762 = vmatprep.subr.bf16.mxu0 %v9195_v25  ;;  %6008 = vmatprep.subr.bf16.mxu1 %v9197_v39  ;;  %v1017_v25 = vld [vmem:[%s10995_s9 + $0x1330] sm:$0xff]  ;;  %v1014_v39 = vld [vmem:[%s10995_s9 + $0x1318] sm:$0xff] }
 0x371   : > { %v9259_v60 = vcombine.high %v1013_v29, %v1017_v25  ;;  %v9258_v35 = vcombine.low %v1013_v29, %v1017_v25  ;;  %v9260_v36 = vcombine.low %v1014_v39, %v1018_v26  ;;  %v1074_v29 = vld [vmem:[%s10995_s9 + $0x14f8] sm:$0xff] }
 0x373   : > { %5763 = vmatpush1.bf16.msra.mxu0 %v9194_v31  ;;  %6009 = vmatpush1.bf16.msra.mxu1 %v9196_v32  ;;  %v9261_v31 = vcombine.high %v1014_v39, %v1018_v26  ;;  %v1021_v32 = vld [vmem:[%s10995_s9 + $0x1350] sm:$0xff] }
 0x374   : > { %5764 = vmatprep.subr.bf16.mxu0 %v9203_v0  ;;  %6010 = vmatprep.subr.bf16.mxu1 %v9205_v34  ;;  %v1025_v0 = vld [vmem:[%s10995_s9 + $0x1370] sm:$0xff]  ;;  %v1022_v34 = vld [vmem:[%s10995_s9 + $0x1358] sm:$0xff] }
 0x375   : > { %v9267_v37 = vcombine.high %v1021_v32, %v1025_v0  ;;  %v9266_v43 = vcombine.low %v1021_v32, %v1025_v0  ;;  %v9268_v44 = vcombine.low %v1022_v34, %v1026_v49 }
 0x377   : > { %5765 = vmatpush1.bf16.msra.mxu0 %v9202_v38  ;;  %6011 = vmatpush1.bf16.msra.mxu1 %v9204_v40  ;;  %v9269_v38 = vcombine.high %v1022_v34, %v1026_v49  ;;  %v1029_v40 = vld [vmem:[%s10995_s9 + $0x1390] sm:$0xff] }
 0x378   : > { %5766 = vmatprep.subr.bf16.mxu0 %v9211_v41  ;;  %6012 = vmatprep.subr.bf16.mxu1 %v9213_v59  ;;  %v1033_v41 = vld [vmem:[%s10995_s9 + $0x13b0] sm:$0xff]  ;;  %v1030_v59 = vld [vmem:[%s10995_s9 + $0x1398] sm:$0xff] }
 0x379   : > { %v9275_v46 = vcombine.high %v1029_v40, %v1033_v41  ;;  %v9274_v52 = vcombine.low %v1029_v40, %v1033_v41  ;;  %v9276_v53 = vcombine.low %v1030_v59, %v1034_v42  ;;  %v1085_v49 = vld [vmem:[%s10995_s9 + $0x1550] sm:$0xff] }
 0x37b   : > { %5767 = vmatpush1.bf16.msra.mxu0 %v9210_v47  ;;  %6013 = vmatpush1.bf16.msra.mxu1 %v9212_v10  ;;  %v9277_v47 = vcombine.high %v1030_v59, %v1034_v42  ;;  %v1037_v10 = vld [vmem:[%s10995_s9 + $0x13d0] sm:$0xff] }
 0x37c   : > { %5768 = vmatprep.subr.bf16.mxu0 %v9219_v50  ;;  %6014 = vmatprep.subr.bf16.mxu1 %v9221_v51  ;;  %v1041_v50 = vld [vmem:[%s10995_s9 + $0x13f0] sm:$0xff]  ;;  %v1038_v51 = vld [vmem:[%s10995_s9 + $0x13d8] sm:$0xff] }
 0x37d   : > { %v9283_v55 = vcombine.high %v1037_v10, %v1041_v50  ;;  %v9282_v62 = vcombine.low %v1037_v10, %v1041_v50  ;;  %v9284_v63 = vcombine.low %v1038_v51, %v1042_v6  ;;  %v1093_v42 = vld [vmem:[%s10995_s9 + $0x1590] sm:$0xff] }
 0x37f   : > { %5769 = vmatpush1.bf16.msra.mxu0 %v9218_v56  ;;  %6015 = vmatpush1.bf16.msra.mxu1 %v9220_v57  ;;  %v9285_v56 = vcombine.high %v1038_v51, %v1042_v6  ;;  %v1045_v57 = vld [vmem:[%s10995_s9 + $0x1410] sm:$0xff] }
 0x380   : > { %5770 = vmatprep.subr.bf16.mxu0 %v9227_v58  ;;  %6016 = vmatprep.subr.bf16.mxu1 %v9229_v54  ;;  %v1049_v58 = vld [vmem:[%s10995_s9 + $0x1430] sm:$0xff]  ;;  %v1046_v54 = vld [vmem:[%s10995_s9 + $0x1418] sm:$0xff] }
 0x381   : > { %v9291_v1 = vcombine.high %v1045_v57, %v1049_v58  ;;  %v9290_v30 = vcombine.low %v1045_v57, %v1049_v58  ;;  %v9292_v7 = vcombine.low %v1046_v54, %v1050_v11  ;;  %v1101_v6 = vld [vmem:[%s10995_s9 + $0x15d0] sm:$0xff] }
 0x383   : > { %5771 = vmatpush1.bf16.msra.mxu0 %v9226_v2  ;;  %6017 = vmatpush1.bf16.msra.mxu1 %v9228_v24  ;;  %v9293_v2 = vcombine.high %v1046_v54, %v1050_v11  ;;  %v1053_v24 = vld [vmem:[%s10995_s9 + $0x1450] sm:$0xff] }
 0x384   : > { %5772 = vmatprep.subr.bf16.mxu0 %v9235_v3  ;;  %6018 = vmatprep.subr.bf16.mxu1 %v9237_v4  ;;  %v1057_v3 = vld [vmem:[%s10995_s9 + $0x1470] sm:$0xff]  ;;  %v1054_v4 = vld [vmem:[%s10995_s9 + $0x1458] sm:$0xff] }
 0x385   : > { %v9299_v8 = vcombine.high %v1053_v24, %v1057_v3  ;;  %v9298_v16 = vcombine.low %v1053_v24, %v1057_v3  ;;  %v9300_v17 = vcombine.low %v1054_v4, %v1058_v5  ;;  %v1109_v11 = vld [vmem:[%s10995_s9 + $0x1610] sm:$0xff] }
 0x387   : > { %5773 = vmatpush1.bf16.msra.mxu0 %v9234_v9  ;;  %6019 = vmatpush1.bf16.msra.mxu1 %v9236_v12  ;;  %v9301_v9 = vcombine.high %v1054_v4, %v1058_v5  ;;  %v1061_v12 = vld [vmem:[%s10995_s9 + $0x1490] sm:$0xff] }
 0x388   : > { %5774 = vmatprep.subr.bf16.mxu0 %v9243_v13  ;;  %6020 = vmatprep.subr.bf16.mxu1 %v9245_v19  ;;  %v1065_v13 = vld [vmem:[%s10995_s9 + $0x14b0] sm:$0xff]  ;;  %v1062_v19 = vld [vmem:[%s10995_s9 + $0x1498] sm:$0xff] }
 0x389   : > { %v9307_v18 = vcombine.high %v1061_v12, %v1065_v13  ;;  %v9308_v25 = vcombine.low %v1062_v19, %v1066_v14  ;;  %v1117_v5 = vld [vmem:[%s10995_s9 + $0x1650] sm:$0xff] }
 0x38b   : > { %5775 = vmatpush1.bf16.msra.mxu0 %v9242_v20  ;;  %6021 = vmatpush1.bf16.msra.mxu1 %v9244_v21  ;;  %v9309_v20 = vcombine.high %v1062_v19, %v1066_v14  ;;  %v1069_v21 = vld [vmem:[%s10995_s9 + $0x14d0] sm:$0xff] }
 0x38c   : > { %5776 = vmatprep.subr.bf16.mxu0 %v9251_v22  ;;  %6022 = vmatprep.subr.bf16.mxu1 %v9253_v23  ;;  %v1073_v22 = vld [vmem:[%s10995_s9 + $0x14f0] sm:$0xff]  ;;  %v1070_v23 = vld [vmem:[%s10995_s9 + $0x14d8] sm:$0xff] }
 0x38d   : > { %v9315_v39 = vcombine.high %v1069_v21, %v1073_v22  ;;  %v9317_v26 = vcombine.high %v1070_v23, %v1074_v29  ;;  %v9314_v32 = vcombine.low %v1069_v21, %v1073_v22  ;;  %v1125_v14 = vld [vmem:[%s10995_s9 + $0x1690] sm:$0xff] }
 0x38f   : > { %5777 = vmatpush1.bf16.msra.mxu0 %v9250_v27  ;;  %6023 = vmatpush1.bf16.msra.mxu1 %v9252_v28  ;;  %v1077_v27 = vld [vmem:[%s10995_s9 + $0x1510] sm:$0xff] }
 0x390   : > { %5778 = vmatprep.subr.bf16.mxu0 %v9259_v60  ;;  %6024 = vmatprep.subr.bf16.mxu1 %v9261_v31  ;;  %v1081_v28 = vld [vmem:[%s10995_s9 + $0x1530] sm:$0xff]  ;;  %v1078_v60 = vld [vmem:[%s10995_s9 + $0x1518] sm:$0xff] }
 0x391   : > { %v1082_v31 = vld [vmem:[%s10995_s9 + $0x1538] sm:$0xff]  ;;  %v9323_v0 = vcombine.high %v1077_v27, %v1081_v28 }
 0x392   : > { %v9325_v34 = vcombine.high %v1078_v60, %v1082_v31  ;;  %v9324_v40 = vcombine.low %v1078_v60, %v1082_v31  ;;  %v1141_v31 = vld [vmem:[%s10995_s9 + $0x1710] sm:$0xff] }
 0x393   : > { %5779 = vmatpush1.bf16.msra.mxu0 %v9258_v35  ;;  %6025 = vmatpush1.bf16.msra.mxu1 %v9260_v36  ;;  %v1089_v35 = vld [vmem:[%s10995_s9 + $0x1570] sm:$0xff]  ;;  %v1086_v36 = vld [vmem:[%s10995_s9 + $0x1558] sm:$0xff] }
 0x394   : > { %5780 = vmatprep.subr.bf16.mxu0 %v9267_v37  ;;  %6026 = vmatprep.subr.bf16.mxu1 %v9269_v38  ;;  %v1090_v37 = vld [vmem:[%s10995_s9 + $0x1578] sm:$0xff]  ;;  %v9322_v38 = vcombine.low %v1077_v27, %v1081_v28  ;;  %v9331_v41 = vcombine.high %v1085_v49, %v1089_v35 }
 0x395   : > { %v9333_v59 = vcombine.high %v1086_v36, %v1090_v37  ;;  %v9332_v10 = vcombine.low %v1086_v36, %v1090_v37  ;;  %v1149_v37 = vld [vmem:[%s10995_s9 + $0x1750] sm:$0xff] }
 0x397   : > { %5781 = vmatpush1.bf16.msra.mxu0 %v9266_v43  ;;  %6027 = vmatpush1.bf16.msra.mxu1 %v9268_v44  ;;  %v1097_v43 = vld [vmem:[%s10995_s9 + $0x15b0] sm:$0xff]  ;;  %v1094_v44 = vld [vmem:[%s10995_s9 + $0x1598] sm:$0xff] }
 0x398   : > { %5782 = vmatprep.subr.bf16.mxu0 %v9275_v46  ;;  %6028 = vmatprep.subr.bf16.mxu1 %v9277_v47  ;;  %v1098_v46 = vld [vmem:[%s10995_s9 + $0x15b8] sm:$0xff]  ;;  %v9330_v47 = vcombine.low %v1085_v49, %v1089_v35  ;;  %v9339_v50 = vcombine.high %v1093_v42, %v1097_v43 }
 0x399   : > { %v9341_v51 = vcombine.high %v1094_v44, %v1098_v46  ;;  %v9340_v57 = vcombine.low %v1094_v44, %v1098_v46  ;;  %v1157_v46 = vld [vmem:[%s10995_s9 + $0x1790] sm:$0xff] }
 0x39b   : > { %5783 = vmatpush1.bf16.msra.mxu0 %v9274_v52  ;;  %6029 = vmatpush1.bf16.msra.mxu1 %v9276_v53  ;;  %v1105_v52 = vld [vmem:[%s10995_s9 + $0x15f0] sm:$0xff]  ;;  %v1102_v53 = vld [vmem:[%s10995_s9 + $0x15d8] sm:$0xff] }
 0x39c   : > { %5784 = vmatprep.subr.bf16.mxu0 %v9283_v55  ;;  %6030 = vmatprep.subr.bf16.mxu1 %v9285_v56  ;;  %v1106_v55 = vld [vmem:[%s10995_s9 + $0x15f8] sm:$0xff]  ;;  %v9338_v56 = vcombine.low %v1093_v42, %v1097_v43  ;;  %v9347_v58 = vcombine.high %v1101_v6, %v1105_v52 }
 0x39d   : > { %v9349_v54 = vcombine.high %v1102_v53, %v1106_v55  ;;  %v9348_v24 = vcombine.low %v1102_v53, %v1106_v55  ;;  %v1165_v55 = vld [vmem:[%s10995_s9 + $0x17d0] sm:$0xff] }
 0x39f   : > { %5785 = vmatpush1.bf16.msra.mxu0 %v9282_v62  ;;  %6031 = vmatpush1.bf16.msra.mxu1 %v9284_v63  ;;  %v1113_v62 = vld [vmem:[%s10995_s9 + $0x1630] sm:$0xff]  ;;  %v1110_v63 = vld [vmem:[%s10995_s9 + $0x1618] sm:$0xff] }
 0x3a0   : > { %5795 = vmatprep.subr.bf16.mxu0 %v9291_v1  ;;  %6041 = vmatprep.subr.bf16.mxu1 %v9293_v2  ;;  %v1114_v1 = vld [vmem:[%s10995_s9 + $0x1638] sm:$0xff]  ;;  %v9346_v2 = vcombine.low %v1101_v6, %v1105_v52  ;;  %v9355_v3 = vcombine.high %v1109_v11, %v1113_v62 }
 0x3a1   : > { %v9357_v4 = vcombine.high %v1110_v63, %v1114_v1 }
 0x3a2   : > { %5787 = vmatmul.mubr.bf16.vlgmr.msra.gmra.mrb[4].mxu0 %v11420_v48  ;;  %6033 = vmatmul.mubr.bf16.vlgmr.msra.gmra.mrb[4].mxu1 %v11420_v48  ;;  %v9306_v48 = vcombine.low %v1061_v12, %v1065_v13  ;;  %v9356_v12 = vcombine.low %v1110_v63, %v1114_v1 }
 0x3a3   : > { %5796 = vmatpush1.bf16.msra.mxu0 %v9290_v30  ;;  %6042 = vmatpush1.bf16.msra.mxu1 %v9292_v7  ;;  %v1121_v30 = vld [vmem:[%s10995_s9 + $0x1670] sm:$0xff]  ;;  %v1118_v7 = vld [vmem:[%s10995_s9 + $0x1658] sm:$0xff] }
 0x3a4   : > { %5797 = vmatprep.subr.bf16.mxu0 %v9299_v8  ;;  %6043 = vmatprep.subr.bf16.mxu1 %v9301_v9  ;;  %v1122_v8 = vld [vmem:[%s10995_s9 + $0x1678] sm:$0xff]  ;;  %v9354_v9 = vcombine.low %v1109_v11, %v1113_v62  ;;  %v9363_v13 = vcombine.high %v1117_v5, %v1121_v30 }
 0x3a5   : > { %5827 = vmatprep.mubr.bf16.mxu0 %v11428_v61  ;;  %6073 = vmatprep.mubr.bf16.mxu1 %v11428_v61  ;;  %v9316_v61 = vcombine.low %v1070_v23, %v1074_v29  ;;  %v9365_v19 = vcombine.high %v1118_v7, %v1122_v8  ;;  %v9364_v21 = vcombine.low %v1118_v7, %v1122_v8  ;;  %v1133_v29 = vld [vmem:[%s10995_s9 + $0x16d0] sm:$0xff] }
 0x3a7   : > { %5798 = vmatpush1.bf16.msra.mxu0 %v9298_v16  ;;  %6044 = vmatpush1.bf16.msra.mxu1 %v9300_v17  ;;  %v1129_v16 = vld [vmem:[%s10995_s9 + $0x16b0] sm:$0xff]  ;;  %v1126_v17 = vld [vmem:[%s10995_s9 + $0x1698] sm:$0xff] }
 0x3a8   : > { %5799 = vmatprep.subr.bf16.mxu0 %v9307_v18  ;;  %6045 = vmatprep.subr.bf16.mxu1 %v9309_v20  ;;  %v1130_v18 = vld [vmem:[%s10995_s9 + $0x16b8] sm:$0xff]  ;;  %v9362_v20 = vcombine.low %v1117_v5, %v1121_v30  ;;  %v9371_v22 = vcombine.high %v1125_v14, %v1129_v16 }
 0x3a9   : > { %v9373_v23 = vcombine.high %v1126_v17, %v1130_v18  ;;  %v9372_v27 = vcombine.low %v1126_v17, %v1130_v18 }
 0x3ab   : > { %5800 = vmatpush1.bf16.msra.mxu0 %v9306_v48  ;;  %6046 = vmatpush1.bf16.msra.mxu1 %v9308_v25  ;;  %v1137_v48 = vld [vmem:[%s10995_s9 + $0x16f0] sm:$0xff]  ;;  %v1134_v25 = vld [vmem:[%s10995_s9 + $0x16d8] sm:$0xff] }
 0x3ac   : > { %5801 = vmatprep.subr.bf16.mxu0 %v9315_v39  ;;  %6047 = vmatprep.subr.bf16.mxu1 %v9317_v26  ;;  %v1138_v39 = vld [vmem:[%s10995_s9 + $0x16f8] sm:$0xff]  ;;  %v9370_v26 = vcombine.low %v1125_v14, %v1129_v16  ;;  %v9379_v28 = vcombine.high %v1133_v29, %v1137_v48  ;;  %v400_v16 = vld [vmem:[#allocation2 + $0x8] sm:$0xff] }
 0x3ad   : > { %v9381_v60 = vcombine.high %v1134_v25, %v1138_v39  ;;  %v9380_v49 = vcombine.low %v1134_v25, %v1138_v39  ;;  %v9991_v25 = vld [vmem:[#allocation9 + $0x28] ss:$16 sps:$4 sm:$0xff] (!%p9414_p7)   ;;  %v9992_v39 = vld [vmem:[#allocation9 + $0x44] ss:$16 sps:$4 sm:$0xff] (!%p9414_p7)  }
 0x3af   : > { %5802 = vmatpush1.bf16.msra.mxu0 %v9314_v32  ;;  %6048 = vmatpush1.bf16.msra.mxu1 %v9316_v61  ;;  %v1145_v32 = vld [vmem:[%s10995_s9 + $0x1730] sm:$0xff]  ;;  %v1142_v61 = vld [vmem:[%s10995_s9 + $0x1718] sm:$0xff] }
 0x3b0   : > { %5803 = vmatprep.subr.bf16.mxu0 %v9323_v0  ;;  %6049 = vmatprep.subr.bf16.mxu1 %v9325_v34  ;;  %v1146_v0 = vld [vmem:[%s10995_s9 + $0x1738] sm:$0xff]  ;;  %v9378_v34 = vcombine.low %v1133_v29, %v1137_v48  ;;  %v9387_v35 = vcombine.high %v1141_v31, %v1145_v32  ;;  %v9988_v29 = vld [vmem:[#allocation9 + $0x2c] ss:$16 sps:$4 sm:$0xff] (!%p9414_p7)  }
 0x3b1   : > { %v9389_v36 = vcombine.high %v1142_v61, %v1146_v0  ;;  %v9388_v42 = vcombine.low %v1142_v61, %v1146_v0  ;;  %v9990_v48 = vld [vmem:[#allocation9 + $0x20] ss:$16 sps:$4 sm:$0xff] (!%p9414_p7)   ;;  %v10003_v61 = vld [vmem:[#allocation9 + $0x68] ss:$16 sps:$4 sm:$0xff] (!%p9414_p7)   ;;  %v10004_v0 = vld [vmem:[#allocation9 + $0x84] ss:$16 sps:$4 sm:$0xff] (!%p9414_p7)  }
 0x3b3   : > { %5804 = vmatpush1.bf16.msra.mxu0 %v9322_v38  ;;  %6050 = vmatpush1.bf16.msra.mxu1 %v9324_v40  ;;  %v1153_v38 = vld [vmem:[%s10995_s9 + $0x1770] sm:$0xff]  ;;  %v1150_v40 = vld [vmem:[%s10995_s9 + $0x1758] sm:$0xff] }
 0x3b4   : > { %5805 = vmatprep.subr.bf16.mxu0 %v9331_v41  ;;  %6051 = vmatprep.subr.bf16.mxu1 %v9333_v59  ;;  %v1154_v41 = vld [vmem:[%s10995_s9 + $0x1778] sm:$0xff]  ;;  %v9386_v59 = vcombine.low %v1141_v31, %v1145_v32  ;;  %v9395_v43 = vcombine.high %v1149_v37, %v1153_v38  ;;  %v10000_v31 = vld [vmem:[#allocation9 + $0x6c] ss:$16 sps:$4 sm:$0xff] (!%p9414_p7)  }
 0x3b5   : > { %v9397_v44 = vcombine.high %v1150_v40, %v1154_v41  ;;  %v9396_v6 = vcombine.low %v1150_v40, %v1154_v41  ;;  %v10002_v32 = vld [vmem:[#allocation9 + $0x60] ss:$16 sps:$4 sm:$0xff] (!%p9414_p7)   ;;  %v10015_v40 = vld [vmem:[#allocation9 + $0xa8] ss:$16 sps:$4 sm:$0xff] (!%p9414_p7)   ;;  %v10016_v41 = vld [vmem:[#allocation9 + $0xc4] ss:$16 sps:$4 sm:$0xff] (!%p9414_p7)  }
 0x3b7   : > { %5806 = vmatpush1.bf16.msra.mxu0 %v9330_v47  ;;  %6052 = vmatpush1.bf16.msra.mxu1 %v9332_v10  ;;  %v1161_v47 = vld [vmem:[%s10995_s9 + $0x17b0] sm:$0xff]  ;;  %v1158_v10 = vld [vmem:[%s10995_s9 + $0x1798] sm:$0xff] }
 0x3b8   : > { %5807 = vmatprep.subr.bf16.mxu0 %v9339_v50  ;;  %6053 = vmatprep.subr.bf16.mxu1 %v9341_v51  ;;  %v1162_v50 = vld [vmem:[%s10995_s9 + $0x17b8] sm:$0xff]  ;;  %v9394_v51 = vcombine.low %v1149_v37, %v1153_v38  ;;  %v9403_v52 = vcombine.high %v1157_v46, %v1161_v47  ;;  %v10012_v37 = vld [vmem:[#allocation9 + $0xac] ss:$16 sps:$4 sm:$0xff] (!%p9414_p7)  }
 0x3b9   : > { %v9405_v53 = vcombine.high %v1158_v10, %v1162_v50  ;;  %v9404_v11 = vcombine.low %v1158_v10, %v1162_v50  ;;  %v10014_v38 = vld [vmem:[#allocation9 + $0xa0] ss:$16 sps:$4 sm:$0xff] (!%p9414_p7)   ;;  %v10027_v10 = vld [vmem:[#allocation9 + $0xe8] ss:$16 sps:$4 sm:$0xff] (!%p9414_p7)   ;;  %v10028_v50 = vld [vmem:[#allocation9 + $0x104] ss:$16 sps:$4 sm:$0xff] (!%p9414_p7)  }
 0x3bb   : > { %5808 = vmatpush1.bf16.msra.mxu0 %v9338_v56  ;;  %6054 = vmatpush1.bf16.msra.mxu1 %v9340_v57  ;;  %v1169_v56 = vld [vmem:[%s10995_s9 + $0x17f0] sm:$0xff]  ;;  %v1166_v57 = vld [vmem:[%s10995_s9 + $0x17d8] sm:$0xff] }
 0x3bc   : > { %5809 = vmatprep.subr.bf16.mxu0 %v9347_v58  ;;  %6055 = vmatprep.subr.bf16.mxu1 %v9349_v54  ;;  %v1170_v58 = vld [vmem:[%s10995_s9 + $0x17f8] sm:$0xff]  ;;  %v9402_v54 = vcombine.low %v1157_v46, %v1161_v47  ;;  %v9411_v62 = vcombine.high %v1165_v55, %v1169_v56  ;;  %v9410_v1 = vcombine.low %v1165_v55, %v1169_v56  ;;  %v10024_v46 = vld [vmem:[#allocation9 + $0xec] ss:$16 sps:$4 sm:$0xff] (!%p9414_p7)  }
 0x3bd   : > { %v9413_v63 = vcombine.high %v1166_v57, %v1170_v58  ;;  %v10026_v47 = vld [vmem:[#allocation9 + $0xe0] ss:$16 sps:$4 sm:$0xff] (!%p9414_p7)   ;;  %v10036_v55 = vld [vmem:[#allocation9 + $0x12c] ss:$16 sps:$4 sm:$0xff] (!%p9414_p7)  }
 0x3be   : > { %v10038_v56 = vld [vmem:[#allocation9 + $0x120] ss:$16 sps:$4 sm:$0xff] (!%p9414_p7)  }
 0x3bf   : > { %5810 = vmatpush1.bf16.msra.mxu0 %v9346_v2  ;;  %6056 = vmatpush1.bf16.msra.mxu1 %v9348_v24  ;;  %v9412_v2 = vcombine.low %v1166_v57, %v1170_v58  ;;  %v10039_v57 = vld [vmem:[#allocation9 + $0x128] ss:$16 sps:$4 sm:$0xff] (!%p9414_p7)   ;;  %v10040_v58 = vld [vmem:[#allocation9 + $0x144] ss:$16 sps:$4 sm:$0xff] (!%p9414_p7)  }
 0x3c0   : > { %5811 = vmatprep.subr.bf16.mxu0 %v9355_v3  ;;  %6057 = vmatprep.subr.bf16.mxu1 %v9357_v4 }
 0x3c3   : > { %5812 = vmatpush1.bf16.msra.mxu0 %v9354_v9  ;;  %6058 = vmatpush1.bf16.msra.mxu1 %v9356_v12 }
 0x3c4   : > { %5813 = vmatprep.subr.bf16.mxu0 %v9363_v13  ;;  %6059 = vmatprep.subr.bf16.mxu1 %v9365_v19 }
 0x3c7   : > { %5814 = vmatpush1.bf16.msra.mxu0 %v9362_v20  ;;  %6060 = vmatpush1.bf16.msra.mxu1 %v9364_v21  ;;  %v9982_v20 = vld [vmem:[#allocation9 + $0xc] ss:$16 sps:$4 sm:$0xff] (!%p9414_p7)   ;;  %v9984_v21 = vld [vmem:[#allocation9] ss:$16 sps:$4 sm:$0xff] (!%p9414_p7)  }
 0x3c8   : > { %5815 = vmatprep.subr.bf16.mxu0 %v9371_v22  ;;  %6061 = vmatprep.subr.bf16.mxu1 %v9373_v23  ;;  %v9985_v22 = vld [vmem:[#allocation9 + $0x8] ss:$16 sps:$4 sm:$0xff] (!%p9414_p7)   ;;  %v9986_v23 = vld [vmem:[#allocation9 + $0x24] ss:$16 sps:$4 sm:$0xff] (!%p9414_p7)  }
 0x3cb   : > { %5816 = vmatpush1.bf16.msra.mxu0 %v9370_v26  ;;  %6062 = vmatpush1.bf16.msra.mxu1 %v9372_v27  ;;  %v9994_v26 = vld [vmem:[#allocation9 + $0x4c] ss:$16 sps:$4 sm:$0xff] (!%p9414_p7)   ;;  %v9996_v27 = vld [vmem:[#allocation9 + $0x40] ss:$16 sps:$4 sm:$0xff] (!%p9414_p7)  }
 0x3cc   : > { %5817 = vmatprep.subr.bf16.mxu0 %v9379_v28  ;;  %6063 = vmatprep.subr.bf16.mxu1 %v9381_v60  ;;  %v9997_v28 = vld [vmem:[#allocation9 + $0x48] ss:$16 sps:$4 sm:$0xff] (!%p9414_p7)   ;;  %v9998_v60 = vld [vmem:[#allocation9 + $0x64] ss:$16 sps:$4 sm:$0xff] (!%p9414_p7)  }
 0x3cf   : > { %5818 = vmatpush1.bf16.msra.mxu0 %v9378_v34  ;;  %6064 = vmatpush1.bf16.msra.mxu1 %v9380_v49  ;;  %v10006_v34 = vld [vmem:[#allocation9 + $0x8c] ss:$16 sps:$4 sm:$0xff] (!%p9414_p7)   ;;  %v10008_v49 = vld [vmem:[#allocation9 + $0x80] ss:$16 sps:$4 sm:$0xff] (!%p9414_p7)  }
 0x3d0   : > { %5819 = vmatprep.subr.bf16.mxu0 %v9387_v35  ;;  %6065 = vmatprep.subr.bf16.mxu1 %v9389_v36  ;;  %v10009_v35 = vld [vmem:[#allocation9 + $0x88] ss:$16 sps:$4 sm:$0xff] (!%p9414_p7)   ;;  %v10010_v36 = vld [vmem:[#allocation9 + $0xa4] ss:$16 sps:$4 sm:$0xff] (!%p9414_p7)  }
 0x3d3   : > { %5820 = vmatpush1.bf16.msra.mxu0 %v9386_v59  ;;  %6066 = vmatpush1.bf16.msra.mxu1 %v9388_v42  ;;  %v10018_v59 = vld [vmem:[#allocation9 + $0xcc] ss:$16 sps:$4 sm:$0xff] (!%p9414_p7)   ;;  %v10020_v42 = vld [vmem:[#allocation9 + $0xc0] ss:$16 sps:$4 sm:$0xff] (!%p9414_p7)  }
 0x3d4   : > { %5821 = vmatprep.subr.bf16.mxu0 %v9395_v43  ;;  %6067 = vmatprep.subr.bf16.mxu1 %v9397_v44  ;;  %v10021_v43 = vld [vmem:[#allocation9 + $0xc8] ss:$16 sps:$4 sm:$0xff] (!%p9414_p7)   ;;  %v10022_v44 = vld [vmem:[#allocation9 + $0xe4] ss:$16 sps:$4 sm:$0xff] (!%p9414_p7)  }
 0x3d7   : > { %5822 = vmatpush1.bf16.msra.mxu0 %v9394_v51  ;;  %6068 = vmatpush1.bf16.msra.mxu1 %v9396_v6  ;;  %v10030_v51 = vld [vmem:[#allocation9 + $0x10c] ss:$16 sps:$4 sm:$0xff] (!%p9414_p7)   ;;  %v10032_v6 = vld [vmem:[#allocation9 + $0x100] ss:$16 sps:$4 sm:$0xff] (!%p9414_p7)  }
 0x3d8   : > { %5823 = vmatprep.subr.bf16.mxu0 %v9403_v52  ;;  %6069 = vmatprep.subr.bf16.mxu1 %v9405_v53  ;;  %v10033_v52 = vld [vmem:[#allocation9 + $0x108] ss:$16 sps:$4 sm:$0xff] (!%p9414_p7)   ;;  %v10034_v53 = vld [vmem:[#allocation9 + $0x124] ss:$16 sps:$4 sm:$0xff] (!%p9414_p7)  }
 0x3db   : > { %5824 = vmatpush1.bf16.msra.mxu0 %v9402_v54  ;;  %6070 = vmatpush1.bf16.msra.mxu1 %v9404_v11  ;;  %v10042_v54 = vld [vmem:[#allocation9 + $0x14c] ss:$16 sps:$4 sm:$0xff] (!%p9414_p7)   ;;  %v10044_v11 = vld [vmem:[#allocation9 + $0x140] ss:$16 sps:$4 sm:$0xff] (!%p9414_p7)  }
 0x3dc   : > { %5825 = vmatprep.subr.bf16.mxu0 %v9411_v62  ;;  %6071 = vmatprep.subr.bf16.mxu1 %v9413_v63  ;;  %v10045_v62 = vld [vmem:[#allocation9 + $0x148] ss:$16 sps:$4 sm:$0xff] (!%p9414_p7)   ;;  %v6140_v63 = vsub.s32 (!%p9414_p7), 0, %v11037_v45 }
 0x3df   : > { %5826 = vmatpush1.bf16.msra.mxu0 %v9410_v1  ;;  %6072 = vmatpush1.bf16.msra.mxu1 %v9412_v2  ;;  %v10046_v1 = vld [vmem:[#allocation9 + $0x164] ss:$16 sps:$4 sm:$0xff] (!%p9414_p7)   ;;  %v6144_v2 = vsub.s32 (!%p9414_p7), 1, %v11037_v45 }
 0x3e0   : > { %7984 = vmatprep.subr.bf16.mxu1 (!%p9414_p7), %v9982_v20 }
 0x3e2   : > { %5828 = vmatmul.mubr.bf16.vlgmr.msra.gmra.mrb[4].mxu0 %v11496_v15  ;;  %6074 = vmatmul.mubr.bf16.vlgmr.msra.gmra.mrb[4].mxu1 %v11496_v15  ;;  %v9980_v15 = vld [vmem:[#allocation9 + $0x4] ss:$16 sps:$4 sm:$0xff] (!%p9414_p7)  }
 0x3e3   : > { %7820 = vmatprep.subr.bf16.mxu0 (!%p9414_p7), %v9980_v15  ;;  %7985 = vmatpush1.bf16.msra.mxu1 (!%p9414_p7), %v9985_v22  ;;  %v10057_v15 = vld [vmem:[#allocation9 + $0x188] ss:$16 sps:$4 sm:$0xff] (!%p9414_p7)   ;;  %v10060_v22 = vld [vmem:[#allocation9 + $0x1ac] ss:$16 sps:$4 sm:$0xff] (!%p9414_p7)  }
 0x3e4   : > { %7821 = vmatpush1.bf16.msra.mxu0 (!%p9414_p7), %v9984_v21  ;;  %7986 = vmatprep.subr.bf16.mxu1 (!%p9414_p7), %v9988_v29  ;;  %v10058_v21 = vld [vmem:[#allocation9 + $0x1a4] ss:$16 sps:$4 sm:$0xff] (!%p9414_p7)  }
 0x3e5   : > { %7822 = vmatprep.subr.bf16.mxu0 (!%p9414_p7), %v9986_v23  ;;  %v6134_v29 = vld [vmem:[#allocation2] sm:$0xff] (!%p9414_p7) }
 0x3e7   : > { %7987 = vmatpush1.bf16.msra.mxu1 (!%p9414_p7), %v9991_v25  ;;  %v10062_v25 = vld [vmem:[#allocation9 + $0x1a0] ss:$16 sps:$4 sm:$0xff] (!%p9414_p7)  }
 0x3e8   : > { %7823 = vmatpush1.bf16.msra.mxu0 (!%p9414_p7), %v9990_v48  ;;  %7988 = vmatprep.subr.bf16.mxu1 (!%p9414_p7), %v9994_v26  ;;  %v10064_v26 = vld [vmem:[#allocation9 + $0x1c4] ss:$16 sps:$4 sm:$0xff] (!%p9414_p7)  }
 0x3e9   : > { %7824 = vmatprep.subr.bf16.mxu0 (!%p9414_p7), %v9992_v39  ;;  %v10063_v39 = vld [vmem:[#allocation9 + $0x1a8] ss:$16 sps:$4 sm:$0xff] (!%p9414_p7)  }
 0x3eb   : > { %7989 = vmatpush1.bf16.msra.mxu1 (!%p9414_p7), %v9997_v28 }
 0x3ec   : > { %7825 = vmatpush1.bf16.msra.mxu0 (!%p9414_p7), %v9996_v27  ;;  %7990 = vmatprep.subr.bf16.mxu1 (!%p9414_p7), %v10000_v31  ;;  %v10066_v27 = vld [vmem:[#allocation9 + $0x1cc] ss:$16 sps:$4 sm:$0xff] (!%p9414_p7)   ;;  %v10068_v31 = vld [vmem:[#allocation9 + $0x1c0] ss:$16 sps:$4 sm:$0xff] (!%p9414_p7)  }
 0x3ed   : > { %7826 = vmatprep.subr.bf16.mxu0 (!%p9414_p7), %v9998_v60 }
 0x3ef   : > { %7991 = vmatpush1.bf16.msra.mxu1 (!%p9414_p7), %v10003_v61  ;;  %v10070_v61 = vld [vmem:[#allocation9 + $0x1e4] ss:$16 sps:$4 sm:$0xff] (!%p9414_p7)  }
 0x3f0   : > { %7827 = vmatpush1.bf16.msra.mxu0 (!%p9414_p7), %v10002_v32  ;;  %7992 = vmatprep.subr.bf16.mxu1 (!%p9414_p7), %v10006_v34  ;;  %v10069_v32 = vld [vmem:[#allocation9 + $0x1c8] ss:$16 sps:$4 sm:$0xff] (!%p9414_p7)  }
 0x3f1   : > { %7828 = vmatprep.subr.bf16.mxu0 (!%p9414_p7), %v10004_v0  ;;  %v10072_v0 = vld [vmem:[#allocation9 + $0x1ec] ss:$16 sps:$4 sm:$0xff] (!%p9414_p7)  }
 0x3f3   : > { %7993 = vmatpush1.bf16.msra.mxu1 (!%p9414_p7), %v10009_v35 }
 0x3f4   : > { %7829 = vmatpush1.bf16.msra.mxu0 (!%p9414_p7), %v10008_v49  ;;  %7994 = vmatprep.subr.bf16.mxu1 (!%p9414_p7), %v10012_v37  ;;  %v10074_v37 = vld [vmem:[#allocation9 + $0x1e0] ss:$16 sps:$4 sm:$0xff] (!%p9414_p7)  }
 0x3f5   : > { %7830 = vmatprep.subr.bf16.mxu0 (!%p9414_p7), %v10010_v36 }
 0x3f7   : > { %7995 = vmatpush1.bf16.msra.mxu1 (!%p9414_p7), %v10015_v40 }
 0x3f8   : > { %7831 = vmatpush1.bf16.msra.mxu0 (!%p9414_p7), %v10014_v38  ;;  %7996 = vmatprep.subr.bf16.mxu1 (!%p9414_p7), %v10018_v59  ;;  %v10075_v38 = vld [vmem:[#allocation9 + $0x1e8] ss:$16 sps:$4 sm:$0xff] (!%p9414_p7)   ;;  %v10081_v59 = vld [vmem:[#allocation9 + $0x20c] ss:$16 sps:$4 sm:$0xff] (!%p9414_p7)  }
 0x3f9   : > { %7832 = vmatprep.subr.bf16.mxu0 (!%p9414_p7), %v10016_v41  ;;  %v10078_v41 = vld [vmem:[#allocation9 + $0x204] ss:$16 sps:$4 sm:$0xff] (!%p9414_p7)  }
 0x3fb   : > { %7997 = vmatpush1.bf16.msra.mxu1 (!%p9414_p7), %v10021_v43 }
 0x3fc   : > { %7833 = vmatpush1.bf16.msra.mxu0 (!%p9414_p7), %v10020_v42  ;;  %7998 = vmatprep.subr.bf16.mxu1 (!%p9414_p7), %v10024_v46  ;;  %v10079_v46 = vld [vmem:[#allocation9 + $0x208] ss:$16 sps:$4 sm:$0xff] (!%p9414_p7)  }
 0x3fd   : > { %7834 = vmatprep.subr.bf16.mxu0 (!%p9414_p7), %v10022_v44  ;;  %v10076_v44 = vld [vmem:[#allocation9 + $0x200] ss:$16 sps:$4 sm:$0xff] (!%p9414_p7)  }
 0x3ff   : > { %7999 = vmatpush1.bf16.msra.mxu1 (!%p9414_p7), %v10027_v10  ;;  %v10087_v10 = vld [vmem:[#allocation9 + $0x22c] ss:$16 sps:$4 sm:$0xff] (!%p9414_p7)  }
 0x400   : > { %7835 = vmatpush1.bf16.msra.mxu0 (!%p9414_p7), %v10026_v47  ;;  %8000 = vmatprep.subr.bf16.mxu1 (!%p9414_p7), %v10030_v51  ;;  %v10084_v47 = vld [vmem:[#allocation9 + $0x224] ss:$16 sps:$4 sm:$0xff] (!%p9414_p7)   ;;  %v10082_v51 = vld [vmem:[#allocation9 + $0x220] ss:$16 sps:$4 sm:$0xff] (!%p9414_p7)  }
 0x401   : > { %7836 = vmatprep.subr.bf16.mxu0 (!%p9414_p7), %v10028_v50 }
 0x403   : > { %8001 = vmatpush1.bf16.msra.mxu1 (!%p9414_p7), %v10033_v52  ;;  %v10090_v52 = vld [vmem:[#allocation9 + $0x244] ss:$16 sps:$4 sm:$0xff] (!%p9414_p7)  }
 0x404   : > { %7837 = vmatpush1.bf16.msra.mxu0 (!%p9414_p7), %v10032_v6  ;;  %8002 = vmatprep.subr.bf16.mxu1 (!%p9414_p7), %v10036_v55  ;;  %v10085_v6 = vld [vmem:[#allocation9 + $0x228] ss:$16 sps:$4 sm:$0xff] (!%p9414_p7)   ;;  %v10088_v55 = vld [vmem:[#allocation9 + $0x240] ss:$16 sps:$4 sm:$0xff] (!%p9414_p7)  }
 0x405   : > { %7838 = vmatprep.subr.bf16.mxu0 (!%p9414_p7), %v10034_v53  ;;  %v10093_v53 = vld [vmem:[#allocation9 + $0x24c] ss:$16 sps:$4 sm:$0xff] (!%p9414_p7)  }
 0x407   : > { %8003 = vmatpush1.bf16.msra.mxu1 (!%p9414_p7), %v10039_v57  ;;  %v10096_v57 = vld [vmem:[#allocation9 + $0x264] ss:$16 sps:$4 sm:$0xff] (!%p9414_p7)  }
 0x408   : > { %7839 = vmatpush1.bf16.msra.mxu0 (!%p9414_p7), %v10038_v56  ;;  %8004 = vmatprep.subr.bf16.mxu1 (!%p9414_p7), %v10042_v54  ;;  %v10091_v56 = vld [vmem:[#allocation9 + $0x248] ss:$16 sps:$4 sm:$0xff] (!%p9414_p7)   ;;  %v10094_v54 = vld [vmem:[#allocation9 + $0x260] ss:$16 sps:$4 sm:$0xff] (!%p9414_p7)  }
 0x409   : > { %7840 = vmatprep.subr.bf16.mxu0 (!%p9414_p7), %v10040_v58  ;;  %v10099_v58 = vld [vmem:[#allocation9 + $0x26c] ss:$16 sps:$4 sm:$0xff] (!%p9414_p7)  }
 0x40b   : > { %8005 = vmatpush1.bf16.msra.mxu1 (!%p9414_p7), %v10045_v62  ;;  %v10102_v62 = vld [vmem:[#allocation9 + $0x284] ss:$16 sps:$4 sm:$0xff] (!%p9414_p7)  }
 0x40c   : > { %7841 = vmatpush1.bf16.msra.mxu0 (!%p9414_p7), %v10044_v11  ;;  %v10097_v11 = vld [vmem:[#allocation9 + $0x268] ss:$16 sps:$4 sm:$0xff] (!%p9414_p7)  }
 0x40d   : > { %7842 = vmatprep.subr.bf16.mxu0 (!%p9414_p7), %v10046_v1  ;;  %v10105_v1 = vld [vmem:[#allocation9 + $0x28c] ss:$16 sps:$4 sm:$0xff] (!%p9414_p7)  }
 0x4b5   : > { %v5829_v24 = vpop.f32.mrb[4].mxu0  ;;  %v6075_v3 = vpop.f32.mrb[4].mxu1 }
 0x4b6   : > { %v5831_v4 = vpop.f32.mrb[5].mxu0  ;;  %v6077_v30 = vpop.f32.mrb[5].mxu1 }
 0x4b7   : > { %v6107_v5 = vcombine.low %v5829_v24, %v5831_v4  ;;  %v5833_v7 = vpop.f32.mrb[6].mxu0  ;;  %v6108_v8 = vcombine.low %v6075_v3, %v6077_v30  ;;  %v6079_v9 = vpop.f32.mrb[6].mxu1  ;;  %v6148_v24 = vsub.s32 (!%p9414_p7), 2, %v11037_v45  ;;  %v10048_v3 = vld [vmem:[#allocation9 + $0x16c] ss:$16 sps:$4 sm:$0xff] (!%p9414_p7)   ;;  %v6152_v4 = vsub.s32 (!%p9414_p7), 3, %v11037_v45 }
 0x4b8   : > { %v5834_v12 = vpop.f32.mrb[7].mxu0  ;;  %v6080_v19 = vpop.f32.mrb[7].mxu1  ;;  %v10050_v30 = vld [vmem:[#allocation9 + $0x160] ss:$16 sps:$4 sm:$0xff] (!%p9414_p7)   ;;  %v10051_v7 = vld [vmem:[#allocation9 + $0x168] ss:$16 sps:$4 sm:$0xff] (!%p9414_p7)   ;;  %8006 = vmatprep.subr.bf16.mxu1 (!%p9414_p7), %v10048_v3 }
 0x4b9   : > { %v6115_v13 = vrot.slane %v6107_v5, %v11729_v33  ;;  %v6122_v14 = vrot.slane %v6108_v8, %v11729_v33  ;;  %6133 = sbr.rel (%p9414_p7) target bundleno = 1863 (0x747), region = 84  ;;  %v11914_v5 = vld [vmem:[#allocation8] sm:$0xff] (!%p9414_p7)  ;;  %7843 = vmatpush1.bf16.msra.mxu0 (!%p9414_p7), %v10050_v30  ;;  %8007 = vmatpush1.bf16.msra.mxu1 (!%p9414_p7), %v10051_v7  ;;  %v10100_v3 = vld [vmem:[#allocation9 + $0x280] ss:$16 sps:$4 sm:$0xff] (!%p9414_p7)   ;;  %v10108_v7 = vld [vmem:[#allocation9 + $0x2a4] ss:$16 sps:$4 sm:$0xff] (!%p9414_p7)  }
 0x4ba   : > { %v6141_v8 = vrot.slane (!%p9414_p7), %v11914_v5, %v6140_v63  ;;  %v6145_v9 = vrot.slane (!%p9414_p7), %v11914_v5, %v6144_v2  ;;  %v6149_v12 = vrot.slane (!%p9414_p7), %v11914_v5, %v6148_v24  ;;  %v10054_v19 = vld [vmem:[#allocation9 + $0x18c] ss:$16 sps:$4 sm:$0xff] (!%p9414_p7)   ;;  %v10103_v30 = vld [vmem:[#allocation9 + $0x288] ss:$16 sps:$4 sm:$0xff] (!%p9414_p7)  }
 0x4bb   : > { %v6123_v17 = vcombine.low %v6115_v13, %v6122_v14  ;;  %v10052_v13 = vld [vmem:[#allocation9 + $0x184] ss:$16 sps:$4 sm:$0xff] (!%p9414_p7)   ;;  %v6153_v14 = vrot.slane (!%p9414_p7), %v11914_v5, %v6152_v4  ;;  %8008 = vmatprep.subr.bf16.mxu1 (!%p9414_p7), %v10054_v19  ;;  %v10117_v19 = vld [vmem:[#allocation9 + $0x2cc] ss:$16 sps:$4 sm:$0xff] (!%p9414_p7)  }
 0x4bc   : > { %7844 = vmatprep.subr.bf16.mxu0 (!%p9414_p7), %v10052_v13  ;;  %v10114_v13 = vld [vmem:[#allocation9 + $0x2c4] ss:$16 sps:$4 sm:$0xff] (!%p9414_p7)  }
 0x4bd   : > { %v6127_v18 = vadd.f32 %v6123_v17, %v400_v16  ;;  %v6170_v16 = vcombine.low (!%p9414_p7), %v6141_v8, %v6145_v9  ;;  %v6171_v17 = vcombine.low (!%p9414_p7), %v6149_v12, %v6153_v14  ;;  %8009 = vmatpush1.bf16.msra.mxu1 (!%p9414_p7), %v10057_v15  ;;  %v10111_v8 = vld [vmem:[#allocation9 + $0x2ac] ss:$16 sps:$4 sm:$0xff] (!%p9414_p7)   ;;  %v10106_v9 = vld [vmem:[#allocation9 + $0x2a0] ss:$16 sps:$4 sm:$0xff] (!%p9414_p7)   ;;  %v10109_v12 = vld [vmem:[#allocation9 + $0x2a8] ss:$16 sps:$4 sm:$0xff] (!%p9414_p7)  }
 0x4be   : > { %8010 = vmatprep.subr.bf16.mxu1 (!%p9414_p7), %v10060_v22  ;;  %v10112_v14 = vld [vmem:[#allocation9 + $0x2c0] ss:$16 sps:$4 sm:$0xff] (!%p9414_p7)   ;;  %v10129_v22 = vld [vmem:[#allocation9 + $0x30c] ss:$16 sps:$4 sm:$0xff] (!%p9414_p7)  }
 0x4bf   : > { %6129 = vst [vmem:[#allocation2 + $0x8] sm:$0xff] %v6127_v18  ;;  %v10056_v18 = vld [vmem:[#allocation9 + $0x180] ss:$16 sps:$4 sm:$0xff] (!%p9414_p7)   ;;  %v6178_v20 = vrot.slane (!%p9414_p7), %v6170_v16, %v11729_v33  ;;  %v6185_v23 = vrot.slane (!%p9414_p7), %v6171_v17, %v11729_v33  ;;  %v10115_v16 = vld [vmem:[#allocation9 + $0x2c8] ss:$16 sps:$4 sm:$0xff] (!%p9414_p7)  }
 0x4c0   : > { %7845 = vmatpush1.bf16.msra.mxu0 %v10056_v18  ;;  %v10120_v17 = vld [vmem:[#allocation9 + $0x2e4] ss:$16 sps:$4 sm:$0xff]   ;;  %v10123_v18 = vld [vmem:[#allocation9 + $0x2ec] ss:$16 sps:$4 sm:$0xff]   ;;  %v10118_v15 = vld [vmem:[#allocation9 + $0x2e0] ss:$16 sps:$4 sm:$0xff]  }
 0x4c1   : > { %v6186_v48 = vcombine.low %v6178_v20, %v6185_v23  ;;  %7846 = vmatprep.subr.bf16.mxu0 %v10058_v21  ;;  %8011 = vmatpush1.bf16.msra.mxu1 %v10063_v39  ;;  %v10121_v20 = vld [vmem:[#allocation9 + $0x2e8] ss:$16 sps:$4 sm:$0xff]   ;;  %v10126_v21 = vld [vmem:[#allocation9 + $0x304] ss:$16 sps:$4 sm:$0xff]   ;;  %v10124_v23 = vld [vmem:[#allocation9 + $0x300] ss:$16 sps:$4 sm:$0xff]  }
 0x4c2   : > { %8012 = vmatprep.subr.bf16.mxu1 %v10066_v27  ;;  %v10130_v39 = vld [vmem:[#allocation9 + $0x320] ss:$16 sps:$4 sm:$0xff]   ;;  %v10138_v27 = vld [vmem:[#allocation9 + $0x344] ss:$16 sps:$4 sm:$0xff]  }
 0x4c3   : > { %v6206_v28 = vadd.f32 %v6186_v48, %v6134_v29  ;;  %v10127_v29 = vld [vmem:[#allocation9 + $0x308] ss:$16 sps:$4 sm:$0xff]   ;;  %v10132_v48 = vld [vmem:[#allocation9 + $0x324] ss:$16 sps:$4 sm:$0xff]  }
 0x4c4   : > { %7847 = vmatpush1.bf16.msra.mxu0 %v10062_v25  ;;  %v10135_v25 = vld [vmem:[#allocation9 + $0x32c] ss:$16 sps:$4 sm:$0xff]  }
 0x4c5   : > { %v6208_v60 = vmax.f32 %v6206_v28, 0.0  ;;  %7848 = vmatprep.subr.bf16.mxu0 %v10064_v26  ;;  %8013 = vmatpush1.bf16.msra.mxu1 %v10069_v32  ;;  %v10133_v26 = vld [vmem:[#allocation9 + $0x328] ss:$16 sps:$4 sm:$0xff]   ;;  %v10141_v28 = vld [vmem:[#allocation9 + $0x34c] ss:$16 sps:$4 sm:$0xff]  }
 0x4c6   : > { %8014 = vmatprep.subr.bf16.mxu1 %v10072_v0  ;;  %v10144_v32 = vld [vmem:[#allocation9 + $0x364] ss:$16 sps:$4 sm:$0xff]   ;;  %v6156_v0 = vsub.s32 4, %v11037_v45 }
 0x4c7   : > { %v6219_v34 = vrot.slane %v6208_v60, %v11729_v33  ;;  %v6212_v49 = vcombine.high %v6208_v60, %v6208_v60  ;;  %v10136_v60 = vld [vmem:[#allocation9 + $0x340] ss:$16 sps:$4 sm:$0xff]  }
 0x4c8   : > { %7849 = vmatpush1.bf16.msra.mxu0 %v10068_v31  ;;  %v10139_v31 = vld [vmem:[#allocation9 + $0x348] ss:$16 sps:$4 sm:$0xff]  }
 0x4c9   : > { %v6227_v35 = vcombine.high %v6219_v34, %v6219_v34  ;;  %v11932_v36 = vrot.slane %v6212_v49, %v11729_v33  ;;  %7850 = vmatprep.subr.bf16.mxu0 %v10070_v61  ;;  %v6254_v43 = vpack.c.bf16 %v6219_v34, %v6219_v34  ;;  %8015 = vmatpush1.bf16.msra.mxu1 %v10075_v38  ;;  %v10147_v61 = vld [vmem:[#allocation9 + $0x36c] ss:$16 sps:$4 sm:$0xff]   ;;  %v6160_v34 = vsub.s32 5, %v11037_v45  ;;  %v10142_v49 = vld [vmem:[#allocation9 + $0x360] ss:$16 sps:$4 sm:$0xff]  }
 0x4ca   : > { %8025 = vmatprep.subr.bf16.mxu1 %v10081_v59  ;;  %v10150_v38 = vld [vmem:[#allocation9 + $0x384] ss:$16 sps:$4 sm:$0xff]   ;;  %v10148_v59 = vld [vmem:[#allocation9 + $0x380] ss:$16 sps:$4 sm:$0xff]  }
 0x4cb   : > { %v6255_v40 = vpack.c.bf16 %v6227_v35, %v6227_v35  ;;  %v6228_v42 = vcombine.high %v11932_v36, %v11932_v36  ;;  %v10145_v35 = vld [vmem:[#allocation9 + $0x368] ss:$16 sps:$4 sm:$0xff]  }
 0x4cc   : > { %7851 = vmatpush1.bf16.msra.mxu0 %v10074_v37  ;;  %v6164_v37 = vsub.s32 6, %v11037_v45 }
 0x4cd   : > { %7852 = vmatprep.mubr.bf16.mxu0 %v6255_v40  ;;  %8016 = vmatprep.mubr.bf16.mxu1 %v6255_v40  ;;  %v6257_v50 = vpack.c.bf16 %v6228_v42, %v6228_v42  ;;  %v10153_v40 = vld [vmem:[#allocation9 + $0x38c] ss:$16 sps:$4 sm:$0xff]   ;;  %v10151_v42 = vld [vmem:[#allocation9 + $0x388] ss:$16 sps:$4 sm:$0xff]  }
 0x4ce   : > { %7861 = vmatprep.subr.bf16.mxu0 %v10078_v41  ;;  %8017 = vmatmul.mubr.bf16.vlgmr.msra.gmra.mrb[0].mxu1 %v6254_v43  ;;  %v6168_v41 = vsub.s32 7, %v11037_v45 }
 0x4cf   : > { %7853 = vmatmul.mubr.bf16.vlgmr.msra.gmra.mrb[0].mxu0 %v6254_v43  ;;  %8026 = vmatpush1.bf16.msra.mxu1 %v10079_v46  ;;  %v6157_v43 = vrot.slane %v11914_v5, %v6156_v0  ;;  %v10159_v46 = vld [vmem:[#allocation9 + $0x3ac] ss:$16 sps:$4 sm:$0xff]   ;;  %v10204_v0 = vld [vmem:[#allocation9 + $0x4a4] ss:$16 sps:$4 sm:$0xff]  }
 0x4d0   : > { %7862 = vmatpush1.bf16.msra.mxu0 %v10076_v44  ;;  %8027 = vmatprep.subr.bf16.mxu1 %v10087_v10  ;;  %v10156_v44 = vld [vmem:[#allocation9 + $0x3a4] ss:$16 sps:$4 sm:$0xff]   ;;  %v6165_v10 = vrot.slane %v11914_v5, %v6164_v37 }
 0x4d1   : > { %7863 = vmatprep.subr.bf16.mxu0 %v10084_v47  ;;  %7893 = vmatprep.mubr.bf16.mxu0 %v6257_v50  ;;  %v6161_v47 = vrot.slane %v11914_v5, %v6160_v34  ;;  %v10207_v34 = vld [vmem:[#allocation9 + $0x4ac] ss:$16 sps:$4 sm:$0xff]   ;;  %v10210_v37 = vld [vmem:[#allocation9 + $0x4c4] ss:$16 sps:$4 sm:$0xff]  }
 0x4d2   : > { %8057 = vmatprep.mubr.bf16.mxu1 %v6257_v50  ;;  %v6169_v50 = vrot.slane %v11914_v5, %v6168_v41  ;;  %v10211_v41 = vld [vmem:[#allocation9 + $0x4c8] ss:$16 sps:$4 sm:$0xff]  }
 0x4d3   : > { %8028 = vmatpush1.bf16.msra.mxu1 %v10085_v6  ;;  %v10157_v6 = vld [vmem:[#allocation9 + $0x3a8] ss:$16 sps:$4 sm:$0xff]  }
 0x4d4   : > { %7864 = vmatpush1.bf16.msra.mxu0 %v10082_v51  ;;  %8029 = vmatprep.subr.bf16.mxu1 %v10093_v53  ;;  %v10154_v51 = vld [vmem:[#allocation9 + $0x3a0] ss:$16 sps:$4 sm:$0xff]   ;;  %v10165_v53 = vld [vmem:[#allocation9 + $0x3cc] ss:$16 sps:$4 sm:$0xff]  }
 0x4d5   : > { %7865 = vmatprep.subr.bf16.mxu0 %v10090_v52  ;;  %v10162_v52 = vld [vmem:[#allocation9 + $0x3c4] ss:$16 sps:$4 sm:$0xff]  }
 0x4d7   : > { %8030 = vmatpush1.bf16.msra.mxu1 %v10091_v56  ;;  %v6188_v56 = vcombine.low %v6165_v10, %v6169_v50  ;;  %v10220_v10 = vld [vmem:[#allocation9 + $0x500] ss:$16 sps:$4 sm:$0xff]   ;;  %v10223_v50 = vld [vmem:[#allocation9 + $0x508] ss:$16 sps:$4 sm:$0xff]  }
 0x4d8   : > { %7866 = vmatpush1.bf16.msra.mxu0 %v10088_v55  ;;  %8031 = vmatprep.subr.bf16.mxu1 %v10099_v58  ;;  %v6187_v55 = vcombine.low %v6157_v43, %v6161_v47  ;;  %v10163_v58 = vld [vmem:[#allocation9 + $0x3c8] ss:$16 sps:$4 sm:$0xff]   ;;  %v10214_v43 = vld [vmem:[#allocation9 + $0x4e0] ss:$16 sps:$4 sm:$0xff]   ;;  %v10225_v47 = vld [vmem:[#allocation9 + $0x50c] ss:$16 sps:$4 sm:$0xff]  }
 0x4d9   : > { %7867 = vmatprep.subr.bf16.mxu0 %v10096_v57  ;;  %v10160_v57 = vld [vmem:[#allocation9 + $0x3c0] ss:$16 sps:$4 sm:$0xff]  }
 0x4da   : > { %v6195_v5 = vrot.slane %v6187_v55, %v11729_v33  ;;  %v10234_v55 = vld [vmem:[#allocation9 + $0x544] ss:$16 sps:$4 sm:$0xff]  }
 0x4db   : > { %8032 = vmatpush1.bf16.msra.mxu1 %v10097_v11  ;;  %v10171_v11 = vld [vmem:[#allocation9 + $0x3ec] ss:$16 sps:$4 sm:$0xff]  }
 0x4dc   : > { %7868 = vmatpush1.bf16.msra.mxu0 %v10094_v54  ;;  %8033 = vmatprep.subr.bf16.mxu1 %v10105_v1  ;;  %v10168_v54 = vld [vmem:[#allocation9 + $0x3e4] ss:$16 sps:$4 sm:$0xff]   ;;  %v10166_v1 = vld [vmem:[#allocation9 + $0x3e0] ss:$16 sps:$4 sm:$0xff]  }
 0x4dd   : > { %7869 = vmatprep.subr.bf16.mxu0 %v10102_v62  ;;  %v6202_v62 = vrot.slane %v6188_v56, %v11729_v33  ;;  %v10237_v56 = vld [vmem:[#allocation9 + $0x54c] ss:$16 sps:$4 sm:$0xff]  }
 0x4df   : > { %8034 = vmatpush1.bf16.msra.mxu1 %v10103_v30  ;;  %v10174_v30 = vld [vmem:[#allocation9 + $0x404] ss:$16 sps:$4 sm:$0xff]  }
 0x4e0   : > { %7870 = vmatpush1.bf16.msra.mxu0 %v10100_v3  ;;  %8035 = vmatprep.subr.bf16.mxu1 %v10111_v8  ;;  %v10169_v3 = vld [vmem:[#allocation9 + $0x3e8] ss:$16 sps:$4 sm:$0xff]   ;;  %v6203_v8 = vcombine.low %v6195_v5, %v6202_v62  ;;  %v10238_v5 = vld [vmem:[#allocation9 + $0x560] ss:$16 sps:$4 sm:$0xff]  }
 0x4e1   : > { %7871 = vmatprep.subr.bf16.mxu0 %v10108_v7  ;;  %v10177_v7 = vld [vmem:[#allocation9 + $0x40c] ss:$16 sps:$4 sm:$0xff]   ;;  %v10241_v62 = vld [vmem:[#allocation9 + $0x568] ss:$16 sps:$4 sm:$0xff]  }
 0x4e3   : > { %8036 = vmatpush1.bf16.msra.mxu1 %v10109_v12  ;;  %v6256_v12 = vpack.c.bf16 %v11932_v36, %v11932_v36  ;;  %v10189_v36 = vld [vmem:[#allocation9 + $0x44c] ss:$16 sps:$4 sm:$0xff]  }
 0x4e4   : > { %7872 = vmatpush1.bf16.msra.mxu0 %v10106_v9  ;;  %8037 = vmatprep.subr.bf16.mxu1 %v10117_v19  ;;  %v10172_v9 = vld [vmem:[#allocation9 + $0x400] ss:$16 sps:$4 sm:$0xff]   ;;  %v10180_v19 = vld [vmem:[#allocation9 + $0x424] ss:$16 sps:$4 sm:$0xff]  }
 0x4e5   : > { %7873 = vmatprep.subr.bf16.mxu0 %v10114_v13  ;;  %v10175_v13 = vld [vmem:[#allocation9 + $0x408] ss:$16 sps:$4 sm:$0xff]  }
 0x4e7   : > { %8038 = vmatpush1.bf16.msra.mxu1 %v10115_v16  ;;  %v10183_v16 = vld [vmem:[#allocation9 + $0x42c] ss:$16 sps:$4 sm:$0xff]  }
 0x4e8   : > { %7874 = vmatpush1.bf16.msra.mxu0 %v10112_v14  ;;  %8039 = vmatprep.subr.bf16.mxu1 %v10123_v18  ;;  %v6135_v14 = vld [vmem:[#allocation2 + $0x8] sm:$0xff]  ;;  %v10178_v18 = vld [vmem:[#allocation9 + $0x420] ss:$16 sps:$4 sm:$0xff]  }
 0x4e9   : > { %7875 = vmatprep.subr.bf16.mxu0 %v10120_v17  ;;  %v6207_v17 = vadd.f32 %v6203_v8, %v6135_v14  ;;  %v10252_v8 = vld [vmem:[#allocation9 + $0x5a4] ss:$16 sps:$4 sm:$0xff]   ;;  %v10261_v14 = vld [vmem:[#allocation9 + $0x5cc] ss:$16 sps:$4 sm:$0xff]  }
 0x4eb   : > { %8040 = vmatpush1.bf16.msra.mxu1 %v10121_v20  ;;  %v10181_v20 = vld [vmem:[#allocation9 + $0x428] ss:$16 sps:$4 sm:$0xff]  }
 0x4ec   : > { %7876 = vmatpush1.bf16.msra.mxu0 %v10118_v15  ;;  %8041 = vmatprep.subr.bf16.mxu1 %v10129_v22  ;;  %v11948_v15 = vmax.f32 %v6207_v17, 0.0 }
 0x4ed   : > { %7877 = vmatprep.subr.bf16.mxu0 %v10126_v21  ;;  %v10186_v21 = vld [vmem:[#allocation9 + $0x444] ss:$16 sps:$4 sm:$0xff]  }
 0x4ee   : > { %v11952_v22 = vrot.slane %v11948_v15, %v11729_v33  ;;  %v6229_v17 = vcombine.high %v11948_v15, %v11948_v15 }
 0x4ef   : > { %8042 = vmatpush1.bf16.msra.mxu1 %v10127_v29 }
 0x4f0   : > { %7878 = vmatpush1.bf16.msra.mxu0 %v10124_v23  ;;  %8043 = vmatprep.subr.bf16.mxu1 %v10135_v25  ;;  %v10184_v23 = vld [vmem:[#allocation9 + $0x440] ss:$16 sps:$4 sm:$0xff]   ;;  %v6244_v29 = vcombine.high %v11952_v22, %v11952_v22  ;;  %v10192_v25 = vld [vmem:[#allocation9 + $0x464] ss:$16 sps:$4 sm:$0xff]  }
 0x4f1   : > { %7879 = vmatprep.subr.bf16.mxu0 %v10132_v48  ;;  %v10187_v48 = vld [vmem:[#allocation9 + $0x448] ss:$16 sps:$4 sm:$0xff]  }
 0x4f3   : > { %8044 = vmatpush1.bf16.msra.mxu1 %v10133_v26  ;;  %v6259_v26 = vpack.c.bf16 %v6244_v29, %v6244_v29  ;;  %v10265_v29 = vld [vmem:[#allocation9 + $0x5e8] ss:$16 sps:$4 sm:$0xff]  }
 0x4f4   : > { %7880 = vmatpush1.bf16.msra.mxu0 %v10130_v39  ;;  %8045 = vmatprep.subr.bf16.mxu1 %v10141_v28  ;;  %v10195_v39 = vld [vmem:[#allocation9 + $0x46c] ss:$16 sps:$4 sm:$0xff]   ;;  %v10193_v28 = vld [vmem:[#allocation9 + $0x468] ss:$16 sps:$4 sm:$0xff]  }
 0x4f5   : > { %7881 = vmatprep.subr.bf16.mxu0 %v10138_v27  ;;  %v10190_v27 = vld [vmem:[#allocation9 + $0x460] ss:$16 sps:$4 sm:$0xff]  }
 0x4f7   : > { %8046 = vmatpush1.bf16.msra.mxu1 %v10139_v31  ;;  %v10201_v31 = vld [vmem:[#allocation9 + $0x48c] ss:$16 sps:$4 sm:$0xff]  }
 0x4f8   : > { %7882 = vmatpush1.bf16.msra.mxu0 %v10136_v60  ;;  %8047 = vmatprep.subr.bf16.mxu1 %v10147_v61  ;;  %v10198_v60 = vld [vmem:[#allocation9 + $0x484] ss:$16 sps:$4 sm:$0xff]   ;;  %v10199_v61 = vld [vmem:[#allocation9 + $0x488] ss:$16 sps:$4 sm:$0xff]  }
 0x4f9   : > { %7883 = vmatprep.subr.bf16.mxu0 %v10144_v32  ;;  %v10196_v32 = vld [vmem:[#allocation9 + $0x480] ss:$16 sps:$4 sm:$0xff]  }
 0x4fb   : > { %8048 = vmatpush1.bf16.msra.mxu1 %v10145_v35  ;;  %v10205_v35 = vld [vmem:[#allocation9 + $0x4a8] ss:$16 sps:$4 sm:$0xff]  }
 0x4fc   : > { %7884 = vmatpush1.bf16.msra.mxu0 %v10142_v49  ;;  %8049 = vmatprep.subr.bf16.mxu1 %v10153_v40  ;;  %v10202_v49 = vld [vmem:[#allocation9 + $0x4a0] ss:$16 sps:$4 sm:$0xff]  }
 0x4fd   : > { %7885 = vmatprep.subr.bf16.mxu0 %v10150_v38  ;;  %v10213_v38 = vld [vmem:[#allocation9 + $0x4cc] ss:$16 sps:$4 sm:$0xff]   ;;  %v10208_v40 = vld [vmem:[#allocation9 + $0x4c0] ss:$16 sps:$4 sm:$0xff]  }
 0x4ff   : > { %8050 = vmatpush1.bf16.msra.mxu1 %v10151_v42  ;;  %v10219_v42 = vld [vmem:[#allocation9 + $0x4ec] ss:$16 sps:$4 sm:$0xff]  }
 0x500   : > { %7886 = vmatpush1.bf16.msra.mxu0 %v10148_v59  ;;  %8051 = vmatprep.subr.bf16.mxu1 %v10159_v46  ;;  %v10216_v59 = vld [vmem:[#allocation9 + $0x4e4] ss:$16 sps:$4 sm:$0xff]  }
 0x501   : > { %7887 = vmatprep.subr.bf16.mxu0 %v10156_v44  ;;  %v10217_v44 = vld [vmem:[#allocation9 + $0x4e8] ss:$16 sps:$4 sm:$0xff]   ;;  %v10222_v46 = vld [vmem:[#allocation9 + $0x504] ss:$16 sps:$4 sm:$0xff]  }
 0x503   : > { %8052 = vmatpush1.bf16.msra.mxu1 %v10157_v6  ;;  %v10231_v6 = vld [vmem:[#allocation9 + $0x52c] ss:$16 sps:$4 sm:$0xff]  }
 0x504   : > { %7888 = vmatpush1.bf16.msra.mxu0 %v10154_v51  ;;  %8053 = vmatprep.subr.bf16.mxu1 %v10165_v53  ;;  %v10228_v51 = vld [vmem:[#allocation9 + $0x524] ss:$16 sps:$4 sm:$0xff]   ;;  %v10229_v53 = vld [vmem:[#allocation9 + $0x528] ss:$16 sps:$4 sm:$0xff]  }
 0x505   : > { %7889 = vmatprep.subr.bf16.mxu0 %v10162_v52  ;;  %v10226_v52 = vld [vmem:[#allocation9 + $0x520] ss:$16 sps:$4 sm:$0xff]  }
 0x507   : > { %8054 = vmatpush1.bf16.msra.mxu1 %v10163_v58  ;;  %v10235_v58 = vld [vmem:[#allocation9 + $0x548] ss:$16 sps:$4 sm:$0xff]  }
 0x508   : > { %7890 = vmatpush1.bf16.msra.mxu0 %v10160_v57  ;;  %8055 = vmatprep.subr.bf16.mxu1 %v10171_v11  ;;  %v10232_v57 = vld [vmem:[#allocation9 + $0x540] ss:$16 sps:$4 sm:$0xff]   ;;  %v10243_v11 = vld [vmem:[#allocation9 + $0x56c] ss:$16 sps:$4 sm:$0xff]  }
 0x509   : > { %7891 = vmatprep.subr.bf16.mxu0 %v10168_v54  ;;  %v10240_v54 = vld [vmem:[#allocation9 + $0x564] ss:$16 sps:$4 sm:$0xff]  }
 0x50b   : > { %8056 = vmatpush1.bf16.msra.mxu1 %v10169_v3  ;;  %v10249_v3 = vld [vmem:[#allocation9 + $0x58c] ss:$16 sps:$4 sm:$0xff]  }
 0x50c   : > { %7892 = vmatpush1.bf16.msra.mxu0 %v10166_v1  ;;  %8066 = vmatprep.subr.bf16.mxu1 %v10177_v7  ;;  %v10246_v1 = vld [vmem:[#allocation9 + $0x584] ss:$16 sps:$4 sm:$0xff]   ;;  %v10247_v7 = vld [vmem:[#allocation9 + $0x588] ss:$16 sps:$4 sm:$0xff]  }
 0x50d   : > { %7902 = vmatprep.subr.bf16.mxu0 %v10174_v30  ;;  %v10244_v30 = vld [vmem:[#allocation9 + $0x580] ss:$16 sps:$4 sm:$0xff]  }
 0x50e   : > { %8058 = vmatmul.mubr.bf16.vlgmr.msra.gmra.mrb[0].mxu1 %v6256_v12 }
 0x50f   : > { %7894 = vmatmul.mubr.bf16.vlgmr.msra.gmra.mrb[0].mxu0 %v6256_v12  ;;  %8067 = vmatpush1.bf16.msra.mxu1 %v10175_v13  ;;  %v10250_v12 = vld [vmem:[#allocation9 + $0x5a0] ss:$16 sps:$4 sm:$0xff]   ;;  %v10253_v13 = vld [vmem:[#allocation9 + $0x5a8] ss:$16 sps:$4 sm:$0xff]  }
 0x510   : > { %7903 = vmatpush1.bf16.msra.mxu0 %v10172_v9  ;;  %8068 = vmatprep.subr.bf16.mxu1 %v10183_v16  ;;  %v10255_v9 = vld [vmem:[#allocation9 + $0x5ac] ss:$16 sps:$4 sm:$0xff]   ;;  %v10256_v16 = vld [vmem:[#allocation9 + $0x5c0] ss:$16 sps:$4 sm:$0xff]  }
 0x511   : > { %7904 = vmatprep.subr.bf16.mxu0 %v10180_v19  ;;  %7934 = vmatprep.mubr.bf16.mxu0 %v6259_v26  ;;  %v10258_v19 = vld [vmem:[#allocation9 + $0x5c4] ss:$16 sps:$4 sm:$0xff]  }
 0x512   : > { %8098 = vmatprep.mubr.bf16.mxu1 %v6259_v26  ;;  %v10271_v26 = vld [vmem:[#allocation9 + $0x608] ss:$16 sps:$4 sm:$0xff]  }
 0x513   : > { %8069 = vmatpush1.bf16.msra.mxu1 %v10181_v20  ;;  %v10264_v20 = vld [vmem:[#allocation9 + $0x5e4] ss:$16 sps:$4 sm:$0xff]  }
 0x514   : > { %7905 = vmatpush1.bf16.msra.mxu0 %v10178_v18  ;;  %8070 = vmatprep.subr.bf16.mxu1 %v10189_v36  ;;  %v10259_v18 = vld [vmem:[#allocation9 + $0x5c8] ss:$16 sps:$4 sm:$0xff]   ;;  %v10262_v36 = vld [vmem:[#allocation9 + $0x5e0] ss:$16 sps:$4 sm:$0xff]  }
 0x515   : > { %7906 = vmatprep.subr.bf16.mxu0 %v10186_v21  ;;  %v10267_v21 = vld [vmem:[#allocation9 + $0x5ec] ss:$16 sps:$4 sm:$0xff]  }
 0x517   : > { %8071 = vmatpush1.bf16.msra.mxu1 %v10187_v48  ;;  %v10270_v48 = vld [vmem:[#allocation9 + $0x604] ss:$16 sps:$4 sm:$0xff]  }
 0x518   : > { %7907 = vmatpush1.bf16.msra.mxu0 %v10184_v23  ;;  %8072 = vmatprep.subr.bf16.mxu1 %v10195_v39  ;;  %v11959_v23 = vrot.slane %v6229_v17, %v11729_v33  ;;  %v10268_v39 = vld [vmem:[#allocation9 + $0x600] ss:$16 sps:$4 sm:$0xff]   ;;  %v10279_v33 = vld [vmem:[#allocation9 + $0x62c] ss:$16 sps:$4 sm:$0xff]  }
 0x519   : > { %7908 = vmatprep.subr.bf16.mxu0 %v10192_v25  ;;  %v10273_v25 = vld [vmem:[#allocation9 + $0x60c] ss:$16 sps:$4 sm:$0xff]  }
 0x51a   : > { %v6245_v15 = vcombine.high %v11959_v23, %v11959_v23  ;;  %v10345_v17 = vld [vmem:[#allocation9 + $0x78c] ss:$16 sps:$4 sm:$0xff]  }
 0x51b   : > { %8073 = vmatpush1.bf16.msra.mxu1 %v10193_v28  ;;  %v10276_v28 = vld [vmem:[#allocation9 + $0x624] ss:$16 sps:$4 sm:$0xff]  }
 0x51c   : > { %7909 = vmatpush1.bf16.msra.mxu0 %v10190_v27  ;;  %8074 = vmatprep.subr.bf16.mxu1 %v10201_v31  ;;  %v6258_v27 = vpack.c.bf16 %v11952_v22, %v11952_v22  ;;  %v10277_v31 = vld [vmem:[#allocation9 + $0x628] ss:$16 sps:$4 sm:$0xff]   ;;  %v10288_v22 = vld [vmem:[#allocation9 + $0x664] ss:$16 sps:$4 sm:$0xff]  }
 0x51d   : > { %7910 = vmatprep.subr.bf16.mxu0 %v10198_v60  ;;  %v10274_v60 = vld [vmem:[#allocation9 + $0x620] ss:$16 sps:$4 sm:$0xff]  }
 0x51f   : > { %8075 = vmatpush1.bf16.msra.mxu1 %v10199_v61  ;;  %v10282_v61 = vld [vmem:[#allocation9 + $0x644] ss:$16 sps:$4 sm:$0xff]  }
 0x520   : > { %7911 = vmatpush1.bf16.msra.mxu0 %v10196_v32  ;;  %8076 = vmatprep.subr.bf16.mxu1 %v10207_v34  ;;  %v6261_v32 = vpack.c.bf16 %v6245_v15, %v6245_v15  ;;  %v10280_v34 = vld [vmem:[#allocation9 + $0x640] ss:$16 sps:$4 sm:$0xff]  }
 0x521   : > { %7912 = vmatprep.subr.bf16.mxu0 %v10204_v0  ;;  %v10285_v0 = vld [vmem:[#allocation9 + $0x64c] ss:$16 sps:$4 sm:$0xff]   ;;  %v10352_v15 = vld [vmem:[#allocation9 + $0x7c0] ss:$16 sps:$4 sm:$0xff]  }
 0x523   : > { %8077 = vmatpush1.bf16.msra.mxu1 %v10205_v35  ;;  %v10291_v35 = vld [vmem:[#allocation9 + $0x66c] ss:$16 sps:$4 sm:$0xff]  }
 0x524   : > { %7913 = vmatpush1.bf16.msra.mxu0 %v10202_v49  ;;  %8078 = vmatprep.subr.bf16.mxu1 %v10213_v38  ;;  %v10283_v49 = vld [vmem:[#allocation9 + $0x648] ss:$16 sps:$4 sm:$0xff]  }
 0x525   : > { %7914 = vmatprep.subr.bf16.mxu0 %v10210_v37  ;;  %v10286_v37 = vld [vmem:[#allocation9 + $0x660] ss:$16 sps:$4 sm:$0xff]   ;;  %v10289_v38 = vld [vmem:[#allocation9 + $0x668] ss:$16 sps:$4 sm:$0xff]  }
 0x527   : > { %8079 = vmatpush1.bf16.msra.mxu1 %v10211_v41  ;;  %v10297_v41 = vld [vmem:[#allocation9 + $0x68c] ss:$16 sps:$4 sm:$0xff]  }
 0x528   : > { %7915 = vmatpush1.bf16.msra.mxu0 %v10208_v40  ;;  %8080 = vmatprep.subr.bf16.mxu1 %v10219_v42  ;;  %v10294_v40 = vld [vmem:[#allocation9 + $0x684] ss:$16 sps:$4 sm:$0xff]   ;;  %v10295_v42 = vld [vmem:[#allocation9 + $0x688] ss:$16 sps:$4 sm:$0xff]  }
 0x529   : > { %7916 = vmatprep.subr.bf16.mxu0 %v10216_v59  ;;  %v10292_v59 = vld [vmem:[#allocation9 + $0x680] ss:$16 sps:$4 sm:$0xff]  }
 0x52b   : > { %8081 = vmatpush1.bf16.msra.mxu1 %v10217_v44  ;;  %v10303_v44 = vld [vmem:[#allocation9 + $0x6ac] ss:$16 sps:$4 sm:$0xff]  }
 0x52c   : > { %7917 = vmatpush1.bf16.msra.mxu0 %v10214_v43  ;;  %8082 = vmatprep.subr.bf16.mxu1 %v10225_v47  ;;  %v10300_v43 = vld [vmem:[#allocation9 + $0x6a4] ss:$16 sps:$4 sm:$0xff]   ;;  %v10301_v47 = vld [vmem:[#allocation9 + $0x6a8] ss:$16 sps:$4 sm:$0xff]  }
 0x52d   : > { %7918 = vmatprep.subr.bf16.mxu0 %v10222_v46  ;;  %v10298_v46 = vld [vmem:[#allocation9 + $0x6a0] ss:$16 sps:$4 sm:$0xff]  }
 0x52f   : > { %8083 = vmatpush1.bf16.msra.mxu1 %v10223_v50  ;;  %v10309_v50 = vld [vmem:[#allocation9 + $0x6cc] ss:$16 sps:$4 sm:$0xff]  }
 0x530   : > { %7919 = vmatpush1.bf16.msra.mxu0 %v10220_v10  ;;  %8084 = vmatprep.subr.bf16.mxu1 %v10231_v6  ;;  %v10306_v10 = vld [vmem:[#allocation9 + $0x6c4] ss:$16 sps:$4 sm:$0xff]   ;;  %v10307_v6 = vld [vmem:[#allocation9 + $0x6c8] ss:$16 sps:$4 sm:$0xff]  }
 0x531   : > { %7920 = vmatprep.subr.bf16.mxu0 %v10228_v51  ;;  %v10304_v51 = vld [vmem:[#allocation9 + $0x6c0] ss:$16 sps:$4 sm:$0xff]  }
 0x533   : > { %8085 = vmatpush1.bf16.msra.mxu1 %v10229_v53  ;;  %v10315_v53 = vld [vmem:[#allocation9 + $0x6ec] ss:$16 sps:$4 sm:$0xff]  }
 0x534   : > { %7921 = vmatpush1.bf16.msra.mxu0 %v10226_v52  ;;  %8086 = vmatprep.subr.bf16.mxu1 %v10237_v56  ;;  %v10312_v52 = vld [vmem:[#allocation9 + $0x6e4] ss:$16 sps:$4 sm:$0xff]   ;;  %v10313_v56 = vld [vmem:[#allocation9 + $0x6e8] ss:$16 sps:$4 sm:$0xff]  }
 0x535   : > { %7922 = vmatprep.subr.bf16.mxu0 %v10234_v55  ;;  %v10310_v55 = vld [vmem:[#allocation9 + $0x6e0] ss:$16 sps:$4 sm:$0xff]  }
 0x537   : > { %8087 = vmatpush1.bf16.msra.mxu1 %v10235_v58  ;;  %v10321_v58 = vld [vmem:[#allocation9 + $0x70c] ss:$16 sps:$4 sm:$0xff]  }
 0x538   : > { %7923 = vmatpush1.bf16.msra.mxu0 %v10232_v57  ;;  %8088 = vmatprep.subr.bf16.mxu1 %v10243_v11  ;;  %v10318_v57 = vld [vmem:[#allocation9 + $0x704] ss:$16 sps:$4 sm:$0xff]   ;;  %v10319_v11 = vld [vmem:[#allocation9 + $0x708] ss:$16 sps:$4 sm:$0xff]  }
 0x539   : > { %7924 = vmatprep.subr.bf16.mxu0 %v10240_v54  ;;  %v10316_v54 = vld [vmem:[#allocation9 + $0x700] ss:$16 sps:$4 sm:$0xff]  }
 0x53b   : > { %8089 = vmatpush1.bf16.msra.mxu1 %v10241_v62  ;;  %v10327_v62 = vld [vmem:[#allocation9 + $0x72c] ss:$16 sps:$4 sm:$0xff]  }
 0x53c   : > { %7925 = vmatpush1.bf16.msra.mxu0 %v10238_v5  ;;  %8090 = vmatprep.subr.bf16.mxu1 %v10249_v3  ;;  %v10324_v5 = vld [vmem:[#allocation9 + $0x724] ss:$16 sps:$4 sm:$0xff]   ;;  %v10325_v3 = vld [vmem:[#allocation9 + $0x728] ss:$16 sps:$4 sm:$0xff]  }
 0x53d   : > { %7926 = vmatprep.subr.bf16.mxu0 %v10246_v1  ;;  %v10322_v1 = vld [vmem:[#allocation9 + $0x720] ss:$16 sps:$4 sm:$0xff]  }
 0x53f   : > { %8091 = vmatpush1.bf16.msra.mxu1 %v10247_v7  ;;  %v10333_v7 = vld [vmem:[#allocation9 + $0x74c] ss:$16 sps:$4 sm:$0xff]  }
 0x540   : > { %7927 = vmatpush1.bf16.msra.mxu0 %v10244_v30  ;;  %8092 = vmatprep.subr.bf16.mxu1 %v10255_v9  ;;  %v10330_v30 = vld [vmem:[#allocation9 + $0x744] ss:$16 sps:$4 sm:$0xff]   ;;  %v10331_v9 = vld [vmem:[#allocation9 + $0x748] ss:$16 sps:$4 sm:$0xff]  }
 0x541   : > { %7928 = vmatprep.subr.bf16.mxu0 %v10252_v8  ;;  %v10328_v8 = vld [vmem:[#allocation9 + $0x740] ss:$16 sps:$4 sm:$0xff]  }
 0x543   : > { %8093 = vmatpush1.bf16.msra.mxu1 %v10253_v13  ;;  %v10339_v13 = vld [vmem:[#allocation9 + $0x76c] ss:$16 sps:$4 sm:$0xff]  }
 0x544   : > { %7929 = vmatpush1.bf16.msra.mxu0 %v10250_v12  ;;  %8094 = vmatprep.subr.bf16.mxu1 %v10261_v14  ;;  %v10336_v12 = vld [vmem:[#allocation9 + $0x764] ss:$16 sps:$4 sm:$0xff]   ;;  %v10337_v14 = vld [vmem:[#allocation9 + $0x768] ss:$16 sps:$4 sm:$0xff]  }
 0x545   : > { %7930 = vmatprep.subr.bf16.mxu0 %v10258_v19  ;;  %v10334_v19 = vld [vmem:[#allocation9 + $0x760] ss:$16 sps:$4 sm:$0xff]  }
 0x547   : > { %8095 = vmatpush1.bf16.msra.mxu1 %v10259_v18  ;;  %v10340_v18 = vld [vmem:[#allocation9 + $0x780] ss:$16 sps:$4 sm:$0xff]  }
 0x548   : > { %7931 = vmatpush1.bf16.msra.mxu0 %v10256_v16  ;;  %8096 = vmatprep.subr.bf16.mxu1 %v10267_v21  ;;  %v10342_v16 = vld [vmem:[#allocation9 + $0x784] ss:$16 sps:$4 sm:$0xff]  }
 0x549   : > { %7932 = vmatprep.subr.bf16.mxu0 %v10264_v20  ;;  %v10343_v20 = vld [vmem:[#allocation9 + $0x788] ss:$16 sps:$4 sm:$0xff]   ;;  %v10348_v21 = vld [vmem:[#allocation9 + $0x7a4] ss:$16 sps:$4 sm:$0xff]  }
 0x54b   : > { %8097 = vmatpush1.bf16.msra.mxu1 %v10265_v29  ;;  %v10346_v29 = vld [vmem:[#allocation9 + $0x7a0] ss:$16 sps:$4 sm:$0xff]  }
 0x54c   : > { %7933 = vmatpush1.bf16.msra.mxu0 %v10262_v36  ;;  %8107 = vmatprep.subr.bf16.mxu1 %v10273_v25  ;;  %v10351_v36 = vld [vmem:[#allocation9 + $0x7ac] ss:$16 sps:$4 sm:$0xff]   ;;  %v10354_v25 = vld [vmem:[#allocation9 + $0x7c4] ss:$16 sps:$4 sm:$0xff]  }
 0x54d   : > { %7943 = vmatprep.subr.bf16.mxu0 %v10270_v48  ;;  %v10349_v48 = vld [vmem:[#allocation9 + $0x7a8] ss:$16 sps:$4 sm:$0xff]  }
 0x54e   : > { %8099 = vmatmul.mubr.bf16.vlgmr.msra.gmra.mrb[0].mxu1 %v6258_v27 }
 0x54f   : > { %7935 = vmatmul.mubr.bf16.vlgmr.msra.gmra.mrb[0].mxu0 %v6258_v27  ;;  %8108 = vmatpush1.bf16.msra.mxu1 %v10271_v26  ;;  %v10355_v26 = vld [vmem:[#allocation9 + $0x7c8] ss:$16 sps:$4 sm:$0xff]   ;;  %v10360_v27 = vld [vmem:[#allocation9 + $0x7e4] ss:$16 sps:$4 sm:$0xff]  }
 0x550   : > { %7944 = vmatpush1.bf16.msra.mxu0 %v10268_v39  ;;  %8109 = vmatprep.subr.bf16.mxu1 %v10279_v33  ;;  %v10357_v39 = vld [vmem:[#allocation9 + $0x7cc] ss:$16 sps:$4 sm:$0xff]   ;;  %v10358_v33 = vld [vmem:[#allocation9 + $0x7e0] ss:$16 sps:$4 sm:$0xff]  }
 0x551   : > { %7945 = vmatprep.subr.bf16.mxu0 %v10276_v28  ;;  %7975 = vmatprep.mubr.bf16.mxu0 %v6261_v32  ;;  %v10363_v28 = vld [vmem:[#allocation9 + $0x7ec] ss:$16 sps:$4 sm:$0xff]  }
 0x552   : > { %8139 = vmatprep.mubr.bf16.mxu1 %v6261_v32  ;;  %v10365_v32 = vld [vmem:[#allocation12 + $0xc0] sm:$0xff]  }
 0x553   : > { %8110 = vmatpush1.bf16.msra.mxu1 %v10277_v31  ;;  %v10364_v31 = vld [vmem:[#allocation12 + $0x40] sm:$0xff]  }
 0x554   : > { %7946 = vmatpush1.bf16.msra.mxu0 %v10274_v60  ;;  %8111 = vmatprep.subr.bf16.mxu1 %v10285_v0  ;;  %v10361_v60 = vld [vmem:[#allocation9 + $0x7e8] ss:$16 sps:$4 sm:$0xff]  }
 0x555   : > { %7947 = vmatprep.subr.bf16.mxu0 %v10282_v61  ;;  %v6260_v61 = vpack.c.bf16 %v11959_v23, %v11959_v23  ;;  %v10366_v0 = vld [vmem:[#allocation12] sm:$0xff]   ;;  %v10374_v23 = vld [vmem:[#allocation12 + $0x10] sm:$0xff]  }
 0x557   : > { %8112 = vmatpush1.bf16.msra.mxu1 %v10283_v49  ;;  %v10368_v49 = vld [vmem:[#allocation12 + $0x48] sm:$0xff]  }
 0x558   : > { %7948 = vmatpush1.bf16.msra.mxu0 %v10280_v34  ;;  %8113 = vmatprep.subr.bf16.mxu1 %v10291_v35  ;;  %v10367_v34 = vld [vmem:[#allocation12 + $0x80] sm:$0xff]   ;;  %v10370_v35 = vld [vmem:[#allocation12 + $0x8] sm:$0xff]  }
 0x559   : > { %7949 = vmatprep.subr.bf16.mxu0 %v10288_v22  ;;  %v10369_v22 = vld [vmem:[#allocation12 + $0xc8] sm:$0xff]  }
 0x55b   : > { %8114 = vmatpush1.bf16.msra.mxu1 %v10289_v38  ;;  %v10372_v38 = vld [vmem:[#allocation12 + $0x50] sm:$0xff]  }
 0x55c   : > { %7950 = vmatpush1.bf16.msra.mxu0 %v10286_v37  ;;  %8115 = vmatprep.subr.bf16.mxu1 %v10297_v41  ;;  %v10371_v37 = vld [vmem:[#allocation12 + $0x88] sm:$0xff]   ;;  %v10375_v41 = vld [vmem:[#allocation12 + $0x90] sm:$0xff]  }
 0x55d   : > { %7951 = vmatprep.subr.bf16.mxu0 %v10294_v40  ;;  %v10373_v40 = vld [vmem:[#allocation12 + $0xd0] sm:$0xff]  }
 0x55f   : > { %8116 = vmatpush1.bf16.msra.mxu1 %v10295_v42  ;;  %v10377_v42 = vld [vmem:[#allocation12 + $0xd8] sm:$0xff]  }
 0x560   : > { %7952 = vmatpush1.bf16.msra.mxu0 %v10292_v59  ;;  %8117 = vmatprep.subr.bf16.mxu1 %v10303_v44  ;;  %v10376_v59 = vld [vmem:[#allocation12 + $0x58] sm:$0xff]  }
 0x561   : > { %7953 = vmatprep.subr.bf16.mxu0 %v10300_v43  ;;  %v10378_v43 = vld [vmem:[#allocation12 + $0x18] sm:$0xff]  }
 0x562   : > { %v10379_v44 = vld [vmem:[#allocation12 + $0x98] sm:$0xff]  }
 0x563   : > { %8118 = vmatpush1.bf16.msra.mxu1 %v10301_v47  ;;  %v10381_v47 = vld [vmem:[#allocation12 + $0xe0] sm:$0xff]  }
 0x564   : > { %7954 = vmatpush1.bf16.msra.mxu0 %v10298_v46  ;;  %8119 = vmatprep.subr.bf16.mxu1 %v10309_v50  ;;  %v10380_v46 = vld [vmem:[#allocation12 + $0x60] sm:$0xff]  }
 0x565   : > { %7955 = vmatprep.subr.bf16.mxu0 %v10306_v10  ;;  %v10382_v10 = vld [vmem:[#allocation12 + $0x20] sm:$0xff]  }
 0x566   : > { %v10383_v50 = vld [vmem:[#allocation12 + $0xa0] sm:$0xff]  }
 0x567   : > { %8120 = vmatpush1.bf16.msra.mxu1 %v10307_v6  ;;  %v10385_v6 = vld [vmem:[#allocation12 + $0xe8] sm:$0xff]  }
 0x568   : > { %7956 = vmatpush1.bf16.msra.mxu0 %v10304_v51  ;;  %8121 = vmatprep.subr.bf16.mxu1 %v10315_v53  ;;  %v10384_v51 = vld [vmem:[#allocation12 + $0x68] sm:$0xff]  }
 0x569   : > { %7957 = vmatprep.subr.bf16.mxu0 %v10312_v52  ;;  %v10386_v52 = vld [vmem:[#allocation12 + $0x28] sm:$0xff]  }
 0x56a   : > { %v10387_v53 = vld [vmem:[#allocation12 + $0xa8] sm:$0xff]  }
 0x56b   : > { %8122 = vmatpush1.bf16.msra.mxu1 %v10313_v56  ;;  %v10389_v56 = vld [vmem:[#allocation12 + $0xf0] sm:$0xff]  }
 0x56c   : > { %7958 = vmatpush1.bf16.msra.mxu0 %v10310_v55  ;;  %8123 = vmatprep.subr.bf16.mxu1 %v10321_v58  ;;  %v10388_v55 = vld [vmem:[#allocation12 + $0x70] sm:$0xff]  }
 0x56d   : > { %7959 = vmatprep.subr.bf16.mxu0 %v10318_v57  ;;  %v10390_v57 = vld [vmem:[#allocation12 + $0x30] sm:$0xff]  }
 0x56e   : > { %v10391_v58 = vld [vmem:[#allocation12 + $0xb0] sm:$0xff]  }
 0x56f   : > { %8124 = vmatpush1.bf16.msra.mxu1 %v10319_v11  ;;  %v10393_v11 = vld [vmem:[#allocation12 + $0xf8] sm:$0xff]  }
 0x570   : > { %7960 = vmatpush1.bf16.msra.mxu0 %v10316_v54  ;;  %8125 = vmatprep.subr.bf16.mxu1 %v10327_v62  ;;  %v10392_v54 = vld [vmem:[#allocation12 + $0x78] sm:$0xff]  }
 0x571   : > { %7961 = vmatprep.subr.bf16.mxu0 %v10324_v5  ;;  %v10394_v5 = vld [vmem:[#allocation12 + $0x38] sm:$0xff]  }
 0x572   : > { %v10395_v62 = vld [vmem:[#allocation12 + $0xb8] sm:$0xff]  }
 0x573   : > { %8126 = vmatpush1.bf16.msra.mxu1 %v10325_v3 }
 0x574   : > { %7962 = vmatpush1.bf16.msra.mxu0 %v10322_v1  ;;  %8127 = vmatprep.subr.bf16.mxu1 %v10333_v7  ;;  %v6518_v1 = vld [vmem:[#allocation11] sm:$0xf] }
 0x575   : > { %7963 = vmatprep.subr.bf16.mxu0 %v10330_v30  ;;  %v6523_v3 = vrot.slane %v6518_v1, %v6140_v63  ;;  %v6531_v30 = vrot.slane %v6518_v1, %v6148_v24  ;;  %v6527_v7 = vrot.slane %v6518_v1, %v6144_v2 }
 0x577   : > { %8128 = vmatpush1.bf16.msra.mxu1 %v10331_v9 }
 0x578   : > { %7964 = vmatpush1.bf16.msra.mxu0 %v10328_v8  ;;  %8129 = vmatprep.subr.bf16.mxu1 %v10339_v13  ;;  %v6535_v8 = vrot.slane %v6518_v1, %v6152_v4 }
 0x579   : > { %7965 = vmatprep.subr.bf16.mxu0 %v10336_v12 }
 0x57b   : > { %8130 = vmatpush1.bf16.msra.mxu1 %v10337_v14 }
 0x57c   : > { %7966 = vmatpush1.bf16.msra.mxu0 %v10334_v19  ;;  %8131 = vmatprep.subr.bf16.mxu1 %v10345_v17 }
 0x57d   : > { %7967 = vmatprep.subr.bf16.mxu0 %v10342_v16 }
 0x57f   : > { %8132 = vmatpush1.bf16.msra.mxu1 %v10343_v20 }
 0x580   : > { %7968 = vmatpush1.bf16.msra.mxu0 %v10340_v18  ;;  %8133 = vmatprep.subr.bf16.mxu1 %v10351_v36 }
 0x581   : > { %7969 = vmatprep.subr.bf16.mxu0 %v10348_v21 }
 0x583   : > { %8134 = vmatpush1.bf16.msra.mxu1 %v10349_v48 }
 0x584   : > { %7970 = vmatpush1.bf16.msra.mxu0 %v10346_v29  ;;  %8135 = vmatprep.subr.bf16.mxu1 %v10357_v39 }
 0x585   : > { %7971 = vmatprep.subr.bf16.mxu0 %v10354_v25 }
 0x587   : > { %8136 = vmatpush1.bf16.msra.mxu1 %v10355_v26 }
 0x588   : > { %7972 = vmatpush1.bf16.msra.mxu0 %v10352_v15  ;;  %8137 = vmatprep.subr.bf16.mxu1 %v10363_v28 }
 0x589   : > { %7973 = vmatprep.subr.bf16.mxu0 %v10360_v27  ;;  %v9671_v27 = vld [vmem:[#allocation14] ss:$0 sm:$0xff] }
 0x58b   : > { %8138 = vmatpush1.bf16.msra.mxu1 %v10361_v60 }
 0x58c   : > { %7974 = vmatpush1.bf16.msra.mxu0 %v10358_v33  ;;  %9734 = vmatprep.subr.bf16.mxu1 %v10365_v32 }
 0x58d   : > { %9712 = vmatprep.subr.bf16.mxu0 %v10364_v31 }
 0x58e   : > { %8140 = vmatmul.mubr.bf16.vlgmr.msra.gmra.mrb[0].mxu1 %v6260_v61 }
 0x58f   : > { %7976 = vmatmul.mubr.bf16.vlgmr.msra.gmra.mrb[0].mxu0 %v6260_v61  ;;  %9735 = vmatpush3.bf16.msra.mxu1 %v10367_v34 }
 0x590   : > { %9713 = vmatpush3.bf16.msra.mxu0 %v10366_v0  ;;  %9736 = vmatprep.subr.bf16.mxu1 %v10369_v22 }
 0x591   : > { %9714 = vmatprep.subr.bf16.mxu0 %v10368_v49 }
 0x593   : > { %9737 = vmatpush3.bf16.msra.mxu1 %v10371_v37 }
 0x594   : > { %9715 = vmatpush3.bf16.msra.mxu0 %v10370_v35  ;;  %9738 = vmatprep.subr.bf16.mxu1 %v10373_v40 }
 0x595   : > { %9716 = vmatprep.subr.bf16.mxu0 %v10372_v38 }
 0x597   : > { %9739 = vmatpush3.bf16.msra.mxu1 %v10375_v41 }
 0x598   : > { %9717 = vmatpush3.bf16.msra.mxu0 %v10374_v23  ;;  %9740 = vmatprep.subr.bf16.mxu1 %v10377_v42 }
 0x599   : > { %9718 = vmatprep.subr.bf16.mxu0 %v10376_v59 }
 0x59b   : > { %9741 = vmatpush3.bf16.msra.mxu1 %v10379_v44 }
 0x59c   : > { %9719 = vmatpush3.bf16.msra.mxu0 %v10378_v43  ;;  %9742 = vmatprep.subr.bf16.mxu1 %v10381_v47 }
 0x59d   : > { %9720 = vmatprep.subr.bf16.mxu0 %v10380_v46 }
 0x59f   : > { %9743 = vmatpush3.bf16.msra.mxu1 %v10383_v50 }
 0x5a0   : > { %9721 = vmatpush3.bf16.msra.mxu0 %v10382_v10  ;;  %9744 = vmatprep.subr.bf16.mxu1 %v10385_v6 }
 0x5a1   : > { %9722 = vmatprep.subr.bf16.mxu0 %v10384_v51 }
 0x5a3   : > { %9745 = vmatpush3.bf16.msra.mxu1 %v10387_v53 }
 0x5a4   : > { %9723 = vmatpush3.bf16.msra.mxu0 %v10386_v52  ;;  %9746 = vmatprep.subr.bf16.mxu1 %v10389_v56 }
 0x5a5   : > { %9724 = vmatprep.subr.bf16.mxu0 %v10388_v55 }
 0x5a7   : > { %9747 = vmatpush3.bf16.msra.mxu1 %v10391_v58 }
 0x5a8   : > { %9725 = vmatpush3.bf16.msra.mxu0 %v10390_v57  ;;  %9748 = vmatprep.subr.bf16.mxu1 %v10393_v11 }
 0x5a9   : > { %9726 = vmatprep.subr.bf16.mxu0 %v10392_v54 }
 0x5ab   : > { %9749 = vmatpush3.bf16.msra.mxu1 %v10395_v62 }
 0x5ac   : > { %9727 = vmatpush3.bf16.msra.mxu0 %v10394_v5 }
 0x661   : > { %v8141_v12 = vpop.f32.mrb[0].mxu1 }
 0x662   : > { %v7977_v9 = vpop.f32.mrb[0].mxu0  ;;  %v9838_v19 = vadd.f32 %v8141_v12, %v6531_v30  ;;  %v8143_v16 = vpop.f32.mrb[1].mxu1 }
 0x663   : > { %v9836_v13 = vadd.f32 %v7977_v9, %v6523_v3  ;;  %v7979_v14 = vpop.f32.mrb[1].mxu0  ;;  %v9839_v18 = vadd.f32 %v8143_v16, %v6535_v8  ;;  %v8145_v21 = vpop.f32.mrb[2].mxu1 }
 0x664   : > { %v9837_v17 = vadd.f32 %v7979_v14, %v6527_v7  ;;  %v7981_v20 = vpop.f32.mrb[2].mxu0  ;;  %v8150_v36 = vmax.f32 %v9838_v19, 0.0  ;;  %v8146_v24 = vpop.f32.mrb[3].mxu1 }
 0x665   : > { %v8148_v63 = vmax.f32 %v9836_v13, 0.0  ;;  %v7982_v29 = vpop.f32.mrb[3].mxu0  ;;  %v8151_v25 = vmax.f32 %v9839_v18, 0.0 }
 0x666   : > { %v8149_v48 = vmax.f32 %v9837_v17, 0.0  ;;  %v8154_v4 = vpack.c.bf16 %v8150_v36, %v8150_v36 }
 0x667   : > { %v8155_v39 = vpack.c.bf16 %v8151_v25, %v8151_v25  ;;  %v8152_v45 = vpack.c.bf16 %v8148_v63, %v8148_v63 }
 0x668   : > { %v8153_v2 = vpack.c.bf16 %v8149_v48, %v8149_v48 }
 0x669   : > { %8491 = vmatprep.mubr.bf16.mxu1 %v8155_v39 }
 0x66a   : > { %8451 = vmatprep.mubr.bf16.mxu0 %v8153_v2  ;;  %8492 = vmatmul.mubr.bf16.vlgmr.msra.gmra.mrb[4].mxu1 %v8154_v4 }
 0x66b   : > { %8452 = vmatmul.mubr.bf16.vlgmr.msra.gmra.mrb[4].mxu0 %v8152_v45 }
 0x73d   : > { %v9750_v26 = vpop.f32.mrb[4].mxu1 }
 0x73e   : > { %v9728_v15 = vpop.f32.mrb[4].mxu0  ;;  %v9751_v33 = vpop.f32.mrb[5].mxu1 }
 0x73f   : > { %v9729_v28 = vpop.f32.mrb[5].mxu0  ;;  %v9752_v31 = vadd.f32 %v9751_v33, %v9750_v26  ;;  %v9753_v61 = vpop.f32.mrb[6].mxu1 }
 0x740   : > { %v9730_v60 = vadd.f32 %v9729_v28, %v9728_v15  ;;  %v9731_v32 = vpop.f32.mrb[6].mxu0  ;;  %v9754_v34 = vpop.f32.mrb[7].mxu1 }
 0x741   : > { %v9732_v0 = vpop.f32.mrb[7].mxu0 }
 0x742   : > { %v8454_v49 = vadd.f32 %v9730_v60, %v9671_v27 }
 0x744   : > { %v8494_v22 = vadd.f32 %v9752_v31, %v8454_v49 }
 0x746   : > { %8499 = vst [vmem:[#allocation15] sm:$0x3] %v8494_v22 }
 0x747 PF: > { %p9930_p2 = scmp.eq.s32.totalorder %s10756_s30, 1  ;;  %s10694_s8 = smov [#allocation15]  }
 0x748   : > { %s8507_s18 = sshll.u32 %s10694_s8, 4  ;;  %s8508_s18 = int_to_ptr.vmem [resolvable:$true] %s8507_s18 }
 0x749   : > { %s10596_s21 = scalar_lea.vmem %s8508_s18, 32  ;;  %p10603_p11 = scmp.lt.s32.totalorder %s8508_s18, %s8508_s18 }
 0x74a   : > { %p10597_p9 = scmp.ne.s32.totalorder %s8508_s18, %s10596_s21  ;;  %p10604_p13 = scmp.lt.s32.totalorder %s10596_s21, %s10596_s21 }
 0x74c   : > { %p10598_p1 = pnand %p10597_p9, %p9930_p2  ;;  %p10605_p6 = por %p10604_p13, %p10603_p11 }
 0x74e   : > { %p10599_p4 = pneg %p10598_p1 }
 0x750   : > { %p10606_p3 = pnand %p10605_p6, %p10599_p4 }
 0x752   : > { %10609 = shalt.err (!%p10606_p3)
}
 0x753   : > { %s10610_s15 = scalar_lea.hbm %s12018_s7, 32 }
 0x754   : > { %p10611_p12 = scmp.ne.s32.totalorder %s12018_s7, %s10610_s15  ;;  %p10616_p8 = scmp.lt.u32.totalorder %s10610_s15, %s12018_s7 }
 0x756   : > { %p10612_p0 = pnand %p10611_p12, %p9930_p2 }
 0x758   : > { %p10613_p5 = pneg %p10612_p0 }
 0x75a   : > { %p10618_p10 = pnand %p10616_p8, %p10613_p5 }
 0x75c   : > { %10621 = shalt.err (!%p10618_p10)
}
 0x75d   : > { %9893 = dma.vmem_to_hbm [thread:$0]  (%p9930_p2), %s8508_s18, 32, %s12018_s7, [#allocation5]  }
 0x75e   : > { %10659 = dma.done.wait (%p9930_p2), [#allocation5], 32  }
 0x75f   : > { %10661 = vsyncadd (%p9930_p2), [#allocation5], 4294967264 }
 0x760 PF: > { %p23_p7 = scmp.ge.s32.totalorder %s10885_s19, 4   ;;  %s12037_s24 = smov %s10668_s25 }
 0x761   : > { %s12038_s25 = smov %s10672_s26  ;;  %s12039_s26 = smov %s10896_s13 }
 0x762   : > { %s12040_s27 = smov %s10885_s19  ;;  %25 = sbr.rel (!%p23_p7) target bundleno = 10 (0xa), region = 126 }
 0x769   :  { %8520 = vsyncpa [#allocation4], 1 }
 0x76a   :  { %8522 = vsyncpa [#allocation4 + $0x1], 1 }
 0x76b   :  { %8523 = vsyncpa [#allocation7], 1 }
 0x76c   :  { %8525 = vsyncpa [#allocation7 + $0x1], 1 }
 0x76d   :  { %8526 = vsyncpa [#allocation10], 1 }
 0x76e   :  { %8527 = vsyncpa [#allocation13], 1 }
 0x76f   :  { %8528 = vsyncpa [#allocation5], 1 }
 0x770   :  { %8530 = vsyncpa [#allocation5 + $0x1], 1 }

</bundles_post_ra>
